<compile_context>
chip_gen: v6e
topology: v6e:2x2x1
jax: 0.10.0
libtpu: 0.0.40
codegen_flags: <defaults>
</compile_context>

<pallas_src>
import functools
import math

import numpy as np

import jax
import jax.numpy as jnp
from jax.experimental import pallas as pl
from jax.experimental.pallas import tpu as pltpu

EPS = 1e-5

_LAYER_KEYS = ("wt", "bias_f", "gamma_f", "beta_f", "fold", "bcast",
               "s_up", "s_dn", "rp_e", "rp_o", "cp_e", "cp_o")


def _ceil_div(a, b):
    return -(-a // b)


# ----------------- wrapper-side: conv3x3 -> 3 banded GEMM blocks (unpadded W) -----------------
def _conv_weight_blocks(w_hwio, w_spatial):
    """(3, 3, Cin, Cout) kernel -> (3, W*Cin, W*Cout) bf16 banded blocks.

    Block dh multiplies the activation row shifted by (dh - 1) in H.  Within a row,
    element [wi*Cin+ci, wo*Cout+co] = k[dh, wi-wo+1, ci, co] when |wi - wo| <= 1,
    else 0 (zero W-padding is implicit: out-of-range input columns simply don't exist).
    """
    cin, cout = int(w_hwio.shape[2]), int(w_hwio.shape[3])
    Wd = w_spatial
    wi = np.arange(Wd)[:, None]
    wo = np.arange(Wd)[None, :]
    blocks = []
    for dh in range(3):
        acc = jnp.zeros((Wd * cin, Wd * cout), jnp.float32)
        for dw in range(3):
            place = jnp.asarray((wi == wo + dw - 1).astype(np.float32))      # (W, W)
            acc = acc + jnp.kron(place, w_hwio[dh, dw].astype(jnp.float32))
        blocks.append(acc)
    return jnp.stack(blocks, 0).astype(jnp.bfloat16)


# ----------------- one-time parameter expansion (cache & reuse across forwards) -----------------
def prepare_params(params, batch, height, width):
    """Expand module params into the GEMM-friendly operands consumed by the fused kernel."""
    layers = []
    h, w, cin = height, width, int(params["conv1_w"].shape[2])
    for l in range(4):
        wl = params[f"conv{l+1}_w"]                       # (3, 3, cin, cout) HWIO
        cout = int(wl.shape[-1])
        M, Ho, Wo = batch * h, _ceil_div(h, 2), _ceil_div(w, 2)
        nf = w * cout

        wt = _conv_weight_blocks(wl, w)                   # (3, w*cin, nf) bf16
        bias_f = jnp.tile(params[f"conv{l+1}_b"], (w,)).reshape(1, nf).astype(jnp.float32)
        gamma_f = jnp.tile(params[f"bn{l+1}_g"], (w,)).reshape(1, nf).astype(jnp.float32)
        beta_f = jnp.tile(params[f"bn{l+1}_b"], (w,)).reshape(1, nf).astype(jnp.float32)

        # exact 0/1 helper matrices (land on the otherwise idle MXU inside the kernel)
        fold = np.tile(np.eye(cout, dtype=np.float32), (w, 1))      # (nf, cout): lanes -> channel sum
        bcast = np.ascontiguousarray(fold.T)                        # (cout, nf): channel -> lanes

        s_up = np.zeros((M, M), np.float32)                         # row h <- row h-1 (0 at image top)
        s_dn = np.zeros((M, M), np.float32)                         # row h <- row h+1 (0 at image bottom)
        for i in range(M):
            if i % h != 0:
                s_up[i, i - 1] = 1.0
            if i % h != h - 1:
                s_dn[i, i + 1] = 1.0

        rp_e = np.zeros((batch * Ho, M), np.float32)                # H-pool: even / odd row selection
        rp_o = np.zeros((batch * Ho, M), np.float32)
        for b in range(batch):
            for i in range(Ho):
                rp_e[b * Ho + i, b * h + 2 * i] = 1.0
                rp_o[b * Ho + i, b * h + min(2 * i + 1, h - 1)] = 1.0   # ceil_mode clamp

        cp_e = np.zeros((nf, Wo * cout), np.float32)                # W-pool: even / odd lane-block selection
        cp_o = np.zeros((nf, Wo * cout), np.float32)
        for j in range(Wo):
            for c in range(cout):
                cp_e[(2 * j) * cout + c, j * cout + c] = 1.0
                cp_o[min(2 * j + 1, w - 1) * cout + c, j * cout + c] = 1.0  # ceil_mode clamp

        layers.append(dict(
            wt=wt, bias_f=bias_f, gamma_f=gamma_f, beta_f=beta_f,
            fold=jnp.asarray(fold), bcast=jnp.asarray(bcast),
            s_up=jnp.asarray(s_up), s_dn=jnp.asarray(s_dn),
            rp_e=jnp.asarray(rp_e), rp_o=jnp.asarray(rp_o),
            cp_e=jnp.asarray(cp_e), cp_o=jnp.asarray(cp_o)))
        h, w, cin = Ho, Wo, cout

    # fc weight permuted so the folded (h, w, c) flatten matches torch's NCHW out.view(B, -1)
    class_num = int(params["fc_w"].shape[0])
    hf, wf, cf = h, w, cin
    assert int(params["fc_w"].shape[1]) == cf * hf * wf, "embed_dim mismatch"
    fc_w = params["fc_w"].reshape(class_num, cf, hf, wf).transpose(2, 3, 1, 0)
    fc_w = fc_w.reshape(hf * wf * cf, class_num).astype(jnp.float32)
    fc_b = params["fc_b"].reshape(1, class_num).astype(jnp.float32)
    return dict(layers=layers, fc_w=fc_w, fc_b=fc_b)


# ----------------- the fused encoder kernel -----------------
def _encoder_kernel(*refs, layer_dims, batch):
    # refs: x, 12 operands per layer, fc_w, fc_b, out
    x_ref = refs[0]
    fc_w_ref, fc_b_ref, out_ref = refs[-3], refs[-2], refs[-1]

    a = x_ref[...]                                       # (B*H, W*C) fp32, rows=(b,h), lanes=(w,c)

    for l, (H, W, _Cin, Cout) in enumerate(layer_dims):
        (wt_ref, bias_ref, gam_ref, bet_ref, fold_ref, bcast_ref,
         sup_ref, sdn_ref, rpe_ref, rpo_ref, cpe_ref, cpo_ref) = refs[1 + 12 * l: 1 + 12 * (l + 1)]

        # ---- 3x3 conv: exact 0/1 row-shift GEMMs + 3 accumulating bf16 MXU GEMMs ----
        a_up = jnp.dot(sup_ref[...], a, preferred_element_type=jnp.float32)   # row h -> input row h-1
        a_dn = jnp.dot(sdn_ref[...], a, preferred_element_type=jnp.float32)   # row h -> input row h+1
        y = jnp.dot(a_up.astype(jnp.bfloat16), wt_ref[0], preferred_element_type=jnp.float32)
        y = y + jnp.dot(a.astype(jnp.bfloat16), wt_ref[1], preferred_element_type=jnp.float32)
        y = y + jnp.dot(a_dn.astype(jnp.bfloat16), wt_ref[2], preferred_element_type=jnp.float32)
        y = y + bias_ref[...]

        # ---- BatchNorm2d (training-mode batch stats, two-pass, fp32) ----
        inv_cnt = 1.0 / float(batch * H * W)
        s1 = jnp.sum(y, axis=0, keepdims=True)                                           # (1, Nf)
        mean_c = jnp.dot(s1, fold_ref[...], preferred_element_type=jnp.float32) * inv_cnt  # (1, Cout)
        mean_f = jnp.dot(mean_c, bcast_ref[...], preferred_element_type=jnp.float32)       # (1, Nf)
        yc = y - mean_f
        s2 = jnp.sum(yc * yc, axis=0, keepdims=True)
        var_c = jnp.dot(s2, fold_ref[...], preferred_element_type=jnp.float32) * inv_cnt
        inv_c = jax.lax.rsqrt(var_c + EPS)
        inv_f = jnp.dot(inv_c, bcast_ref[...], preferred_element_type=jnp.float32)

        # ---- BN affine + ReLU ----
        y = jnp.maximum(yc * (gam_ref[...] * inv_f) + bet_ref[...], 0.0)

        # ---- MaxPool2d(2, ceil_mode=True): row pool then column pool, as 0/1 selection GEMMs ----
        yh = jnp.maximum(jnp.dot(rpe_ref[...], y, preferred_element_type=jnp.float32),
                         jnp.dot(rpo_ref[...], y, preferred_element_type=jnp.float32))     # (B*Ho, Nf)
        a = jnp.maximum(jnp.dot(yh, cpe_ref[...], preferred_element_type=jnp.float32),
                        jnp.dot(yh, cpo_ref[...], preferred_element_type=jnp.float32))     # (B*Ho, Wo*Cout)

    # ---- flatten ((h, w, c) order; NCHW order pre-baked into fc weight permutation) + Linear ----
    Hl, Wl, _, Cl = layer_dims[-1]
    Hf, Wf = _ceil_div(Hl, 2), _ceil_div(Wl, 2)
    a_flat = a.reshape(batch, Hf * Wf * Cl)              # identity reshape when Hf == 1
    out_ref[...] = (jnp.dot(a_flat, fc_w_ref[...], preferred_element_type=jnp.float32)
                    + fc_b_ref[...])


# ----------------- parameters (deterministic, matching __init__ shapes & init stats) -----------------
def init_params(key, class_num, num_channel, h_dim, embed_dim):
    params = {}
    cin = num_channel
    for l in range(4):
        key, kw = jax.random.split(key)
        std = math.sqrt(2.0 / (3 * 3 * h_dim))            # n = kh * kw * out_channels
        params[f"conv{l+1}_w"] = std * jax.random.normal(kw, (3, 3, cin, h_dim), jnp.float32)
        params[f"conv{l+1}_b"] = jnp.zeros((h_dim,), jnp.float32)
        params[f"bn{l+1}_g"] = jnp.ones((h_dim,), jnp.float32)
        params[f"bn{l+1}_b"] = jnp.zeros((h_dim,), jnp.float32)
        cin = h_dim
    key, kw = jax.random.split(key)
    params["fc_w"] = 0.01 * jax.random.normal(kw, (class_num, embed_dim), jnp.float32)
    params["fc_b"] = jnp.ones((class_num,), jnp.float32)
    return params


# ----------------- public forward -----------------
def cnn_encoder_forward(prepared, x_nchw):
    # NCHW (PyTorch) -> NHWC -> folded lane-dense (B*H, W*C)
    x = jnp.transpose(x_nchw, (0, 2, 3, 1)).astype(jnp.float32)
    B, H, W, C0 = x.shape
    a = x.reshape(B * H, W * C0)

    layer_dims = []
    flat_inputs = [a]
    h, w, cin = H, W, C0
    for lp in prepared["layers"]:
        cout = int(lp["fold"].shape[1])
        layer_dims.append((h, w, cin, cout))
        flat_inputs += [lp[k] for k in _LAYER_KEYS]
        h, w, cin = _ceil_div(h, 2), _ceil_div(w, 2), cout
    flat_inputs += [prepared["fc_w"], prepared["fc_b"]]
    class_num = int(prepared["fc_w"].shape[1])

    kernel = functools.partial(_encoder_kernel, layer_dims=tuple(layer_dims), batch=B)
    out = pl.pallas_call(
        kernel,
        out_shape=jax.ShapeDtypeStruct((B, class_num), jnp.float32),
        in_specs=[pl.BlockSpec(memory_space=pltpu.MemorySpace.VMEM)] * len(flat_inputs),
        out_specs=pl.BlockSpec(memory_space=pltpu.MemorySpace.VMEM),
        compiler_params=pltpu.CompilerParams(vmem_limit_bytes=32 * 1024 * 1024),
    )(*flat_inputs)
    return out


if __name__ == "__main__":
    class_num, num_channel, h_dim = 5, 4, 32
    B, H, W = 2, 16, 16
    # 4 ceil-pools of stride 2: 16 -> 8 -> 4 -> 2 -> 1, so embed_dim = h_dim * 1 * 1
    embed_dim = h_dim * 1 * 1

    key = jax.random.PRNGKey(0)
    kp, kx = jax.random.split(key)
    params = init_params(kp, class_num, num_channel, h_dim, embed_dim)
    x = jax.random.normal(kx, (B, num_channel, H, W), jnp.float32)

    prepared = prepare_params(params, B, H, W)       # one-time weight expansion, cached & reused
    fwd = jax.jit(cnn_encoder_forward)
    out = jax.block_until_ready(fwd(prepared, x))

    assert out.shape == (B, class_num), out.shape
    assert bool(jnp.all(jnp.isfinite(out)))
    print("KERNEL_OK")
</pallas_src>

<mosaic_0001>
module attributes {stable_mosaic.version = 11 : i64} {
  func.func @_encoder_kernel(%arg0: memref<32x64xf32, #tpu.memory_space<vmem>>, %arg1: memref<3x64x512xbf16, #tpu.memory_space<vmem>>, %arg2: memref<1x512xf32, #tpu.memory_space<vmem>>, %arg3: memref<1x512xf32, #tpu.memory_space<vmem>>, %arg4: memref<1x512xf32, #tpu.memory_space<vmem>>, %arg5: memref<512x32xf32, #tpu.memory_space<vmem>>, %arg6: memref<32x512xf32, #tpu.memory_space<vmem>>, %arg7: memref<32x32xf32, #tpu.memory_space<vmem>>, %arg8: memref<32x32xf32, #tpu.memory_space<vmem>>, %arg9: memref<16x32xf32, #tpu.memory_space<vmem>>, %arg10: memref<16x32xf32, #tpu.memory_space<vmem>>, %arg11: memref<512x256xf32, #tpu.memory_space<vmem>>, %arg12: memref<512x256xf32, #tpu.memory_space<vmem>>, %arg13: memref<3x256x256xbf16, #tpu.memory_space<vmem>>, %arg14: memref<1x256xf32, #tpu.memory_space<vmem>>, %arg15: memref<1x256xf32, #tpu.memory_space<vmem>>, %arg16: memref<1x256xf32, #tpu.memory_space<vmem>>, %arg17: memref<256x32xf32, #tpu.memory_space<vmem>>, %arg18: memref<32x256xf32, #tpu.memory_space<vmem>>, %arg19: memref<16x16xf32, #tpu.memory_space<vmem>>, %arg20: memref<16x16xf32, #tpu.memory_space<vmem>>, %arg21: memref<8x16xf32, #tpu.memory_space<vmem>>, %arg22: memref<8x16xf32, #tpu.memory_space<vmem>>, %arg23: memref<256x128xf32, #tpu.memory_space<vmem>>, %arg24: memref<256x128xf32, #tpu.memory_space<vmem>>, %arg25: memref<3x128x128xbf16, #tpu.memory_space<vmem>>, %arg26: memref<1x128xf32, #tpu.memory_space<vmem>>, %arg27: memref<1x128xf32, #tpu.memory_space<vmem>>, %arg28: memref<1x128xf32, #tpu.memory_space<vmem>>, %arg29: memref<128x32xf32, #tpu.memory_space<vmem>>, %arg30: memref<32x128xf32, #tpu.memory_space<vmem>>, %arg31: memref<8x8xf32, #tpu.memory_space<vmem>>, %arg32: memref<8x8xf32, #tpu.memory_space<vmem>>, %arg33: memref<4x8xf32, #tpu.memory_space<vmem>>, %arg34: memref<4x8xf32, #tpu.memory_space<vmem>>, %arg35: memref<128x64xf32, #tpu.memory_space<vmem>>, %arg36: memref<128x64xf32, #tpu.memory_space<vmem>>, %arg37: memref<3x64x64xbf16, #tpu.memory_space<vmem>>, %arg38: memref<1x64xf32, #tpu.memory_space<vmem>>, %arg39: memref<1x64xf32, #tpu.memory_space<vmem>>, %arg40: memref<1x64xf32, #tpu.memory_space<vmem>>, %arg41: memref<64x32xf32, #tpu.memory_space<vmem>>, %arg42: memref<32x64xf32, #tpu.memory_space<vmem>>, %arg43: memref<4x4xf32, #tpu.memory_space<vmem>>, %arg44: memref<4x4xf32, #tpu.memory_space<vmem>>, %arg45: memref<2x4xf32, #tpu.memory_space<vmem>>, %arg46: memref<2x4xf32, #tpu.memory_space<vmem>>, %arg47: memref<64x32xf32, #tpu.memory_space<vmem>>, %arg48: memref<64x32xf32, #tpu.memory_space<vmem>>, %arg49: memref<32x5xf32, #tpu.memory_space<vmem>>, %arg50: memref<1x5xf32, #tpu.memory_space<vmem>>, %arg51: memref<2x5xf32, #tpu.memory_space<vmem>>) attributes {dimension_semantics = [], scalar_prefetch = 0 : i64, scratch_operands = 0 : i64, tpu.core_type = #tpu.core_type<tc>} {
    %c0 = arith.constant 0 : index
    %c0_0 = arith.constant 0 : index
    %0 = vector.load %arg0[%c0, %c0_0] : memref<32x64xf32, #tpu.memory_space<vmem>>, vector<32x64xf32>
    %c0_1 = arith.constant 0 : index
    %c0_2 = arith.constant 0 : index
    %1 = vector.load %arg7[%c0_1, %c0_2] : memref<32x32xf32, #tpu.memory_space<vmem>>, vector<32x32xf32>
    %cst = arith.constant dense<0.000000e+00> : vector<32x64xf32>
    %2 = tpu.matmul %1, %0, %cst {dimension_numbers = #tpu.dot_dimension_numbers<[1], [0], [0], [1], [0, 0, 1, 1], [], []>} : vector<32x32xf32>, vector<32x64xf32>, vector<32x64xf32> -> vector<32x64xf32>
    %c0_3 = arith.constant 0 : index
    %c0_4 = arith.constant 0 : index
    %3 = vector.load %arg8[%c0_3, %c0_4] : memref<32x32xf32, #tpu.memory_space<vmem>>, vector<32x32xf32>
    %cst_5 = arith.constant dense<0.000000e+00> : vector<32x64xf32>
    %4 = tpu.matmul %3, %0, %cst_5 {dimension_numbers = #tpu.dot_dimension_numbers<[1], [0], [0], [1], [0, 0, 1, 1], [], []>} : vector<32x32xf32>, vector<32x64xf32>, vector<32x64xf32> -> vector<32x64xf32>
    %5 = arith.truncf %2 : vector<32x64xf32> to vector<32x64xbf16>
    %c0_6 = arith.constant 0 : index
    %c0_7 = arith.constant 0 : index
    %c0_8 = arith.constant 0 : index
    %6 = vector.load %arg1[%c0_6, %c0_7, %c0_8] : memref<3x64x512xbf16, #tpu.memory_space<vmem>>, vector<1x64x512xbf16>
    %7 = vector.shape_cast %6 : vector<1x64x512xbf16> to vector<64x512xbf16>
    %cst_9 = arith.constant dense<0.000000e+00> : vector<32x512xf32>
    %8 = tpu.matmul %5, %7, %cst_9 {dimension_numbers = #tpu.dot_dimension_numbers<[1], [0], [0], [1], [0, 0, 1, 1], [], []>} : vector<32x64xbf16>, vector<64x512xbf16>, vector<32x512xf32> -> vector<32x512xf32>
    %9 = arith.truncf %0 : vector<32x64xf32> to vector<32x64xbf16>
    %c1 = arith.constant 1 : index
    %c0_10 = arith.constant 0 : index
    %c0_11 = arith.constant 0 : index
    %10 = vector.load %arg1[%c1, %c0_10, %c0_11] : memref<3x64x512xbf16, #tpu.memory_space<vmem>>, vector<1x64x512xbf16>
    %11 = vector.shape_cast %10 : vector<1x64x512xbf16> to vector<64x512xbf16>
    %cst_12 = arith.constant dense<0.000000e+00> : vector<32x512xf32>
    %12 = tpu.matmul %9, %11, %cst_12 {dimension_numbers = #tpu.dot_dimension_numbers<[1], [0], [0], [1], [0, 0, 1, 1], [], []>} : vector<32x64xbf16>, vector<64x512xbf16>, vector<32x512xf32> -> vector<32x512xf32>
    %13 = arith.addf %8, %12 : vector<32x512xf32>
    %14 = arith.truncf %4 : vector<32x64xf32> to vector<32x64xbf16>
    %c2 = arith.constant 2 : index
    %c0_13 = arith.constant 0 : index
    %c0_14 = arith.constant 0 : index
    %15 = vector.load %arg1[%c2, %c0_13, %c0_14] : memref<3x64x512xbf16, #tpu.memory_space<vmem>>, vector<1x64x512xbf16>
    %16 = vector.shape_cast %15 : vector<1x64x512xbf16> to vector<64x512xbf16>
    %cst_15 = arith.constant dense<0.000000e+00> : vector<32x512xf32>
    %17 = tpu.matmul %14, %16, %cst_15 {dimension_numbers = #tpu.dot_dimension_numbers<[1], [0], [0], [1], [0, 0, 1, 1], [], []>} : vector<32x64xbf16>, vector<64x512xbf16>, vector<32x512xf32> -> vector<32x512xf32>
    %18 = arith.addf %13, %17 : vector<32x512xf32>
    %c0_16 = arith.constant 0 : index
    %c0_17 = arith.constant 0 : index
    %19 = vector.load %arg2[%c0_16, %c0_17] : memref<1x512xf32, #tpu.memory_space<vmem>>, vector<1x512xf32>
    %20 = vector.broadcast %19 : vector<1x512xf32> to vector<32x512xf32>
    %21 = arith.addf %18, %20 : vector<32x512xf32>
    %cst_18 = arith.constant dense<0.000000e+00> : vector<512xf32>
    %22 = vector.multi_reduction <add>, %21, %cst_18 [0] : vector<32x512xf32> to vector<512xf32>
    %23 = vector.shape_cast %22 : vector<512xf32> to vector<1x512xf32>
    %c0_19 = arith.constant 0 : index
    %c0_20 = arith.constant 0 : index
    %24 = vector.load %arg5[%c0_19, %c0_20] : memref<512x32xf32, #tpu.memory_space<vmem>>, vector<512x32xf32>
    %cst_21 = arith.constant dense<0.000000e+00> : vector<1x32xf32>
    %25 = tpu.matmul %23, %24, %cst_21 {dimension_numbers = #tpu.dot_dimension_numbers<[1], [0], [0], [1], [0, 0, 1, 1], [], []>} : vector<1x512xf32>, vector<512x32xf32>, vector<1x32xf32> -> vector<1x32xf32>
    %cst_22 = arith.constant 0.001953125 : f32
    %26 = vector.broadcast %cst_22 : f32 to vector<1x32xf32>
    %27 = arith.mulf %25, %26 : vector<1x32xf32>
    %c0_23 = arith.constant 0 : index
    %c0_24 = arith.constant 0 : index
    %28 = vector.load %arg6[%c0_23, %c0_24] : memref<32x512xf32, #tpu.memory_space<vmem>>, vector<32x512xf32>
    %cst_25 = arith.constant dense<0.000000e+00> : vector<1x512xf32>
    %29 = tpu.matmul %27, %28, %cst_25 {dimension_numbers = #tpu.dot_dimension_numbers<[1], [0], [0], [1], [0, 0, 1, 1], [], []>} : vector<1x32xf32>, vector<32x512xf32>, vector<1x512xf32> -> vector<1x512xf32>
    %30 = vector.broadcast %29 : vector<1x512xf32> to vector<32x512xf32>
    %31 = arith.subf %21, %30 : vector<32x512xf32>
    %32 = arith.mulf %31, %31 : vector<32x512xf32>
    %cst_26 = arith.constant dense<0.000000e+00> : vector<512xf32>
    %33 = vector.multi_reduction <add>, %32, %cst_26 [0] : vector<32x512xf32> to vector<512xf32>
    %34 = vector.shape_cast %33 : vector<512xf32> to vector<1x512xf32>
    %c0_27 = arith.constant 0 : index
    %c0_28 = arith.constant 0 : index
    %35 = vector.load %arg5[%c0_27, %c0_28] : memref<512x32xf32, #tpu.memory_space<vmem>>, vector<512x32xf32>
    %cst_29 = arith.constant dense<0.000000e+00> : vector<1x32xf32>
    %36 = tpu.matmul %34, %35, %cst_29 {dimension_numbers = #tpu.dot_dimension_numbers<[1], [0], [0], [1], [0, 0, 1, 1], [], []>} : vector<1x512xf32>, vector<512x32xf32>, vector<1x32xf32> -> vector<1x32xf32>
    %cst_30 = arith.constant 0.001953125 : f32
    %37 = vector.broadcast %cst_30 : f32 to vector<1x32xf32>
    %38 = arith.mulf %36, %37 : vector<1x32xf32>
    %cst_31 = arith.constant 9.99999974E-6 : f32
    %39 = vector.broadcast %cst_31 : f32 to vector<1x32xf32>
    %40 = arith.addf %38, %39 : vector<1x32xf32>
    %41 = math.rsqrt %40 : vector<1x32xf32>
    %c0_32 = arith.constant 0 : index
    %c0_33 = arith.constant 0 : index
    %42 = vector.load %arg6[%c0_32, %c0_33] : memref<32x512xf32, #tpu.memory_space<vmem>>, vector<32x512xf32>
    %cst_34 = arith.constant dense<0.000000e+00> : vector<1x512xf32>
    %43 = tpu.matmul %41, %42, %cst_34 {dimension_numbers = #tpu.dot_dimension_numbers<[1], [0], [0], [1], [0, 0, 1, 1], [], []>} : vector<1x32xf32>, vector<32x512xf32>, vector<1x512xf32> -> vector<1x512xf32>
    %c0_35 = arith.constant 0 : index
    %c0_36 = arith.constant 0 : index
    %44 = vector.load %arg3[%c0_35, %c0_36] : memref<1x512xf32, #tpu.memory_space<vmem>>, vector<1x512xf32>
    %45 = arith.mulf %44, %43 : vector<1x512xf32>
    %46 = vector.broadcast %45 : vector<1x512xf32> to vector<32x512xf32>
    %47 = arith.mulf %31, %46 : vector<32x512xf32>
    %c0_37 = arith.constant 0 : index
    %c0_38 = arith.constant 0 : index
    %48 = vector.load %arg4[%c0_37, %c0_38] : memref<1x512xf32, #tpu.memory_space<vmem>>, vector<1x512xf32>
    %49 = vector.broadcast %48 : vector<1x512xf32> to vector<32x512xf32>
    %50 = arith.addf %47, %49 : vector<32x512xf32>
    %cst_39 = arith.constant 0.000000e+00 : f32
    %51 = vector.broadcast %cst_39 : f32 to vector<32x512xf32>
    %52 = arith.maximumf %50, %51 : vector<32x512xf32>
    %c0_40 = arith.constant 0 : index
    %c0_41 = arith.constant 0 : index
    %53 = vector.load %arg9[%c0_40, %c0_41] : memref<16x32xf32, #tpu.memory_space<vmem>>, vector<16x32xf32>
    %cst_42 = arith.constant dense<0.000000e+00> : vector<16x512xf32>
    %54 = tpu.matmul %53, %52, %cst_42 {dimension_numbers = #tpu.dot_dimension_numbers<[1], [0], [0], [1], [0, 0, 1, 1], [], []>} : vector<16x32xf32>, vector<32x512xf32>, vector<16x512xf32> -> vector<16x512xf32>
    %c0_43 = arith.constant 0 : index
    %c0_44 = arith.constant 0 : index
    %55 = vector.load %arg10[%c0_43, %c0_44] : memref<16x32xf32, #tpu.memory_space<vmem>>, vector<16x32xf32>
    %cst_45 = arith.constant dense<0.000000e+00> : vector<16x512xf32>
    %56 = tpu.matmul %55, %52, %cst_45 {dimension_numbers = #tpu.dot_dimension_numbers<[1], [0], [0], [1], [0, 0, 1, 1], [], []>} : vector<16x32xf32>, vector<32x512xf32>, vector<16x512xf32> -> vector<16x512xf32>
    %57 = arith.maximumf %54, %56 : vector<16x512xf32>
    %c0_46 = arith.constant 0 : index
    %c0_47 = arith.constant 0 : index
    %58 = vector.load %arg11[%c0_46, %c0_47] : memref<512x256xf32, #tpu.memory_space<vmem>>, vector<512x256xf32>
    %cst_48 = arith.constant dense<0.000000e+00> : vector<16x256xf32>
    %59 = tpu.matmul %57, %58, %cst_48 {dimension_numbers = #tpu.dot_dimension_numbers<[1], [0], [0], [1], [0, 0, 1, 1], [], []>} : vector<16x512xf32>, vector<512x256xf32>, vector<16x256xf32> -> vector<16x256xf32>
    %c0_49 = arith.constant 0 : index
    %c0_50 = arith.constant 0 : index
    %60 = vector.load %arg12[%c0_49, %c0_50] : memref<512x256xf32, #tpu.memory_space<vmem>>, vector<512x256xf32>
    %cst_51 = arith.constant dense<0.000000e+00> : vector<16x256xf32>
    %61 = tpu.matmul %57, %60, %cst_51 {dimension_numbers = #tpu.dot_dimension_numbers<[1], [0], [0], [1], [0, 0, 1, 1], [], []>} : vector<16x512xf32>, vector<512x256xf32>, vector<16x256xf32> -> vector<16x256xf32>
    %62 = arith.maximumf %59, %61 : vector<16x256xf32>
    %c0_52 = arith.constant 0 : index
    %c0_53 = arith.constant 0 : index
    %63 = vector.load %arg19[%c0_52, %c0_53] : memref<16x16xf32, #tpu.memory_space<vmem>>, vector<16x16xf32>
    %cst_54 = arith.constant dense<0.000000e+00> : vector<16x256xf32>
    %64 = tpu.matmul %63, %62, %cst_54 {dimension_numbers = #tpu.dot_dimension_numbers<[1], [0], [0], [1], [0, 0, 1, 1], [], []>} : vector<16x16xf32>, vector<16x256xf32>, vector<16x256xf32> -> vector<16x256xf32>
    %c0_55 = arith.constant 0 : index
    %c0_56 = arith.constant 0 : index
    %65 = vector.load %arg20[%c0_55, %c0_56] : memref<16x16xf32, #tpu.memory_space<vmem>>, vector<16x16xf32>
    %cst_57 = arith.constant dense<0.000000e+00> : vector<16x256xf32>
    %66 = tpu.matmul %65, %62, %cst_57 {dimension_numbers = #tpu.dot_dimension_numbers<[1], [0], [0], [1], [0, 0, 1, 1], [], []>} : vector<16x16xf32>, vector<16x256xf32>, vector<16x256xf32> -> vector<16x256xf32>
    %67 = arith.truncf %64 : vector<16x256xf32> to vector<16x256xbf16>
    %c0_58 = arith.constant 0 : index
    %c0_59 = arith.constant 0 : index
    %c0_60 = arith.constant 0 : index
    %68 = vector.load %arg13[%c0_58, %c0_59, %c0_60] : memref<3x256x256xbf16, #tpu.memory_space<vmem>>, vector<1x256x256xbf16>
    %69 = vector.shape_cast %68 : vector<1x256x256xbf16> to vector<256x256xbf16>
    %cst_61 = arith.constant dense<0.000000e+00> : vector<16x256xf32>
    %70 = tpu.matmul %67, %69, %cst_61 {dimension_numbers = #tpu.dot_dimension_numbers<[1], [0], [0], [1], [0, 0, 1, 1], [], []>} : vector<16x256xbf16>, vector<256x256xbf16>, vector<16x256xf32> -> vector<16x256xf32>
    %71 = arith.truncf %62 : vector<16x256xf32> to vector<16x256xbf16>
    %c1_62 = arith.constant 1 : index
    %c0_63 = arith.constant 0 : index
    %c0_64 = arith.constant 0 : index
    %72 = vector.load %arg13[%c1_62, %c0_63, %c0_64] : memref<3x256x256xbf16, #tpu.memory_space<vmem>>, vector<1x256x256xbf16>
    %73 = vector.shape_cast %72 : vector<1x256x256xbf16> to vector<256x256xbf16>
    %cst_65 = arith.constant dense<0.000000e+00> : vector<16x256xf32>
    %74 = tpu.matmul %71, %73, %cst_65 {dimension_numbers = #tpu.dot_dimension_numbers<[1], [0], [0], [1], [0, 0, 1, 1], [], []>} : vector<16x256xbf16>, vector<256x256xbf16>, vector<16x256xf32> -> vector<16x256xf32>
    %75 = arith.addf %70, %74 : vector<16x256xf32>
    %76 = arith.truncf %66 : vector<16x256xf32> to vector<16x256xbf16>
    %c2_66 = arith.constant 2 : index
    %c0_67 = arith.constant 0 : index
    %c0_68 = arith.constant 0 : index
    %77 = vector.load %arg13[%c2_66, %c0_67, %c0_68] : memref<3x256x256xbf16, #tpu.memory_space<vmem>>, vector<1x256x256xbf16>
    %78 = vector.shape_cast %77 : vector<1x256x256xbf16> to vector<256x256xbf16>
    %cst_69 = arith.constant dense<0.000000e+00> : vector<16x256xf32>
    %79 = tpu.matmul %76, %78, %cst_69 {dimension_numbers = #tpu.dot_dimension_numbers<[1], [0], [0], [1], [0, 0, 1, 1], [], []>} : vector<16x256xbf16>, vector<256x256xbf16>, vector<16x256xf32> -> vector<16x256xf32>
    %80 = arith.addf %75, %79 : vector<16x256xf32>
    %c0_70 = arith.constant 0 : index
    %c0_71 = arith.constant 0 : index
    %81 = vector.load %arg14[%c0_70, %c0_71] : memref<1x256xf32, #tpu.memory_space<vmem>>, vector<1x256xf32>
    %82 = vector.broadcast %81 : vector<1x256xf32> to vector<16x256xf32>
    %83 = arith.addf %80, %82 : vector<16x256xf32>
    %cst_72 = arith.constant dense<0.000000e+00> : vector<256xf32>
    %84 = vector.multi_reduction <add>, %83, %cst_72 [0] : vector<16x256xf32> to vector<256xf32>
    %85 = vector.shape_cast %84 : vector<256xf32> to vector<1x256xf32>
    %c0_73 = arith.constant 0 : index
    %c0_74 = arith.constant 0 : index
    %86 = vector.load %arg17[%c0_73, %c0_74] : memref<256x32xf32, #tpu.memory_space<vmem>>, vector<256x32xf32>
    %cst_75 = arith.constant dense<0.000000e+00> : vector<1x32xf32>
    %87 = tpu.matmul %85, %86, %cst_75 {dimension_numbers = #tpu.dot_dimension_numbers<[1], [0], [0], [1], [0, 0, 1, 1], [], []>} : vector<1x256xf32>, vector<256x32xf32>, vector<1x32xf32> -> vector<1x32xf32>
    %cst_76 = arith.constant 7.812500e-03 : f32
    %88 = vector.broadcast %cst_76 : f32 to vector<1x32xf32>
    %89 = arith.mulf %87, %88 : vector<1x32xf32>
    %c0_77 = arith.constant 0 : index
    %c0_78 = arith.constant 0 : index
    %90 = vector.load %arg18[%c0_77, %c0_78] : memref<32x256xf32, #tpu.memory_space<vmem>>, vector<32x256xf32>
    %cst_79 = arith.constant dense<0.000000e+00> : vector<1x256xf32>
    %91 = tpu.matmul %89, %90, %cst_79 {dimension_numbers = #tpu.dot_dimension_numbers<[1], [0], [0], [1], [0, 0, 1, 1], [], []>} : vector<1x32xf32>, vector<32x256xf32>, vector<1x256xf32> -> vector<1x256xf32>
    %92 = vector.broadcast %91 : vector<1x256xf32> to vector<16x256xf32>
    %93 = arith.subf %83, %92 : vector<16x256xf32>
    %94 = arith.mulf %93, %93 : vector<16x256xf32>
    %cst_80 = arith.constant dense<0.000000e+00> : vector<256xf32>
    %95 = vector.multi_reduction <add>, %94, %cst_80 [0] : vector<16x256xf32> to vector<256xf32>
    %96 = vector.shape_cast %95 : vector<256xf32> to vector<1x256xf32>
    %c0_81 = arith.constant 0 : index
    %c0_82 = arith.constant 0 : index
    %97 = vector.load %arg17[%c0_81, %c0_82] : memref<256x32xf32, #tpu.memory_space<vmem>>, vector<256x32xf32>
    %cst_83 = arith.constant dense<0.000000e+00> : vector<1x32xf32>
    %98 = tpu.matmul %96, %97, %cst_83 {dimension_numbers = #tpu.dot_dimension_numbers<[1], [0], [0], [1], [0, 0, 1, 1], [], []>} : vector<1x256xf32>, vector<256x32xf32>, vector<1x32xf32> -> vector<1x32xf32>
    %cst_84 = arith.constant 7.812500e-03 : f32
    %99 = vector.broadcast %cst_84 : f32 to vector<1x32xf32>
    %100 = arith.mulf %98, %99 : vector<1x32xf32>
    %cst_85 = arith.constant 9.99999974E-6 : f32
    %101 = vector.broadcast %cst_85 : f32 to vector<1x32xf32>
    %102 = arith.addf %100, %101 : vector<1x32xf32>
    %103 = math.rsqrt %102 : vector<1x32xf32>
    %c0_86 = arith.constant 0 : index
    %c0_87 = arith.constant 0 : index
    %104 = vector.load %arg18[%c0_86, %c0_87] : memref<32x256xf32, #tpu.memory_space<vmem>>, vector<32x256xf32>
    %cst_88 = arith.constant dense<0.000000e+00> : vector<1x256xf32>
    %105 = tpu.matmul %103, %104, %cst_88 {dimension_numbers = #tpu.dot_dimension_numbers<[1], [0], [0], [1], [0, 0, 1, 1], [], []>} : vector<1x32xf32>, vector<32x256xf32>, vector<1x256xf32> -> vector<1x256xf32>
    %c0_89 = arith.constant 0 : index
    %c0_90 = arith.constant 0 : index
    %106 = vector.load %arg15[%c0_89, %c0_90] : memref<1x256xf32, #tpu.memory_space<vmem>>, vector<1x256xf32>
    %107 = arith.mulf %106, %105 : vector<1x256xf32>
    %108 = vector.broadcast %107 : vector<1x256xf32> to vector<16x256xf32>
    %109 = arith.mulf %93, %108 : vector<16x256xf32>
    %c0_91 = arith.constant 0 : index
    %c0_92 = arith.constant 0 : index
    %110 = vector.load %arg16[%c0_91, %c0_92] : memref<1x256xf32, #tpu.memory_space<vmem>>, vector<1x256xf32>
    %111 = vector.broadcast %110 : vector<1x256xf32> to vector<16x256xf32>
    %112 = arith.addf %109, %111 : vector<16x256xf32>
    %cst_93 = arith.constant 0.000000e+00 : f32
    %113 = vector.broadcast %cst_93 : f32 to vector<16x256xf32>
    %114 = arith.maximumf %112, %113 : vector<16x256xf32>
    %c0_94 = arith.constant 0 : index
    %c0_95 = arith.constant 0 : index
    %115 = vector.load %arg21[%c0_94, %c0_95] : memref<8x16xf32, #tpu.memory_space<vmem>>, vector<8x16xf32>
    %cst_96 = arith.constant dense<0.000000e+00> : vector<8x256xf32>
    %116 = tpu.matmul %115, %114, %cst_96 {dimension_numbers = #tpu.dot_dimension_numbers<[1], [0], [0], [1], [0, 0, 1, 1], [], []>} : vector<8x16xf32>, vector<16x256xf32>, vector<8x256xf32> -> vector<8x256xf32>
    %c0_97 = arith.constant 0 : index
    %c0_98 = arith.constant 0 : index
    %117 = vector.load %arg22[%c0_97, %c0_98] : memref<8x16xf32, #tpu.memory_space<vmem>>, vector<8x16xf32>
    %cst_99 = arith.constant dense<0.000000e+00> : vector<8x256xf32>
    %118 = tpu.matmul %117, %114, %cst_99 {dimension_numbers = #tpu.dot_dimension_numbers<[1], [0], [0], [1], [0, 0, 1, 1], [], []>} : vector<8x16xf32>, vector<16x256xf32>, vector<8x256xf32> -> vector<8x256xf32>
    %119 = arith.maximumf %116, %118 : vector<8x256xf32>
    %c0_100 = arith.constant 0 : index
    %c0_101 = arith.constant 0 : index
    %120 = vector.load %arg23[%c0_100, %c0_101] : memref<256x128xf32, #tpu.memory_space<vmem>>, vector<256x128xf32>
    %cst_102 = arith.constant dense<0.000000e+00> : vector<8x128xf32>
    %121 = tpu.matmul %119, %120, %cst_102 {dimension_numbers = #tpu.dot_dimension_numbers<[1], [0], [0], [1], [0, 0, 1, 1], [], []>} : vector<8x256xf32>, vector<256x128xf32>, vector<8x128xf32> -> vector<8x128xf32>
    %c0_103 = arith.constant 0 : index
    %c0_104 = arith.constant 0 : index
    %122 = vector.load %arg24[%c0_103, %c0_104] : memref<256x128xf32, #tpu.memory_space<vmem>>, vector<256x128xf32>
    %cst_105 = arith.constant dense<0.000000e+00> : vector<8x128xf32>
    %123 = tpu.matmul %119, %122, %cst_105 {dimension_numbers = #tpu.dot_dimension_numbers<[1], [0], [0], [1], [0, 0, 1, 1], [], []>} : vector<8x256xf32>, vector<256x128xf32>, vector<8x128xf32> -> vector<8x128xf32>
    %124 = arith.maximumf %121, %123 : vector<8x128xf32>
    %c0_106 = arith.constant 0 : index
    %c0_107 = arith.constant 0 : index
    %125 = vector.load %arg31[%c0_106, %c0_107] : memref<8x8xf32, #tpu.memory_space<vmem>>, vector<8x8xf32>
    %cst_108 = arith.constant dense<0.000000e+00> : vector<8x128xf32>
    %126 = tpu.matmul %125, %124, %cst_108 {dimension_numbers = #tpu.dot_dimension_numbers<[1], [0], [0], [1], [0, 0, 1, 1], [], []>} : vector<8x8xf32>, vector<8x128xf32>, vector<8x128xf32> -> vector<8x128xf32>
    %c0_109 = arith.constant 0 : index
    %c0_110 = arith.constant 0 : index
    %127 = vector.load %arg32[%c0_109, %c0_110] : memref<8x8xf32, #tpu.memory_space<vmem>>, vector<8x8xf32>
    %cst_111 = arith.constant dense<0.000000e+00> : vector<8x128xf32>
    %128 = tpu.matmul %127, %124, %cst_111 {dimension_numbers = #tpu.dot_dimension_numbers<[1], [0], [0], [1], [0, 0, 1, 1], [], []>} : vector<8x8xf32>, vector<8x128xf32>, vector<8x128xf32> -> vector<8x128xf32>
    %129 = arith.truncf %126 : vector<8x128xf32> to vector<8x128xbf16>
    %c0_112 = arith.constant 0 : index
    %c0_113 = arith.constant 0 : index
    %c0_114 = arith.constant 0 : index
    %130 = vector.load %arg25[%c0_112, %c0_113, %c0_114] : memref<3x128x128xbf16, #tpu.memory_space<vmem>>, vector<1x128x128xbf16>
    %131 = vector.shape_cast %130 : vector<1x128x128xbf16> to vector<128x128xbf16>
    %cst_115 = arith.constant dense<0.000000e+00> : vector<8x128xf32>
    %132 = tpu.matmul %129, %131, %cst_115 {dimension_numbers = #tpu.dot_dimension_numbers<[1], [0], [0], [1], [0, 0, 1, 1], [], []>} : vector<8x128xbf16>, vector<128x128xbf16>, vector<8x128xf32> -> vector<8x128xf32>
    %133 = arith.truncf %124 : vector<8x128xf32> to vector<8x128xbf16>
    %c1_116 = arith.constant 1 : index
    %c0_117 = arith.constant 0 : index
    %c0_118 = arith.constant 0 : index
    %134 = vector.load %arg25[%c1_116, %c0_117, %c0_118] : memref<3x128x128xbf16, #tpu.memory_space<vmem>>, vector<1x128x128xbf16>
    %135 = vector.shape_cast %134 : vector<1x128x128xbf16> to vector<128x128xbf16>
    %cst_119 = arith.constant dense<0.000000e+00> : vector<8x128xf32>
    %136 = tpu.matmul %133, %135, %cst_119 {dimension_numbers = #tpu.dot_dimension_numbers<[1], [0], [0], [1], [0, 0, 1, 1], [], []>} : vector<8x128xbf16>, vector<128x128xbf16>, vector<8x128xf32> -> vector<8x128xf32>
    %137 = arith.addf %132, %136 : vector<8x128xf32>
    %138 = arith.truncf %128 : vector<8x128xf32> to vector<8x128xbf16>
    %c2_120 = arith.constant 2 : index
    %c0_121 = arith.constant 0 : index
    %c0_122 = arith.constant 0 : index
    %139 = vector.load %arg25[%c2_120, %c0_121, %c0_122] : memref<3x128x128xbf16, #tpu.memory_space<vmem>>, vector<1x128x128xbf16>
    %140 = vector.shape_cast %139 : vector<1x128x128xbf16> to vector<128x128xbf16>
    %cst_123 = arith.constant dense<0.000000e+00> : vector<8x128xf32>
    %141 = tpu.matmul %138, %140, %cst_123 {dimension_numbers = #tpu.dot_dimension_numbers<[1], [0], [0], [1], [0, 0, 1, 1], [], []>} : vector<8x128xbf16>, vector<128x128xbf16>, vector<8x128xf32> -> vector<8x128xf32>
    %142 = arith.addf %137, %141 : vector<8x128xf32>
    %c0_124 = arith.constant 0 : index
    %c0_125 = arith.constant 0 : index
    %143 = vector.load %arg26[%c0_124, %c0_125] : memref<1x128xf32, #tpu.memory_space<vmem>>, vector<1x128xf32>
    %144 = vector.broadcast %143 : vector<1x128xf32> to vector<8x128xf32>
    %145 = arith.addf %142, %144 : vector<8x128xf32>
    %cst_126 = arith.constant dense<0.000000e+00> : vector<128xf32>
    %146 = vector.multi_reduction <add>, %145, %cst_126 [0] : vector<8x128xf32> to vector<128xf32>
    %147 = vector.shape_cast %146 : vector<128xf32> to vector<1x128xf32>
    %c0_127 = arith.constant 0 : index
    %c0_128 = arith.constant 0 : index
    %148 = vector.load %arg29[%c0_127, %c0_128] : memref<128x32xf32, #tpu.memory_space<vmem>>, vector<128x32xf32>
    %cst_129 = arith.constant dense<0.000000e+00> : vector<1x32xf32>
    %149 = tpu.matmul %147, %148, %cst_129 {dimension_numbers = #tpu.dot_dimension_numbers<[1], [0], [0], [1], [0, 0, 1, 1], [], []>} : vector<1x128xf32>, vector<128x32xf32>, vector<1x32xf32> -> vector<1x32xf32>
    %cst_130 = arith.constant 3.125000e-02 : f32
    %150 = vector.broadcast %cst_130 : f32 to vector<1x32xf32>
    %151 = arith.mulf %149, %150 : vector<1x32xf32>
    %c0_131 = arith.constant 0 : index
    %c0_132 = arith.constant 0 : index
    %152 = vector.load %arg30[%c0_131, %c0_132] : memref<32x128xf32, #tpu.memory_space<vmem>>, vector<32x128xf32>
    %cst_133 = arith.constant dense<0.000000e+00> : vector<1x128xf32>
    %153 = tpu.matmul %151, %152, %cst_133 {dimension_numbers = #tpu.dot_dimension_numbers<[1], [0], [0], [1], [0, 0, 1, 1], [], []>} : vector<1x32xf32>, vector<32x128xf32>, vector<1x128xf32> -> vector<1x128xf32>
    %154 = vector.broadcast %153 : vector<1x128xf32> to vector<8x128xf32>
    %155 = arith.subf %145, %154 : vector<8x128xf32>
    %156 = arith.mulf %155, %155 : vector<8x128xf32>
    %cst_134 = arith.constant dense<0.000000e+00> : vector<128xf32>
    %157 = vector.multi_reduction <add>, %156, %cst_134 [0] : vector<8x128xf32> to vector<128xf32>
    %158 = vector.shape_cast %157 : vector<128xf32> to vector<1x128xf32>
    %c0_135 = arith.constant 0 : index
    %c0_136 = arith.constant 0 : index
    %159 = vector.load %arg29[%c0_135, %c0_136] : memref<128x32xf32, #tpu.memory_space<vmem>>, vector<128x32xf32>
    %cst_137 = arith.constant dense<0.000000e+00> : vector<1x32xf32>
    %160 = tpu.matmul %158, %159, %cst_137 {dimension_numbers = #tpu.dot_dimension_numbers<[1], [0], [0], [1], [0, 0, 1, 1], [], []>} : vector<1x128xf32>, vector<128x32xf32>, vector<1x32xf32> -> vector<1x32xf32>
    %cst_138 = arith.constant 3.125000e-02 : f32
    %161 = vector.broadcast %cst_138 : f32 to vector<1x32xf32>
    %162 = arith.mulf %160, %161 : vector<1x32xf32>
    %cst_139 = arith.constant 9.99999974E-6 : f32
    %163 = vector.broadcast %cst_139 : f32 to vector<1x32xf32>
    %164 = arith.addf %162, %163 : vector<1x32xf32>
    %165 = math.rsqrt %164 : vector<1x32xf32>
    %c0_140 = arith.constant 0 : index
    %c0_141 = arith.constant 0 : index
    %166 = vector.load %arg30[%c0_140, %c0_141] : memref<32x128xf32, #tpu.memory_space<vmem>>, vector<32x128xf32>
    %cst_142 = arith.constant dense<0.000000e+00> : vector<1x128xf32>
    %167 = tpu.matmul %165, %166, %cst_142 {dimension_numbers = #tpu.dot_dimension_numbers<[1], [0], [0], [1], [0, 0, 1, 1], [], []>} : vector<1x32xf32>, vector<32x128xf32>, vector<1x128xf32> -> vector<1x128xf32>
    %c0_143 = arith.constant 0 : index
    %c0_144 = arith.constant 0 : index
    %168 = vector.load %arg27[%c0_143, %c0_144] : memref<1x128xf32, #tpu.memory_space<vmem>>, vector<1x128xf32>
    %169 = arith.mulf %168, %167 : vector<1x128xf32>
    %170 = vector.broadcast %169 : vector<1x128xf32> to vector<8x128xf32>
    %171 = arith.mulf %155, %170 : vector<8x128xf32>
    %c0_145 = arith.constant 0 : index
    %c0_146 = arith.constant 0 : index
    %172 = vector.load %arg28[%c0_145, %c0_146] : memref<1x128xf32, #tpu.memory_space<vmem>>, vector<1x128xf32>
    %173 = vector.broadcast %172 : vector<1x128xf32> to vector<8x128xf32>
    %174 = arith.addf %171, %173 : vector<8x128xf32>
    %cst_147 = arith.constant 0.000000e+00 : f32
    %175 = vector.broadcast %cst_147 : f32 to vector<8x128xf32>
    %176 = arith.maximumf %174, %175 : vector<8x128xf32>
    %c0_148 = arith.constant 0 : index
    %c0_149 = arith.constant 0 : index
    %177 = vector.load %arg33[%c0_148, %c0_149] : memref<4x8xf32, #tpu.memory_space<vmem>>, vector<4x8xf32>
    %cst_150 = arith.constant dense<0.000000e+00> : vector<4x128xf32>
    %178 = tpu.matmul %177, %176, %cst_150 {dimension_numbers = #tpu.dot_dimension_numbers<[1], [0], [0], [1], [0, 0, 1, 1], [], []>} : vector<4x8xf32>, vector<8x128xf32>, vector<4x128xf32> -> vector<4x128xf32>
    %c0_151 = arith.constant 0 : index
    %c0_152 = arith.constant 0 : index
    %179 = vector.load %arg34[%c0_151, %c0_152] : memref<4x8xf32, #tpu.memory_space<vmem>>, vector<4x8xf32>
    %cst_153 = arith.constant dense<0.000000e+00> : vector<4x128xf32>
    %180 = tpu.matmul %179, %176, %cst_153 {dimension_numbers = #tpu.dot_dimension_numbers<[1], [0], [0], [1], [0, 0, 1, 1], [], []>} : vector<4x8xf32>, vector<8x128xf32>, vector<4x128xf32> -> vector<4x128xf32>
    %181 = arith.maximumf %178, %180 : vector<4x128xf32>
    %c0_154 = arith.constant 0 : index
    %c0_155 = arith.constant 0 : index
    %182 = vector.load %arg35[%c0_154, %c0_155] : memref<128x64xf32, #tpu.memory_space<vmem>>, vector<128x64xf32>
    %cst_156 = arith.constant dense<0.000000e+00> : vector<4x64xf32>
    %183 = tpu.matmul %181, %182, %cst_156 {dimension_numbers = #tpu.dot_dimension_numbers<[1], [0], [0], [1], [0, 0, 1, 1], [], []>} : vector<4x128xf32>, vector<128x64xf32>, vector<4x64xf32> -> vector<4x64xf32>
    %c0_157 = arith.constant 0 : index
    %c0_158 = arith.constant 0 : index
    %184 = vector.load %arg36[%c0_157, %c0_158] : memref<128x64xf32, #tpu.memory_space<vmem>>, vector<128x64xf32>
    %cst_159 = arith.constant dense<0.000000e+00> : vector<4x64xf32>
    %185 = tpu.matmul %181, %184, %cst_159 {dimension_numbers = #tpu.dot_dimension_numbers<[1], [0], [0], [1], [0, 0, 1, 1], [], []>} : vector<4x128xf32>, vector<128x64xf32>, vector<4x64xf32> -> vector<4x64xf32>
    %186 = arith.maximumf %183, %185 : vector<4x64xf32>
    %c0_160 = arith.constant 0 : index
    %c0_161 = arith.constant 0 : index
    %187 = vector.load %arg43[%c0_160, %c0_161] : memref<4x4xf32, #tpu.memory_space<vmem>>, vector<4x4xf32>
    %cst_162 = arith.constant dense<0.000000e+00> : vector<4x64xf32>
    %188 = tpu.matmul %187, %186, %cst_162 {dimension_numbers = #tpu.dot_dimension_numbers<[1], [0], [0], [1], [0, 0, 1, 1], [], []>} : vector<4x4xf32>, vector<4x64xf32>, vector<4x64xf32> -> vector<4x64xf32>
    %c0_163 = arith.constant 0 : index
    %c0_164 = arith.constant 0 : index
    %189 = vector.load %arg44[%c0_163, %c0_164] : memref<4x4xf32, #tpu.memory_space<vmem>>, vector<4x4xf32>
    %cst_165 = arith.constant dense<0.000000e+00> : vector<4x64xf32>
    %190 = tpu.matmul %189, %186, %cst_165 {dimension_numbers = #tpu.dot_dimension_numbers<[1], [0], [0], [1], [0, 0, 1, 1], [], []>} : vector<4x4xf32>, vector<4x64xf32>, vector<4x64xf32> -> vector<4x64xf32>
    %191 = arith.truncf %188 : vector<4x64xf32> to vector<4x64xbf16>
    %c0_166 = arith.constant 0 : index
    %c0_167 = arith.constant 0 : index
    %c0_168 = arith.constant 0 : index
    %192 = vector.load %arg37[%c0_166, %c0_167, %c0_168] : memref<3x64x64xbf16, #tpu.memory_space<vmem>>, vector<1x64x64xbf16>
    %193 = vector.shape_cast %192 : vector<1x64x64xbf16> to vector<64x64xbf16>
    %cst_169 = arith.constant dense<0.000000e+00> : vector<4x64xf32>
    %194 = tpu.matmul %191, %193, %cst_169 {dimension_numbers = #tpu.dot_dimension_numbers<[1], [0], [0], [1], [0, 0, 1, 1], [], []>} : vector<4x64xbf16>, vector<64x64xbf16>, vector<4x64xf32> -> vector<4x64xf32>
    %195 = arith.truncf %186 : vector<4x64xf32> to vector<4x64xbf16>
    %c1_170 = arith.constant 1 : index
    %c0_171 = arith.constant 0 : index
    %c0_172 = arith.constant 0 : index
    %196 = vector.load %arg37[%c1_170, %c0_171, %c0_172] : memref<3x64x64xbf16, #tpu.memory_space<vmem>>, vector<1x64x64xbf16>
    %197 = vector.shape_cast %196 : vector<1x64x64xbf16> to vector<64x64xbf16>
    %cst_173 = arith.constant dense<0.000000e+00> : vector<4x64xf32>
    %198 = tpu.matmul %195, %197, %cst_173 {dimension_numbers = #tpu.dot_dimension_numbers<[1], [0], [0], [1], [0, 0, 1, 1], [], []>} : vector<4x64xbf16>, vector<64x64xbf16>, vector<4x64xf32> -> vector<4x64xf32>
    %199 = arith.addf %194, %198 : vector<4x64xf32>
    %200 = arith.truncf %190 : vector<4x64xf32> to vector<4x64xbf16>
    %c2_174 = arith.constant 2 : index
    %c0_175 = arith.constant 0 : index
    %c0_176 = arith.constant 0 : index
    %201 = vector.load %arg37[%c2_174, %c0_175, %c0_176] : memref<3x64x64xbf16, #tpu.memory_space<vmem>>, vector<1x64x64xbf16>
    %202 = vector.shape_cast %201 : vector<1x64x64xbf16> to vector<64x64xbf16>
    %cst_177 = arith.constant dense<0.000000e+00> : vector<4x64xf32>
    %203 = tpu.matmul %200, %202, %cst_177 {dimension_numbers = #tpu.dot_dimension_numbers<[1], [0], [0], [1], [0, 0, 1, 1], [], []>} : vector<4x64xbf16>, vector<64x64xbf16>, vector<4x64xf32> -> vector<4x64xf32>
    %204 = arith.addf %199, %203 : vector<4x64xf32>
    %c0_178 = arith.constant 0 : index
    %c0_179 = arith.constant 0 : index
    %205 = vector.load %arg38[%c0_178, %c0_179] : memref<1x64xf32, #tpu.memory_space<vmem>>, vector<1x64xf32>
    %206 = vector.broadcast %205 : vector<1x64xf32> to vector<4x64xf32>
    %207 = arith.addf %204, %206 : vector<4x64xf32>
    %cst_180 = arith.constant dense<0.000000e+00> : vector<64xf32>
    %208 = vector.multi_reduction <add>, %207, %cst_180 [0] : vector<4x64xf32> to vector<64xf32>
    %209 = vector.shape_cast %208 : vector<64xf32> to vector<1x64xf32>
    %c0_181 = arith.constant 0 : index
    %c0_182 = arith.constant 0 : index
    %210 = vector.load %arg41[%c0_181, %c0_182] : memref<64x32xf32, #tpu.memory_space<vmem>>, vector<64x32xf32>
    %cst_183 = arith.constant dense<0.000000e+00> : vector<1x32xf32>
    %211 = tpu.matmul %209, %210, %cst_183 {dimension_numbers = #tpu.dot_dimension_numbers<[1], [0], [0], [1], [0, 0, 1, 1], [], []>} : vector<1x64xf32>, vector<64x32xf32>, vector<1x32xf32> -> vector<1x32xf32>
    %cst_184 = arith.constant 1.250000e-01 : f32
    %212 = vector.broadcast %cst_184 : f32 to vector<1x32xf32>
    %213 = arith.mulf %211, %212 : vector<1x32xf32>
    %c0_185 = arith.constant 0 : index
    %c0_186 = arith.constant 0 : index
    %214 = vector.load %arg42[%c0_185, %c0_186] : memref<32x64xf32, #tpu.memory_space<vmem>>, vector<32x64xf32>
    %cst_187 = arith.constant dense<0.000000e+00> : vector<1x64xf32>
    %215 = tpu.matmul %213, %214, %cst_187 {dimension_numbers = #tpu.dot_dimension_numbers<[1], [0], [0], [1], [0, 0, 1, 1], [], []>} : vector<1x32xf32>, vector<32x64xf32>, vector<1x64xf32> -> vector<1x64xf32>
    %216 = vector.broadcast %215 : vector<1x64xf32> to vector<4x64xf32>
    %217 = arith.subf %207, %216 : vector<4x64xf32>
    %218 = arith.mulf %217, %217 : vector<4x64xf32>
    %cst_188 = arith.constant dense<0.000000e+00> : vector<64xf32>
    %219 = vector.multi_reduction <add>, %218, %cst_188 [0] : vector<4x64xf32> to vector<64xf32>
    %220 = vector.shape_cast %219 : vector<64xf32> to vector<1x64xf32>
    %c0_189 = arith.constant 0 : index
    %c0_190 = arith.constant 0 : index
    %221 = vector.load %arg41[%c0_189, %c0_190] : memref<64x32xf32, #tpu.memory_space<vmem>>, vector<64x32xf32>
    %cst_191 = arith.constant dense<0.000000e+00> : vector<1x32xf32>
    %222 = tpu.matmul %220, %221, %cst_191 {dimension_numbers = #tpu.dot_dimension_numbers<[1], [0], [0], [1], [0, 0, 1, 1], [], []>} : vector<1x64xf32>, vector<64x32xf32>, vector<1x32xf32> -> vector<1x32xf32>
    %cst_192 = arith.constant 1.250000e-01 : f32
    %223 = vector.broadcast %cst_192 : f32 to vector<1x32xf32>
    %224 = arith.mulf %222, %223 : vector<1x32xf32>
    %cst_193 = arith.constant 9.99999974E-6 : f32
    %225 = vector.broadcast %cst_193 : f32 to vector<1x32xf32>
    %226 = arith.addf %224, %225 : vector<1x32xf32>
    %227 = math.rsqrt %226 : vector<1x32xf32>
    %c0_194 = arith.constant 0 : index
    %c0_195 = arith.constant 0 : index
    %228 = vector.load %arg42[%c0_194, %c0_195] : memref<32x64xf32, #tpu.memory_space<vmem>>, vector<32x64xf32>
    %cst_196 = arith.constant dense<0.000000e+00> : vector<1x64xf32>
    %229 = tpu.matmul %227, %228, %cst_196 {dimension_numbers = #tpu.dot_dimension_numbers<[1], [0], [0], [1], [0, 0, 1, 1], [], []>} : vector<1x32xf32>, vector<32x64xf32>, vector<1x64xf32> -> vector<1x64xf32>
    %c0_197 = arith.constant 0 : index
    %c0_198 = arith.constant 0 : index
    %230 = vector.load %arg39[%c0_197, %c0_198] : memref<1x64xf32, #tpu.memory_space<vmem>>, vector<1x64xf32>
    %231 = arith.mulf %230, %229 : vector<1x64xf32>
    %232 = vector.broadcast %231 : vector<1x64xf32> to vector<4x64xf32>
    %233 = arith.mulf %217, %232 : vector<4x64xf32>
    %c0_199 = arith.constant 0 : index
    %c0_200 = arith.constant 0 : index
    %234 = vector.load %arg40[%c0_199, %c0_200] : memref<1x64xf32, #tpu.memory_space<vmem>>, vector<1x64xf32>
    %235 = vector.broadcast %234 : vector<1x64xf32> to vector<4x64xf32>
    %236 = arith.addf %233, %235 : vector<4x64xf32>
    %cst_201 = arith.constant 0.000000e+00 : f32
    %237 = vector.broadcast %cst_201 : f32 to vector<4x64xf32>
    %238 = arith.maximumf %236, %237 : vector<4x64xf32>
    %c0_202 = arith.constant 0 : index
    %c0_203 = arith.constant 0 : index
    %239 = vector.load %arg45[%c0_202, %c0_203] : memref<2x4xf32, #tpu.memory_space<vmem>>, vector<2x4xf32>
    %cst_204 = arith.constant dense<0.000000e+00> : vector<2x64xf32>
    %240 = tpu.matmul %239, %238, %cst_204 {dimension_numbers = #tpu.dot_dimension_numbers<[1], [0], [0], [1], [0, 0, 1, 1], [], []>} : vector<2x4xf32>, vector<4x64xf32>, vector<2x64xf32> -> vector<2x64xf32>
    %c0_205 = arith.constant 0 : index
    %c0_206 = arith.constant 0 : index
    %241 = vector.load %arg46[%c0_205, %c0_206] : memref<2x4xf32, #tpu.memory_space<vmem>>, vector<2x4xf32>
    %cst_207 = arith.constant dense<0.000000e+00> : vector<2x64xf32>
    %242 = tpu.matmul %241, %238, %cst_207 {dimension_numbers = #tpu.dot_dimension_numbers<[1], [0], [0], [1], [0, 0, 1, 1], [], []>} : vector<2x4xf32>, vector<4x64xf32>, vector<2x64xf32> -> vector<2x64xf32>
    %243 = arith.maximumf %240, %242 : vector<2x64xf32>
    %c0_208 = arith.constant 0 : index
    %c0_209 = arith.constant 0 : index
    %244 = vector.load %arg47[%c0_208, %c0_209] : memref<64x32xf32, #tpu.memory_space<vmem>>, vector<64x32xf32>
    %cst_210 = arith.constant dense<0.000000e+00> : vector<2x32xf32>
    %245 = tpu.matmul %243, %244, %cst_210 {dimension_numbers = #tpu.dot_dimension_numbers<[1], [0], [0], [1], [0, 0, 1, 1], [], []>} : vector<2x64xf32>, vector<64x32xf32>, vector<2x32xf32> -> vector<2x32xf32>
    %c0_211 = arith.constant 0 : index
    %c0_212 = arith.constant 0 : index
    %246 = vector.load %arg48[%c0_211, %c0_212] : memref<64x32xf32, #tpu.memory_space<vmem>>, vector<64x32xf32>
    %cst_213 = arith.constant dense<0.000000e+00> : vector<2x32xf32>
    %247 = tpu.matmul %243, %246, %cst_213 {dimension_numbers = #tpu.dot_dimension_numbers<[1], [0], [0], [1], [0, 0, 1, 1], [], []>} : vector<2x64xf32>, vector<64x32xf32>, vector<2x32xf32> -> vector<2x32xf32>
    %248 = arith.maximumf %245, %247 : vector<2x32xf32>
    %c0_214 = arith.constant 0 : index
    %c0_215 = arith.constant 0 : index
    %249 = vector.load %arg49[%c0_214, %c0_215] : memref<32x5xf32, #tpu.memory_space<vmem>>, vector<32x5xf32>
    %cst_216 = arith.constant dense<0.000000e+00> : vector<2x5xf32>
    %250 = tpu.matmul %248, %249, %cst_216 {dimension_numbers = #tpu.dot_dimension_numbers<[1], [0], [0], [1], [0, 0, 1, 1], [], []>} : vector<2x32xf32>, vector<32x5xf32>, vector<2x5xf32> -> vector<2x5xf32>
    %c0_217 = arith.constant 0 : index
    %c0_218 = arith.constant 0 : index
    %251 = vector.load %arg50[%c0_217, %c0_218] : memref<1x5xf32, #tpu.memory_space<vmem>>, vector<1x5xf32>
    %252 = vector.broadcast %251 : vector<1x5xf32> to vector<2x5xf32>
    %253 = arith.addf %250, %252 : vector<2x5xf32>
    %c0_219 = arith.constant 0 : index
    %c0_220 = arith.constant 0 : index
    %254 = vector.load %arg51[%c0_219, %c0_220] : memref<2x5xf32, #tpu.memory_space<vmem>>, vector<2x5xf32>
    tpu.vector_store %arg51[%c0_219, %c0_220], %253 {strides = array<i32>} : memref<2x5xf32, #tpu.memory_space<vmem>>, vector<2x5xf32>,
    return
  }
}

</mosaic_0001>

<bundles_post_ra>
// kernel: cnn_encoder_forward.1
= control target key start
LH: loop header
LB: loop body
LE: loop exit
PB: predicated region body
PF: predicated region fallthrough
CT: control target
= control target key end

     0   :  { %s9606_s6 = smov 1   ;;  %s9607_s10 = smov 2   ;;  %s11630_s0 = inlined_call_operand.smem [shape: u32[52], index: -1, kind: input, shape index: {}] }
   0x1   :  { %s9711_s5 = sld [smem:[%s11630_s0]]   ;;  %s9608_s14 = smov 3  }
   0x2   :  { %s9716_s9 = sld [smem:[%s11630_s0 + %s9606_s6]]   ;;  %s9609_s18 = smov 4  }
   0x3   :  { %s9721_s13 = sld [smem:[%s11630_s0 + %s9607_s10]]   ;;  %s9610_s22 = smov 5  }
   0x4   :  { %s9726_s17 = sld [smem:[%s11630_s0 + %s9608_s14]]   ;;  %s9611_s26 = smov 6  }
   0x5   :  { %s9731_s21 = sld [smem:[%s11630_s0 + %s9609_s18]]   ;;  %s9612_s30 = smov 7  }
   0x6   :  { %s9736_s25 = sld [smem:[%s11630_s0 + %s9610_s22]]   ;;  %s9613_s4 = smov 8  }
   0x7   :  { %11709 = sst [smem:[#allocation72_spill]] %s9711_s5  ;;  %s9614_s10 = smov 9  }
   0x8   :  { %11710 = sst [smem:[#allocation73_spill]] %s9716_s9  ;;  %s9615_s15 = smov 10  }
   0x9   :  { %s9741_s29 = sld [smem:[%s11630_s0 + %s9611_s26]]   ;;  %s9616_s20 = smov 11  }
   0xa   :  { %11711 = sst [smem:[#allocation74_spill]] %s9726_s17  ;;  %s9617_s26 = smov 12  }
   0xb   :  { %s9746_s3 = sld [smem:[%s11630_s0 + %s9612_s30]]   ;;  %s9618_s1 = smov 13  }
   0xc   :  { %11712 = sst [smem:[#allocation75_spill]] %s9736_s25  ;;  %s9619_s7 = smov 14  }
   0xd   :  { %s9751_s8 = sld [smem:[%s11630_s0 + %s9613_s4]]   ;;  %s9621_s22 = smov 16  }
   0xe   :  { %s9756_s14 = sld [smem:[%s11630_s0 + %s9614_s10]]   ;;  %s9622_s28 = smov 17  }
   0xf   :  { %11713 = sst [smem:[#allocation76_spill]] %s9741_s29 }
  0x10   :  { %s9761_s19 = sld [smem:[%s11630_s0 + %s9615_s15]]   ;;  %s9620_s15 = smov 15  }
  0x11   :  { %s9766_s24 = sld [smem:[%s11630_s0 + %s9616_s20]]  }
  0x12   :  { %s9771_s30 = sld [smem:[%s11630_s0 + %s9617_s26]]  }
  0x13   :  { %11714 = sst [smem:[#allocation77_spill]] %s9751_s8 }
  0x14   :  { %s9776_s6 = sld [smem:[%s11630_s0 + %s9618_s1]]  }
  0x15   :  { %s9781_s12 = sld [smem:[%s11630_s0 + %s9619_s7]]   ;;  %s9623_s7 = smov 18  }
  0x16   :  { %11715 = sst [smem:[#allocation78_spill]] %s9761_s19 }
  0x17   :  { %11716 = sst [smem:[#allocation79_spill]] %s9766_s24 }
  0x18   :  { %11717 = sst [smem:[#allocation80_spill]] %s9771_s30 }
  0x19   :  { %s9786_s20 = sld [smem:[%s11630_s0 + %s9620_s15]]   ;;  %s9624_s15 = smov 19  }
  0x1a   :  { %s9791_s27 = sld [smem:[%s11630_s0 + %s9621_s22]]   ;;  %s9625_s22 = smov 20  }
  0x1b   :  { %11718 = sst [smem:[#allocation81_spill]] %s9781_s12 }
  0x1c   :  { %s9796_s4 = sld [smem:[%s11630_s0 + %s9622_s28]]   ;;  %s9626_s28 = smov 21  }
  0x1d   :  { %s9801_s30 = sld [smem:[%s11630_s0 + %s9623_s7]]   ;;  %s9627_s7 = smov 22  }
  0x1e   :  { %s9806_s24 = sld [smem:[%s11630_s0 + %s9624_s15]]   ;;  %s9628_s15 = smov 23  }
  0x1f   :  { %s9811_s25 = sld [smem:[%s11630_s0 + %s9625_s22]]   ;;  %s9629_s22 = smov 24  }
  0x20   :  { %11719 = sst [smem:[#allocation82_spill]] %s9791_s27 }
  0x21   :  { %s9821_s5 = sld [smem:[%s11630_s0 + %s9627_s7]]   ;;  %s9631_s7 = smov 26  }
  0x22   :  { %11720 = sst [smem:[#allocation83_spill]] %s9796_s4 }
  0x23   :  { %s9816_s4 = sld [smem:[%s11630_s0 + %s9626_s28]]   ;;  %s9630_s28 = smov 25  }
  0x24   :  { %11721 = sst [smem:[#allocation84_spill]] %s9806_s24 }
  0x25   :  { %s9826_s24 = sld [smem:[%s11630_s0 + %s9628_s15]]   ;;  %s9632_s15 = smov 27  }
  0x26   :  { %s9831_s27 = sld [smem:[%s11630_s0 + %s9629_s22]]   ;;  %s9633_s22 = smov 28  }
  0x27   :  { %11723 = sst [smem:[#allocation86_spill]] %s9821_s5 }
  0x28   :  { %s9841_s5 = sld [smem:[%s11630_s0 + %s9631_s7]]   ;;  %s9635_s7 = smov 30  }
  0x29   :  { %11722 = sst [smem:[#allocation85_spill]] %s9816_s4 }
  0x2a   :  { %s9836_s4 = sld [smem:[%s11630_s0 + %s9630_s28]]   ;;  %s9634_s28 = smov 29  }
  0x2b   :  { %11724 = sst [smem:[#allocation87_spill]] %s9826_s24 }
  0x2c   :  { %s9846_s24 = sld [smem:[%s11630_s0 + %s9632_s15]]   ;;  %s9636_s15 = smov 31  }
  0x2d   :  { %s9851_s12 = sld [smem:[%s11630_s0 + %s9633_s22]]   ;;  %s9637_s22 = smov 32  }
  0x2e   :  { %s9861_s19 = sld [smem:[%s11630_s0 + %s9635_s7]]   ;;  %s9639_s7 = smov 34  }
  0x2f   :  { %s9871_s8 = sld [smem:[%s11630_s0 + %s9637_s22]]   ;;  %s9641_s22 = smov 36  }
  0x30   :  { %11725 = sst [smem:[#allocation88_spill]] %s9836_s4 }
  0x31   :  { %s9856_s4 = sld [smem:[%s11630_s0 + %s9634_s28]]   ;;  %s9638_s28 = smov 33  }
  0x32   :  { %11726 = sst [smem:[#allocation89_spill]] %s9846_s24 }
  0x33   :  { %s9866_s24 = sld [smem:[%s11630_s0 + %s9636_s15]]   ;;  %s9640_s15 = smov 35  }
  0x34   :  { %11728 = sst [smem:[#allocation91_spill]] %s9861_s19 }
  0x35   :  { %11729 = sst [smem:[#allocation92_spill]] %s9871_s8 }
  0x36   :  { %s9881_s19 = sld [smem:[%s11630_s0 + %s9639_s7]]   ;;  %s9643_s7 = smov 38  }
  0x37   :  { %11727 = sst [smem:[#allocation90_spill]] %s9856_s4 }
  0x38   :  { %s9876_s4 = sld [smem:[%s11630_s0 + %s9638_s28]]   ;;  %s9642_s28 = smov 37  }
  0x39   :  { %s9886_s29 = sld [smem:[%s11630_s0 + %s9640_s15]]   ;;  %s9644_s15 = smov 39  }
  0x3a   :  { %s9891_s8 = sld [smem:[%s11630_s0 + %s9641_s22]]   ;;  %s9645_s22 = smov 40  }
  0x3b   :  { %s9896_s17 = sld [smem:[%s11630_s0 + %s9642_s28]]   ;;  %s9646_s28 = smov 41  }
  0x3c   :  { %11730 = sst [smem:[#allocation93_spill]] %s9881_s19 }
  0x3d   :  { %s9901_s19 = sld [smem:[%s11630_s0 + %s9643_s7]]   ;;  %s9647_s7 = smov 42  }
  0x3e   :  { %s9916_s9 = sld [smem:[%s11630_s0 + %s9646_s28]]   ;;  %s9650_s28 = smov 45  }
  0x3f   :  { %11731 = sst [smem:[#allocation94_spill]] %s9886_s29 }
  0x40   :  { %11732 = sst [smem:[#allocation95_spill]] %s9891_s8 }
  0x41   :  { %s9906_s29 = sld [smem:[%s11630_s0 + %s9644_s15]]   ;;  %s9648_s15 = smov 43  }
  0x42   :  { %s9911_s8 = sld [smem:[%s11630_s0 + %s9645_s22]]   ;;  %s9649_s22 = smov 44  }
  0x43   :  { %11733 = sst [smem:[#allocation96_spill]] %s9901_s19 }
  0x44   :  { %11736 = sst [smem:[#allocation99_spill]] %s9916_s9 }
  0x45   :  { %s9921_s19 = sld [smem:[%s11630_s0 + %s9647_s7]]   ;;  %s9651_s7 = smov 46  }
  0x46   :  { %s9936_s9 = sld [smem:[%s11630_s0 + %s9650_s28]]   ;;  %s9654_s28 = smov 49  }
  0x47   :  { %11734 = sst [smem:[#allocation97_spill]] %s9906_s29 }
  0x48   :  { %11735 = sst [smem:[#allocation98_spill]] %s9911_s8 }
  0x49   :  { %s9926_s29 = sld [smem:[%s11630_s0 + %s9648_s15]]   ;;  %s9652_s15 = smov 47  }
  0x4a   :  { %s9931_s8 = sld [smem:[%s11630_s0 + %s9649_s22]]   ;;  %s9653_s22 = smov 48  }
  0x4b   :  { %11737 = sst [smem:[#allocation100_spill]] %s9921_s19 }
  0x4c   :  { %11740 = sst [smem:[#allocation103_spill]] %s9936_s9 }
  0x4d   :  { %s9941_s19 = sld [smem:[%s11630_s0 + %s9651_s7]]   ;;  %s9655_s7 = smov 50  }
  0x4e   :  { %s9956_s9 = sld [smem:[%s11630_s0 + %s9654_s28]]  }
  0x4f   :  { %11738 = sst [smem:[#allocation101_spill]] %s9926_s29 }
  0x50   :  { %11739 = sst [smem:[#allocation102_spill]] %s9931_s8 }
  0x51   :  { %s9946_s29 = sld [smem:[%s11630_s0 + %s9652_s15]]   ;;  %s9656_s15 = smov 51  }
  0x52   :  { %s9951_s8 = sld [smem:[%s11630_s0 + %s9653_s22]]  }
  0x53   :  { %11741 = sst [smem:[#allocation104_spill]] %s9941_s19 }
  0x54   :  { %s9961_s19 = sld [smem:[%s11630_s0 + %s9655_s7]]  }
  0x57   :  { %11742 = sst [smem:[#allocation105_spill]] %s9946_s29 }
  0x58   :  { %s9966_s29 = sld [smem:[%s11630_s0 + %s9656_s15]]  }
  0x59   :  { %108 = vsyncpa [#allocation3], 0 }
  0x5a   :  { %109 = vsyncpa [#allocation6], 0 }
  0x5b   :  { %110 = vsyncpa [#allocation9], 0 }
  0x5c   :  { %111 = vsyncpa [#allocation12], 0 }
  0x5d   :  { %112 = vsyncpa [#allocation15], 0 }
  0x5e   :  { %113 = vsyncpa [#allocation18], 0 }
  0x5f   :  { %114 = vsyncpa [#allocation21], 0 }
  0x60   :  { %115 = vsyncpa [#allocation24], 0 }
  0x61   :  { %116 = vsyncpa [#allocation27], 0 }
  0x62   :  { %117 = vsyncpa [#allocation30], 0 }
  0x63   :  { %118 = vsyncpa [#allocation33], 0 }
  0x64   :  { %119 = vsyncpa [#allocation36], 0 }
  0x65   :  { %120 = vsyncpa [#allocation39], 0 }
  0x66   :  { %121 = vsyncpa [#allocation42], 0 }
  0x67   :  { %122 = vsyncpa [#allocation45], 0 }
  0x68   :  { %123 = vsyncpa [#allocation48], 0 }
  0x69   :  { %124 = vsyncpa [#allocation51], 0 }
  0x6a   :  { %125 = vsyncpa [#allocation4], 0  ;;  %s9657_s0 = smov [#allocation5]   ;;  %s9658_s23 = smov [#allocation8]  }
  0x6b   :  { %s146_s22 = sshll.u32 %s9657_s0, 4  ;;  %s166_s26 = sshll.u32 %s9658_s23, 4  ;;  %s147_s22 = int_to_ptr.vmem [resolvable:$true] %s146_s22  ;;  %s167_s26 = int_to_ptr.vmem [resolvable:$true] %s166_s26 }
  0x6c   :  { %s8898_s28 = scalar_lea.vmem %s147_s22, 64  ;;  %p8903_p1 = scmp.lt.s32.totalorder %s147_s22, %s147_s22 }
  0x6d   :  { %p8899_p0 = scmp.ne.s32.totalorder %s147_s22, %s8898_s28  ;;  %p8904_p2 = scmp.lt.s32.totalorder %s8898_s28, %s8898_s28 }
  0x6f   :  { %p8905_p3 = por %p8904_p2, %p8903_p1 }
  0x71   :  { %p8906_p4 = pnand %p8905_p3, %p8899_p0 }
  0x73   :  { %8909 = shalt.err (!%p8906_p4)
}
  0x74   :  { %149 = dma.hbm_to_vmem [thread:$0]  %s9721_s13, 64, %s147_s22, [#allocation6]  }
  0x75   :  { %s8918_s1 = scalar_lea.vmem %s167_s26, 64  ;;  %p8923_p6 = scmp.lt.s32.totalorder %s167_s26, %s167_s26 }
  0x76   :  { %p8919_p5 = scmp.ne.s32.totalorder %s167_s26, %s8918_s1  ;;  %p8924_p7 = scmp.lt.s32.totalorder %s8918_s1, %s8918_s1 }
  0x78   :  { %p8925_p8 = por %p8924_p7, %p8923_p6 }
  0x7a   :  { %p8926_p9 = pnand %p8925_p8, %p8919_p5 }
  0x7c   :  { %8929 = shalt.err (!%p8926_p9)
}
  0x7d   :  { %169 = dma.hbm_to_vmem [thread:$0]  %s9731_s21, 64, %s167_s26, [#allocation9]  }
  0x7e   :  { %s9659_s2 = smov [#allocation11]  }
  0x7f   :  { %s189_s7 = sshll.u32 %s9659_s2, 4  ;;  %s190_s7 = int_to_ptr.vmem [resolvable:$true] %s189_s7 }
  0x80   :  { %s8938_s10 = scalar_lea.vmem %s190_s7, 512  ;;  %p8943_p11 = scmp.lt.s32.totalorder %s190_s7, %s190_s7 }
  0x81   :  { %p8939_p10 = scmp.ne.s32.totalorder %s190_s7, %s8938_s10  ;;  %p8944_p12 = scmp.lt.s32.totalorder %s8938_s10, %s8938_s10 }
  0x83   :  { %p8945_p13 = por %p8944_p12, %p8943_p11 }
  0x85   :  { %p8946_p0 = pnand %p8945_p13, %p8939_p10 }
  0x87   :  { %8949 = shalt.err (!%p8946_p0)
}
  0x88   :  { %s9660_s13 = smov 128   ;;  %s9661_s11 = smov 8  }
  0x89   :  { %195 = dma.hbm_to_vmem [thread:$0]  %s9746_s3, 512, %s190_s7, [#allocation12], %s9660_s13, %s9660_s13, %s9661_s11  }
  0x8a   :  { %s9662_s15 = smov [#allocation14]   ;;  %s9663_s21 = smov [#allocation17]  }
  0x8b   :  { %s213_s16 = sshll.u32 %s9662_s15, 4  ;;  %s241_s18 = sshll.u32 %s9663_s21, 4  ;;  %s214_s16 = int_to_ptr.vmem [resolvable:$true] %s213_s16  ;;  %s242_s18 = int_to_ptr.vmem [resolvable:$true] %s241_s18 }
  0x8c   :  { %s8958_s0 = scalar_lea.vmem %s214_s16, 256  ;;  %p8963_p2 = scmp.lt.s32.totalorder %s214_s16, %s214_s16 }
  0x8d   :  { %p8959_p1 = scmp.ne.s32.totalorder %s214_s16, %s8958_s0  ;;  %p8964_p3 = scmp.lt.s32.totalorder %s8958_s0, %s8958_s0 }
  0x8f   :  { %p8965_p4 = por %p8964_p3, %p8963_p2 }
  0x91   :  { %p8966_p5 = pnand %p8965_p4, %p8959_p1 }
  0x93   :  { %8969 = shalt.err (!%p8966_p5)
}
  0x94   :  { %219 = dma.hbm_to_vmem [thread:$0]  %s9756_s14, 256, %s214_s16, [#allocation15], %s9660_s13, %s9660_s13, %s9661_s11  }
  0x95   :  { %s8978_s22 = scalar_lea.vmem %s242_s18, 12288  ;;  %p8983_p7 = scmp.lt.s32.totalorder %s242_s18, %s242_s18 }
  0x96   :  { %p8979_p6 = scmp.ne.s32.totalorder %s242_s18, %s8978_s22  ;;  %p8984_p8 = scmp.lt.s32.totalorder %s8978_s22, %s8978_s22 }
  0x98   :  { %p8985_p9 = por %p8984_p8, %p8983_p7 }
  0x9a   :  { %p8986_p10 = pnand %p8985_p9, %p8979_p6 }
  0x9c   :  { %8989 = shalt.err (!%p8986_p10)
}
  0x9d   :  { %247 = dma.hbm_to_vmem [thread:$0]  %s9776_s6, 12288, %s242_s18, [#allocation18], %s9660_s13, %s9660_s13, %s9661_s11  }
  0x9e   :  { %s9664_s3 = smov [#allocation20]  }
  0x9f   :  { %s264_s23 = sshll.u32 %s9664_s3, 4  ;;  %s265_s23 = int_to_ptr.vmem [resolvable:$true] %s264_s23 }
  0xa0   :  { %s8998_s26 = scalar_lea.vmem %s265_s23, 32  ;;  %p9003_p12 = scmp.lt.s32.totalorder %s265_s23, %s265_s23 }
  0xa1   :  { %p8999_p11 = scmp.ne.s32.totalorder %s265_s23, %s8998_s26  ;;  %p9004_p13 = scmp.lt.s32.totalorder %s8998_s26, %s8998_s26 }
  0xa3   :  { %p9005_p0 = por %p9004_p13, %p9003_p12 }
  0xa5   :  { %p9006_p1 = pnand %p9005_p0, %p8999_p11 }
  0xa7   :  { %9009 = shalt.err (!%p9006_p1)
}
  0xa8   :  { %267 = dma.hbm_to_vmem [thread:$0]  %s9786_s20, 32, %s265_s23, [#allocation21]  }
  0xa9   :  { %s9665_s14 = smov [#allocation23]   ;;  %s9666_s1 = smov [#allocation26]  }
  0xaa   :  { %s285_s28 = sshll.u32 %s9665_s14, 4  ;;  %s309_s2 = sshll.u32 %s9666_s1, 4  ;;  %s286_s28 = int_to_ptr.vmem [resolvable:$true] %s285_s28  ;;  %s310_s2 = int_to_ptr.vmem [resolvable:$true] %s309_s2 }
  0xab   :  { %s9018_s7 = scalar_lea.vmem %s286_s28, 1024  ;;  %p9023_p3 = scmp.lt.s32.totalorder %s286_s28, %s286_s28 }
  0xac   :  { %p9019_p2 = scmp.ne.s32.totalorder %s286_s28, %s9018_s7  ;;  %p9024_p4 = scmp.lt.s32.totalorder %s9018_s7, %s9018_s7 }
  0xae   :  { %p9025_p5 = por %p9024_p4, %p9023_p3 }
  0xb0   :  { %p9026_p6 = pnand %p9025_p5, %p9019_p2 }
  0xb2   :  { %9029 = shalt.err (!%p9026_p6)
}
  0xb3   :  { %s9667_s6 = smov 256   ;;  %s9668_s10 = smov 16  }
  0xb4   :  { %291 = dma.hbm_to_vmem [thread:$0]  %s9801_s30, 1024, %s286_s28, [#allocation24], %s9667_s6, %s9667_s6, %s9668_s10  }
  0xb5   :  { %s9038_s20 = scalar_lea.vmem %s310_s2, 256  ;;  %p9043_p8 = scmp.lt.s32.totalorder %s310_s2, %s310_s2 }
  0xb6   :  { %p9039_p7 = scmp.ne.s32.totalorder %s310_s2, %s9038_s20  ;;  %p9044_p9 = scmp.lt.s32.totalorder %s9038_s20, %s9038_s20 }
  0xb8   :  { %p9045_p10 = por %p9044_p9, %p9043_p8 }
  0xba   :  { %p9046_p11 = pnand %p9045_p10, %p9039_p7 }
  0xbc   :  { %9049 = shalt.err (!%p9046_p11)
}
  0xbd   :  { %315 = dma.hbm_to_vmem [thread:$0]  %s9811_s25, 256, %s310_s2, [#allocation27], %s9660_s13, %s9660_s13, %s9661_s11  }
  0xbe   :  { %s9669_s15 = smov [#allocation29]   ;;  %s9670_s21 = smov [#allocation32]  }
  0xbf   :  { %s335_s16 = sshll.u32 %s9669_s15, 4  ;;  %s360_s18 = sshll.u32 %s9670_s21, 4  ;;  %s336_s16 = int_to_ptr.vmem [resolvable:$true] %s335_s16  ;;  %s361_s18 = int_to_ptr.vmem [resolvable:$true] %s360_s18 }
  0xc0   :  { %s9058_s0 = scalar_lea.vmem %s336_s16, 4096  ;;  %p9063_p13 = scmp.lt.s32.totalorder %s336_s16, %s336_s16 }
  0xc1   :  { %p9059_p12 = scmp.ne.s32.totalorder %s336_s16, %s9058_s0  ;;  %p9064_p0 = scmp.lt.s32.totalorder %s9058_s0, %s9058_s0 }
  0xc3   :  { %p9065_p1 = por %p9064_p0, %p9063_p13 }
  0xc5   :  { %p9066_p2 = pnand %p9065_p1, %p9059_p12 }
  0xc7   :  { %9069 = shalt.err (!%p9066_p2)
}
  0xc8   :  { %341 = dma.hbm_to_vmem [thread:$0]  %s9831_s27, 4096, %s336_s16, [#allocation30], %s9660_s13, %s9660_s13, %s9661_s11  }
  0xc9   :  { %s9078_s30 = scalar_lea.vmem %s361_s18, 16  ;;  %s9082_s25 = scalar_lea.vmem %s361_s18, 32 }
  0xca   :  { %p9079_p3 = scmp.ne.s32.totalorder %s361_s18, %s9078_s30  ;;  %p9083_p4 = scmp.lt.s32.totalorder %s361_s18, %s361_s18 }
  0xcb   :  { %p9084_p5 = scmp.lt.s32.totalorder %s9082_s25, %s9078_s30 }
  0xcd   :  { %p9085_p6 = por %p9084_p5, %p9083_p4 }
  0xcf   :  { %p9086_p7 = pnand %p9085_p6, %p9079_p3 }
  0xd1   :  { %9089 = shalt.err (!%p9086_p7)
}
  0xd2   :  { %363 = dma.hbm_to_vmem [thread:$0]  %s9841_s5, 16, %s361_s18, [#allocation33]  }
  0xd3   :  { %s9671_s22 = smov [#allocation35]   ;;  %s9672_s23 = smov [#allocation38]  }
  0xd4   :  { %s380_s3 = sshll.u32 %s9671_s22, 4  ;;  %s404_s26 = sshll.u32 %s9672_s23, 4  ;;  %s381_s3 = int_to_ptr.vmem [resolvable:$true] %s380_s3  ;;  %s405_s26 = int_to_ptr.vmem [resolvable:$true] %s404_s26 }
  0xd5   :  { %s9098_s14 = scalar_lea.vmem %s381_s3, 16  ;;  %s9102_s28 = scalar_lea.vmem %s381_s3, 32 }
  0xd6   :  { %p9099_p8 = scmp.ne.s32.totalorder %s381_s3, %s9098_s14  ;;  %p9103_p9 = scmp.lt.s32.totalorder %s381_s3, %s381_s3 }
  0xd7   :  { %p9104_p10 = scmp.lt.s32.totalorder %s9102_s28, %s9098_s14 }
  0xd9   :  { %p9105_p11 = por %p9104_p10, %p9103_p9 }
  0xdb   :  { %p9106_p12 = pnand %p9105_p11, %p9099_p8 }
  0xdd   :  { %9109 = shalt.err (!%p9106_p12)
}
  0xde   :  { %383 = dma.hbm_to_vmem [thread:$0]  %s9851_s12, 16, %s381_s3, [#allocation36]  }
  0xdf   :  { %s9118_s27 = scalar_lea.vmem %s405_s26, 128  ;;  %p9123_p0 = scmp.lt.s32.totalorder %s405_s26, %s405_s26 }
  0xe0   :  { %p9119_p13 = scmp.ne.s32.totalorder %s405_s26, %s9118_s27  ;;  %p9124_p1 = scmp.lt.s32.totalorder %s9118_s27, %s9118_s27 }
  0xe2   :  { %p9125_p2 = por %p9124_p1, %p9123_p0 }
  0xe4   :  { %p9126_p3 = pnand %p9125_p2, %p9119_p13 }
  0xe6   :  { %9129 = shalt.err (!%p9126_p3)
}
  0xe7   :  { %407 = dma.hbm_to_vmem [thread:$0]  %s9866_s24, 128, %s405_s26, [#allocation39]  }
  0xe8   :  { %s9673_s5 = smov [#allocation41]  }
  0xe9   :  { %s424_s1 = sshll.u32 %s9673_s5, 4  ;;  %s425_s1 = int_to_ptr.vmem [resolvable:$true] %s424_s1 }
  0xea   :  { %s9138_s2 = scalar_lea.vmem %s425_s1, 64  ;;  %p9143_p5 = scmp.lt.s32.totalorder %s425_s1, %s425_s1 }
  0xeb   :  { %p9139_p4 = scmp.ne.s32.totalorder %s425_s1, %s9138_s2  ;;  %p9144_p6 = scmp.lt.s32.totalorder %s9138_s2, %s9138_s2 }
  0xed   :  { %p9145_p7 = por %p9144_p6, %p9143_p5 }
  0xef   :  { %p9146_p8 = pnand %p9145_p7, %p9139_p4 }
  0xf1   :  { %9149 = shalt.err (!%p9146_p8)
}
  0xf2   :  { %427 = dma.hbm_to_vmem [thread:$0]  %s9876_s4, 64, %s425_s1, [#allocation42]  }
  0xf3   :  { %s9674_s12 = smov [#allocation44]   ;;  %s9675_s20 = smov [#allocation47]  }
  0xf4   :  { %s447_s7 = sshll.u32 %s9674_s12, 4  ;;  %s470_s15 = sshll.u32 %s9675_s20, 4  ;;  %s448_s7 = int_to_ptr.vmem [resolvable:$true] %s447_s7  ;;  %s471_s15 = int_to_ptr.vmem [resolvable:$true] %s470_s15 }
  0xf5   :  { %s9158_s16 = scalar_lea.vmem %s448_s7, 1536  ;;  %p9163_p10 = scmp.lt.s32.totalorder %s448_s7, %s448_s7 }
  0xf6   :  { %p9159_p9 = scmp.ne.s32.totalorder %s448_s7, %s9158_s16  ;;  %p9164_p11 = scmp.lt.s32.totalorder %s9158_s16, %s9158_s16 }
  0xf8   :  { %p9165_p12 = por %p9164_p11, %p9163_p10 }
  0xfa   :  { %p9166_p13 = pnand %p9165_p12, %p9159_p9 }
  0xfc   :  { %9169 = shalt.err (!%p9166_p13)
}
  0xfd   :  { %s9676_s24 = smov 64   ;;  %s9677_s21 = smov 4  }
  0xfe   :  { %453 = dma.hbm_to_vmem [thread:$0]  %s9896_s17, 1536, %s448_s7, [#allocation45], %s9676_s24, %s9676_s24, %s9677_s21  }
  0xff   :  { %s9178_s4 = scalar_lea.vmem %s471_s15, 16  ;;  %s9182_s18 = scalar_lea.vmem %s471_s15, 32 }
 0x100   :  { %p9179_p0 = scmp.ne.s32.totalorder %s471_s15, %s9178_s4  ;;  %p9183_p1 = scmp.lt.s32.totalorder %s471_s15, %s471_s15 }
 0x101   :  { %p9184_p2 = scmp.lt.s32.totalorder %s9182_s18, %s9178_s4 }
 0x103   :  { %p9185_p3 = por %p9184_p2, %p9183_p1 }
 0x105   :  { %p9186_p4 = pnand %p9185_p3, %p9179_p0 }
 0x107   :  { %9189 = shalt.err (!%p9186_p4)
}
 0x108   :  { %s11743_s0 = sld [smem:[#allocation97_spill]]  ;;  %s9678_s30 = smov [#allocation50]  }
 0x109   :  { %s491_s25 = sshll.u32 %s9678_s30, 4  ;;  %s9679_s22 = smov [#allocation2]   ;;  %s492_s25 = int_to_ptr.vmem [resolvable:$true] %s491_s25 }
 0x10a   :  { %s133_s3 = sshll.u32 %s9679_s22, 4  ;;  %s9198_s23 = scalar_lea.vmem %s492_s25, 512  ;;  %s134_s3 = int_to_ptr.vmem [resolvable:$true] %s133_s3 }
 0x10b   :  { %p9199_p5 = scmp.ne.s32.totalorder %s492_s25, %s9198_s23  ;;  %p9203_p6 = scmp.lt.s32.totalorder %s492_s25, %s492_s25 }
 0x10c   :  { %p9204_p7 = scmp.lt.s32.totalorder %s9198_s23, %s9198_s23 }
 0x10e   :  { %473 = dma.hbm_to_vmem [thread:$0]  %s11743_s0, 16, %s471_s15, [#allocation48]  }
 0x10f   :  { %p9205_p8 = por %p9204_p7, %p9203_p6 }
 0x111   :  { %p9206_p9 = pnand %p9205_p8, %p9199_p5 }
 0x113   :  { %9209 = shalt.err (!%p9206_p9)
}
 0x114   :  { %s11744_s17 = sld [smem:[#allocation100_spill]]  ;;  %s9218_s26 = scalar_lea.vmem %s134_s3, 6144 }
 0x115   :  { %p9219_p10 = scmp.ne.s32.totalorder %s134_s3, %s9218_s26  ;;  %p9223_p11 = scmp.lt.s32.totalorder %s134_s3, %s134_s3 }
 0x116   :  { %p9224_p12 = scmp.lt.s32.totalorder %s9218_s26, %s9218_s26 }
 0x118   :  { %p9225_p13 = por %p9224_p12, %p9223_p11 }
 0x11a   :  { %497 = dma.hbm_to_vmem [thread:$0]  %s11744_s17, 512, %s492_s25, [#allocation51], %s9660_s13, %s9660_s13, %s9661_s11  }
 0x11b   :  { %p9226_p0 = pnand %p9225_p13, %p9219_p10 }
 0x11d   :  { %9229 = shalt.err (!%p9226_p0)
}
 0x11e   :  { %s11745_s14 = sld [smem:[#allocation73_spill]]  ;;  %s9680_s28 = smov [#allocation7]  }
 0x11f   :  { %s156_s27 = sshll.u32 %s9680_s28, 4  ;;  %s9681_s5 = smov [#allocation10]   ;;  %s157_s27 = int_to_ptr.vmem [resolvable:$true] %s156_s27 }
 0x120   :  { %s177_s1 = sshll.u32 %s9681_s5, 4  ;;  %s9238_s2 = scalar_lea.vmem %s157_s27, 64  ;;  %s178_s1 = int_to_ptr.vmem [resolvable:$true] %s177_s1 }
 0x121   :  { %p9239_p1 = scmp.ne.s32.totalorder %s157_s27, %s9238_s2  ;;  %p9243_p2 = scmp.lt.s32.totalorder %s157_s27, %s157_s27 }
 0x122   :  { %p9244_p3 = scmp.lt.s32.totalorder %s9238_s2, %s9238_s2 }
 0x124   :  { %139 = dma.hbm_to_vmem [thread:$0]  %s11745_s14, 6144, %s134_s3, [#allocation3], %s9667_s6, %s9667_s6, %s9668_s10  }
 0x125   :  { %p9245_p4 = por %p9244_p3, %p9243_p2 }
 0x127   :  { %p9246_p5 = pnand %p9245_p4, %p9239_p1 }
 0x129   :  { %9249 = shalt.err (!%p9246_p5)
}
 0x12a   :  { %s11746_s12 = sld [smem:[#allocation74_spill]]  ;;  %s9258_s7 = scalar_lea.vmem %s178_s1, 2048 }
 0x12b   :  { %p9259_p6 = scmp.ne.s32.totalorder %s178_s1, %s9258_s7  ;;  %p9263_p7 = scmp.lt.s32.totalorder %s178_s1, %s178_s1 }
 0x12c   :  { %p9264_p8 = scmp.lt.s32.totalorder %s9258_s7, %s9258_s7 }
 0x12e   :  { %p9265_p9 = por %p9264_p8, %p9263_p7 }
 0x130   :  { %159 = dma.hbm_to_vmem [thread:$0]  %s11746_s12, 64, %s157_s27, [#allocation6]  }
 0x131   :  { %p9266_p10 = pnand %p9265_p9, %p9259_p6 }
 0x133   :  { %9269 = shalt.err (!%p9266_p10)
}
 0x134   :  { %s9682_s6 = smov 512   ;;  %s11747_s10 = sld [smem:[#allocation76_spill]] }
 0x135   :  { %s9683_s20 = smov 32   ;;  %s9684_s15 = smov [#allocation13]  }
 0x136   :  { %s201_s16 = sshll.u32 %s9684_s15, 4  ;;  %s9685_s4 = smov [#allocation16]   ;;  %s202_s16 = int_to_ptr.vmem [resolvable:$true] %s201_s16 }
 0x137   :  { %s225_s18 = sshll.u32 %s9685_s4, 4  ;;  %s9278_s0 = scalar_lea.vmem %s202_s16, 512  ;;  %s226_s18 = int_to_ptr.vmem [resolvable:$true] %s225_s18 }
 0x138   :  { %p9279_p11 = scmp.ne.s32.totalorder %s202_s16, %s9278_s0  ;;  %p9283_p12 = scmp.lt.s32.totalorder %s202_s16, %s202_s16 }
 0x139   :  { %p9284_p13 = scmp.lt.s32.totalorder %s9278_s0, %s9278_s0 }
 0x13a   :  { %183 = dma.hbm_to_vmem [thread:$0]  %s11747_s10, 2048, %s178_s1, [#allocation9], %s9682_s6, %s9682_s6, %s9683_s20  }
 0x13b   :  { %p9285_p0 = por %p9284_p13, %p9283_p12 }
 0x13d   :  { %p9286_p1 = pnand %p9285_p0, %p9279_p11 }
 0x13f   :  { %9289 = shalt.err (!%p9286_p1)
}
 0x140   :  { %s11748_s30 = sld [smem:[#allocation77_spill]]  ;;  %s9298_s25 = scalar_lea.vmem %s226_s18, 256 }
 0x141   :  { %p9299_p2 = scmp.ne.s32.totalorder %s226_s18, %s9298_s25  ;;  %p9303_p3 = scmp.lt.s32.totalorder %s226_s18, %s226_s18 }
 0x142   :  { %p9304_p4 = scmp.lt.s32.totalorder %s9298_s25, %s9298_s25 }
 0x144   :  { %p9305_p5 = por %p9304_p4, %p9303_p3 }
 0x146   :  { %207 = dma.hbm_to_vmem [thread:$0]  %s11748_s30, 512, %s202_s16, [#allocation12], %s9660_s13, %s9660_s13, %s9661_s11  }
 0x147   :  { %p9306_p6 = pnand %p9305_p5, %p9299_p2 }
 0x149   :  { %9309 = shalt.err (!%p9306_p6)
}
 0x14a   :  { %s11749_s22 = sld [smem:[#allocation78_spill]]  ;;  %s9686_s3 = smov [#allocation19]  }
 0x14b   :  { %s254_s23 = sshll.u32 %s9686_s3, 4  ;;  %s9687_s17 = smov [#allocation22]   ;;  %s255_s23 = int_to_ptr.vmem [resolvable:$true] %s254_s23 }
 0x14c   :  { %s274_s26 = sshll.u32 %s9687_s17, 4  ;;  %s9318_s14 = scalar_lea.vmem %s255_s23, 32  ;;  %s275_s26 = int_to_ptr.vmem [resolvable:$true] %s274_s26 }
 0x14d   :  { %p9319_p7 = scmp.ne.s32.totalorder %s255_s23, %s9318_s14  ;;  %p9323_p8 = scmp.lt.s32.totalorder %s255_s23, %s255_s23 }
 0x14e   :  { %p9324_p9 = scmp.lt.s32.totalorder %s9318_s14, %s9318_s14 }
 0x150   :  { %231 = dma.hbm_to_vmem [thread:$0]  %s11749_s22, 256, %s226_s18, [#allocation15], %s9660_s13, %s9660_s13, %s9661_s11  }
 0x151   :  { %p9325_p10 = por %p9324_p9, %p9323_p8 }
 0x153   :  { %p9326_p11 = pnand %p9325_p10, %p9319_p7 }
 0x155   :  { %9329 = shalt.err (!%p9326_p11)
}
 0x156   :  { %s11750_s28 = sld [smem:[#allocation81_spill]]  ;;  %s9338_s27 = scalar_lea.vmem %s275_s26, 32 }
 0x157   :  { %p9339_p12 = scmp.ne.s32.totalorder %s275_s26, %s9338_s27  ;;  %p9343_p13 = scmp.lt.s32.totalorder %s275_s26, %s275_s26 }
 0x158   :  { %p9344_p0 = scmp.lt.s32.totalorder %s9338_s27, %s9338_s27 }
 0x15a   :  { %p9345_p1 = por %p9344_p0, %p9343_p13 }
 0x15c   :  { %257 = dma.hbm_to_vmem [thread:$0]  %s11750_s28, 32, %s255_s23, [#allocation18]  }
 0x15d   :  { %p9346_p2 = pnand %p9345_p1, %p9339_p12 }
 0x15f   :  { %9349 = shalt.err (!%p9346_p2)
}
 0x160   :  { %s11751_s5 = sld [smem:[#allocation82_spill]]  ;;  %s9688_s1 = smov [#allocation25]  }
 0x161   :  { %s297_s2 = sshll.u32 %s9688_s1, 4  ;;  %s9689_s12 = smov [#allocation28]   ;;  %s298_s2 = int_to_ptr.vmem [resolvable:$true] %s297_s2 }
 0x162   :  { %s324_s7 = sshll.u32 %s9689_s12, 4  ;;  %s9358_s6 = scalar_lea.vmem %s298_s2, 256  ;;  %s325_s7 = int_to_ptr.vmem [resolvable:$true] %s324_s7 }
 0x163   :  { %p9359_p3 = scmp.ne.s32.totalorder %s298_s2, %s9358_s6  ;;  %p9363_p4 = scmp.lt.s32.totalorder %s298_s2, %s298_s2 }
 0x164   :  { %p9364_p5 = scmp.lt.s32.totalorder %s9358_s6, %s9358_s6 }
 0x166   :  { %277 = dma.hbm_to_vmem [thread:$0]  %s11751_s5, 32, %s275_s26, [#allocation21]  }
 0x167   :  { %p9365_p6 = por %p9364_p5, %p9363_p4 }
 0x169   :  { %p9366_p7 = pnand %p9365_p6, %p9359_p3 }
 0x16b   :  { %9369 = shalt.err (!%p9366_p7)
}
 0x16c   :  { %s11752_s10 = sld [smem:[#allocation84_spill]]  ;;  %s9378_s20 = scalar_lea.vmem %s325_s7, 128 }
 0x16d   :  { %p9379_p8 = scmp.ne.s32.totalorder %s325_s7, %s9378_s20  ;;  %p9383_p9 = scmp.lt.s32.totalorder %s325_s7, %s325_s7 }
 0x16e   :  { %p9384_p10 = scmp.lt.s32.totalorder %s9378_s20, %s9378_s20 }
 0x170   :  { %p9385_p11 = por %p9384_p10, %p9383_p9 }
 0x172   :  { %303 = dma.hbm_to_vmem [thread:$0]  %s11752_s10, 256, %s298_s2, [#allocation24], %s9660_s13, %s9660_s13, %s9661_s11  }
 0x173   :  { %p9386_p12 = pnand %p9385_p11, %p9379_p8 }
 0x175   :  { %9389 = shalt.err (!%p9386_p12)
}
 0x176   :  { %s11753_s15 = sld [smem:[#allocation86_spill]]  ;;  %s9690_s16 = smov [#allocation31]  }
 0x177   :  { %s347_s4 = sshll.u32 %s9690_s16, 4  ;;  %s9691_s18 = smov [#allocation34]   ;;  %s348_s4 = int_to_ptr.vmem [resolvable:$true] %s347_s4 }
 0x178   :  { %s370_s0 = sshll.u32 %s9691_s18, 4  ;;  %s9398_s30 = scalar_lea.vmem %s348_s4, 3072  ;;  %s371_s0 = int_to_ptr.vmem [resolvable:$true] %s370_s0 }
 0x179   :  { %p9399_p13 = scmp.ne.s32.totalorder %s348_s4, %s9398_s30  ;;  %p9403_p0 = scmp.lt.s32.totalorder %s348_s4, %s348_s4 }
 0x17a   :  { %p9404_p1 = scmp.lt.s32.totalorder %s9398_s30, %s9398_s30 }
 0x17c   :  { %327 = dma.hbm_to_vmem [thread:$0]  %s11753_s15, 128, %s325_s7, [#allocation27]  }
 0x17d   :  { %p9405_p2 = por %p9404_p1, %p9403_p0 }
 0x17f   :  { %p9406_p3 = pnand %p9405_p2, %p9399_p13 }
 0x181   :  { %9409 = shalt.err (!%p9406_p3)
}
 0x182   :  { %s11754_s25 = sld [smem:[#allocation88_spill]]  ;;  %s9418_s22 = scalar_lea.vmem %s371_s0, 16 }
 0x183   :  { %p9419_p4 = scmp.ne.s32.totalorder %s371_s0, %s9418_s22  ;;  %s9422_s3 = scalar_lea.vmem %s371_s0, 32 }
 0x184   :  { %p9423_p5 = scmp.lt.s32.totalorder %s371_s0, %s371_s0  ;;  %p9424_p6 = scmp.lt.s32.totalorder %s9422_s3, %s9418_s22 }
 0x186   :  { %p9425_p7 = por %p9424_p6, %p9423_p5 }
 0x188   :  { %353 = dma.hbm_to_vmem [thread:$0]  %s11754_s25, 3072, %s348_s4, [#allocation30], %s9676_s24, %s9676_s24, %s9677_s21  }
 0x189   :  { %p9426_p8 = pnand %p9425_p7, %p9419_p4 }
 0x18b   :  { %9429 = shalt.err (!%p9426_p8)
}
 0x18c   :  { %s11755_s23 = sld [smem:[#allocation89_spill]]  ;;  %s9692_s17 = smov [#allocation37]  }
 0x18d   :  { %s391_s26 = sshll.u32 %s9692_s17, 4  ;;  %s9693_s14 = smov [#allocation40]   ;;  %s392_s26 = int_to_ptr.vmem [resolvable:$true] %s391_s26 }
 0x18e   :  { %s414_s28 = sshll.u32 %s9693_s14, 4  ;;  %s9438_s27 = scalar_lea.vmem %s392_s26, 512  ;;  %s415_s28 = int_to_ptr.vmem [resolvable:$true] %s414_s28 }
 0x18f   :  { %p9439_p9 = scmp.ne.s32.totalorder %s392_s26, %s9438_s27  ;;  %p9443_p10 = scmp.lt.s32.totalorder %s392_s26, %s392_s26 }
 0x190   :  { %p9444_p11 = scmp.lt.s32.totalorder %s9438_s27, %s9438_s27 }
 0x192   :  { %373 = dma.hbm_to_vmem [thread:$0]  %s11755_s23, 16, %s371_s0, [#allocation33]  }
 0x193   :  { %p9445_p12 = por %p9444_p11, %p9443_p10 }
 0x195   :  { %p9446_p13 = pnand %p9445_p12, %p9439_p9 }
 0x197   :  { %9449 = shalt.err (!%p9446_p13)
}
 0x198   :  { %s11756_s24 = sld [smem:[#allocation91_spill]]  ;;  %s9458_s21 = scalar_lea.vmem %s415_s28, 128 }
 0x199   :  { %p9459_p0 = scmp.ne.s32.totalorder %s415_s28, %s9458_s21  ;;  %p9463_p1 = scmp.lt.s32.totalorder %s415_s28, %s415_s28 }
 0x19a   :  { %p9464_p2 = scmp.lt.s32.totalorder %s9458_s21, %s9458_s21 }
 0x19c   :  { %p9465_p3 = por %p9464_p2, %p9463_p1 }
 0x19e   :  { %397 = dma.hbm_to_vmem [thread:$0]  %s11756_s24, 512, %s392_s26, [#allocation36], %s9660_s13, %s9660_s13, %s9661_s11  }
 0x19f   :  { %p9466_p4 = pnand %p9465_p3, %p9459_p0 }
 0x1a1   :  { %9469 = shalt.err (!%p9466_p4)
}
 0x1a2   :  { %s11757_s5 = sld [smem:[#allocation92_spill]]  ;;  %s9694_s1 = smov [#allocation43]  }
 0x1a3   :  { %s434_s2 = sshll.u32 %s9694_s1, 4  ;;  %s9695_s12 = smov [#allocation46]   ;;  %s435_s2 = int_to_ptr.vmem [resolvable:$true] %s434_s2 }
 0x1a4   :  { %s460_s7 = sshll.u32 %s9695_s12, 4  ;;  %s9478_s6 = scalar_lea.vmem %s435_s2, 64  ;;  %s461_s7 = int_to_ptr.vmem [resolvable:$true] %s460_s7 }
 0x1a5   :  { %p9479_p5 = scmp.ne.s32.totalorder %s435_s2, %s9478_s6  ;;  %p9483_p6 = scmp.lt.s32.totalorder %s435_s2, %s435_s2 }
 0x1a6   :  { %p9484_p7 = scmp.lt.s32.totalorder %s9478_s6, %s9478_s6 }
 0x1a8   :  { %417 = dma.hbm_to_vmem [thread:$0]  %s11757_s5, 128, %s415_s28, [#allocation39]  }
 0x1a9   :  { %p9485_p8 = por %p9484_p7, %p9483_p6 }
 0x1ab   :  { %p9486_p9 = pnand %p9485_p8, %p9479_p5 }
 0x1ad   :  { %9489 = shalt.err (!%p9486_p9)
}
 0x1ae   :  { %s11758_s13 = sld [smem:[#allocation93_spill]]  ;;  %s9498_s11 = scalar_lea.vmem %s461_s7, 16 }
 0x1af   :  { %p9499_p10 = scmp.ne.s32.totalorder %s461_s7, %s9498_s11  ;;  %s9502_s10 = scalar_lea.vmem %s461_s7, 32 }
 0x1b0   :  { %p9503_p11 = scmp.lt.s32.totalorder %s461_s7, %s461_s7  ;;  %p9504_p12 = scmp.lt.s32.totalorder %s9502_s10, %s9498_s11 }
 0x1b2   :  { %p9505_p13 = por %p9504_p12, %p9503_p11 }
 0x1b4   :  { %437 = dma.hbm_to_vmem [thread:$0]  %s11758_s13, 64, %s435_s2, [#allocation42]  }
 0x1b5   :  { %p9506_p0 = pnand %p9505_p13, %p9499_p10 }
 0x1b7   :  { %9509 = shalt.err (!%p9506_p0)
}
 0x1b8   :  { %s11759_s20 = sld [smem:[#allocation96_spill]]  ;;  %s9696_s15 = smov [#allocation49]  }
 0x1b9   :  { %s480_s16 = sshll.u32 %s9696_s15, 4  ;;  %s9697_s4 = smov [#allocation52]   ;;  %s481_s16 = int_to_ptr.vmem [resolvable:$true] %s480_s16 }
 0x1ba   :  { %s518_s18 = sshll.u32 %s9697_s4, 4  ;;  %s9518_s0 = scalar_lea.vmem %s481_s16, 16  ;;  %s519_s18 = int_to_ptr.vmem [resolvable:$true] %s518_s18 }
 0x1bb   :  { %p9519_p1 = scmp.ne.s32.totalorder %s481_s16, %s9518_s0  ;;  %s9522_s30 = scalar_lea.vmem %s481_s16, 32 }
 0x1bc   :  { %p9523_p2 = scmp.lt.s32.totalorder %s481_s16, %s481_s16  ;;  %p9524_p3 = scmp.lt.s32.totalorder %s9522_s30, %s9518_s0 }
 0x1be   :  { %463 = dma.hbm_to_vmem [thread:$0]  %s11759_s20, 16, %s461_s7, [#allocation45]  }
 0x1bf   :  { %p9525_p4 = por %p9524_p3, %p9523_p2 }
 0x1c1   :  { %p9526_p5 = pnand %p9525_p4, %p9519_p1 }
 0x1c3   :  { %9529 = shalt.err (!%p9526_p5)
}
 0x1c4   :  { %s11760_s25 = sld [smem:[#allocation98_spill]]  ;;  %s9538_s22 = scalar_lea.vmem %s519_s18, 16 }
 0x1c5   :  { %p9539_p6 = scmp.ne.s32.totalorder %s519_s18, %s9538_s22  ;;  %s9542_s3 = scalar_lea.vmem %s519_s18, 32 }
 0x1c6   :  { %p9543_p7 = scmp.lt.s32.totalorder %s519_s18, %s519_s18  ;;  %p9544_p8 = scmp.lt.s32.totalorder %s9542_s3, %s9538_s22 }
 0x1c8   :  { %p9545_p9 = por %p9544_p8, %p9543_p7 }
 0x1ca   :  { %483 = dma.hbm_to_vmem [thread:$0]  %s11760_s25, 16, %s481_s16, [#allocation48]  }
 0x1cb   :  { %p9546_p10 = pnand %p9545_p9, %p9539_p6 }
 0x1cd   :  { %9549 = shalt.err (!%p9546_p10)
}
 0x1ce   :  { %521 = dma.hbm_to_vmem [thread:$0]  %s9961_s19, 16, %s519_s18, [#allocation51]  }
 0x1cf   :  { %9570 = dma.done.wait [#allocation3], 6144  }
 0x1d0   :  { %9571 = vsyncadd [#allocation3], 4294961152 }
 0x1d1   :  { %9572 = dma.done.wait [#allocation6], 128  }
 0x1d2   :  { %9573 = vsyncadd [#allocation6], 4294967168 }
 0x1d3   :  { %9574 = dma.done.wait [#allocation9], 2112  }
 0x1d4   :  { %9575 = vsyncadd [#allocation9], 4294965184 }
 0x1d5   :  { %9576 = dma.done.wait [#allocation12], 1024  }
 0x1d6   :  { %9577 = vsyncadd [#allocation12], 4294966272 }
 0x1d7   :  { %9578 = dma.done.wait [#allocation15], 512  }
 0x1d8   :  { %9579 = vsyncadd [#allocation15], 4294966784 }
 0x1d9   :  { %9580 = dma.done.wait [#allocation18], 12320  }
 0x1da   :  { %9581 = vsyncadd [#allocation18], 4294954976 }
 0x1db   :  { %9582 = dma.done.wait [#allocation21], 64  }
 0x1dc   :  { %9583 = vsyncadd [#allocation21], 4294967232 }
 0x1dd   :  { %9584 = dma.done.wait [#allocation24], 1280  }
 0x1de   :  { %9585 = vsyncadd [#allocation24], 4294966016 }
 0x1df   :  { %9586 = dma.done.wait [#allocation27], 384  }
 0x1e0   :  { %9587 = vsyncadd [#allocation27], 4294966912 }
 0x1e1   :  { %9588 = dma.done.wait [#allocation30], 7168  }
 0x1e2   :  { %9589 = vsyncadd [#allocation30], 4294960128 }
 0x1e3   :  { %9590 = dma.done.wait [#allocation33], 32  }
 0x1e4   :  { %9591 = vsyncadd [#allocation33], 4294967264 }
 0x1e5   :  { %9592 = dma.done.wait [#allocation36], 528  }
 0x1e6   :  { %9593 = vsyncadd [#allocation36], 4294966768 }
 0x1e7   :  { %9594 = dma.done.wait [#allocation39], 256  }
 0x1e8   :  { %9595 = vsyncadd [#allocation39], 4294967040 }
 0x1e9   :  { %9596 = dma.done.wait [#allocation42], 128  }
 0x1ea   :  { %9597 = vsyncadd [#allocation42], 4294967168 }
 0x1eb   :  { %9598 = dma.done.wait [#allocation45], 1552  }
 0x1ec   :  { %9599 = vsyncadd [#allocation45], 4294965744 }
 0x1ed   :  { %9600 = dma.done.wait [#allocation48], 32  }
 0x1ee   :  { %9601 = vsyncadd [#allocation48], 4294967264 }
 0x1ef   :  { %9602 = dma.done.wait [#allocation51], 528  }
 0x1f0   :  { %9603 = vsyncadd [#allocation51], 4294966768  ;;  %s11761_s19 = sld [smem:[#allocation72_spill]]  ;;  %vm630_vm0 = vcmask 261120   ;;  %v626_v2 = vld [vmem:[#allocation11] sm:$0xff]  ;;  %v627_v5 = vld [vmem:[#allocation11 + $0x8] sm:$0xff] }
 0x1f1   :  { %8106 = vmatprep.mubr.msk.f32.mxu0 %vm630_vm0, %v626_v2  ;;  %v628_v6 = vld [vmem:[#allocation11 + $0x10] sm:$0xff]  ;;  %v728_v7 = vld [vmem:[#allocation13] sm:$0xff]  ;;  %v729_v8 = vld [vmem:[#allocation13 + $0x8] sm:$0xff]  ;;  %v9698_v22 = vmov 0   ;;  %vm946_vm1 = vcmask 523264   ;;  %s11762_s23 = sld [smem:[#allocation75_spill]] }
 0x1f2   :  { %v730_v9 = vld [vmem:[#allocation13 + $0x10] sm:$0xff]  ;;  %v8632_v10 = vld [vmem:[#allocation2 + $0xe4] ss:$16 sps:$4 sm:$0xff]   ;;  %v8633_v13 = vld [vmem:[#allocation2 + $0xe8] ss:$16 sps:$4 sm:$0xff]   ;;  %8120 = vmatprep.mubr.msk.f32.mxu1 %vm630_vm0, %v728_v7  ;;  %s11889_s17 = sld [smem:[#allocation79_spill]] }
 0x1f3   :  { %v629_v11 = vld [vmem:[#allocation11 + $0x18] sm:$0xff]  ;;  %v8635_v12 = vld [vmem:[#allocation2 + $0xec] ss:$16 sps:$4 sm:$0xff]   ;;  %v8630_v14 = vld [vmem:[#allocation2 + $0xe0] ss:$16 sps:$4 sm:$0xff]   ;;  %s11890_s26 = sld [smem:[#allocation80_spill]] }
 0x1f4   :  { %v8641_v15 = vld [vmem:[#allocation2 + $0xcc] ss:$16 sps:$4 sm:$0xff]   ;;  %v8638_v16 = vld [vmem:[#allocation2 + $0xc4] ss:$16 sps:$4 sm:$0xff]   ;;  %v8639_v18 = vld [vmem:[#allocation2 + $0xc8] ss:$16 sps:$4 sm:$0xff]  }
 0x1f5   :  { %v731_v17 = vld [vmem:[#allocation13 + $0x18] sm:$0xff]  ;;  %v8636_v19 = vld [vmem:[#allocation2 + $0xc0] ss:$16 sps:$4 sm:$0xff]   ;;  %v8647_v20 = vld [vmem:[#allocation2 + $0xac] ss:$16 sps:$4 sm:$0xff]   ;;  %vm3314_vm2 = vcmask 130048  }
 0x1f6   :  { %v10044_v0 = vld [vmem:[%s11761_s19 + $0x18] sm:$0xff]  ;;  %v10047_v1 = vld [vmem:[%s11761_s19 + $0x10] sm:$0xff]  ;;  %v10053_v3 = vld [vmem:[%s11761_s19 + $0x8] sm:$0xff]  ;;  %s11891_s14 = sld [smem:[#allocation83_spill]]  ;;  %vm9701_vm3 = vmmov 0   ;;  %vm5005_vm4 = vcmask 64512  }
 0x1f7   :  { %8098 = vmatprep.subr.mxu0 %v10044_v0  ;;  %8112 = vmatprep.subr.mxu1 %v10044_v0  ;;  %v622_v4 = vld [vmem:[%s11761_s19] sm:$0xff]  ;;  %v8645_v23 = vld [vmem:[#allocation2 + $0xa8] ss:$16 sps:$4 sm:$0xff]   ;;  %v8653_v25 = vld [vmem:[#allocation2 + $0x8c] ss:$16 sps:$4 sm:$0xff]   ;;  %v848_v40 = vpack.c.bf16 %v10044_v0, %v10047_v1  ;;  %s11892_s28 = sld [smem:[#allocation87_spill]] }
 0x1f8   :  { %8099 = vmatpush3.msra.mxu0 %v10044_v0  ;;  %8113 = vmatpush3.msra.mxu1 %v10044_v0  ;;  %v8644_v21 = vld [vmem:[#allocation2 + $0xa4] ss:$16 sps:$4 sm:$0xff]   ;;  %v8642_v24 = vld [vmem:[#allocation2 + $0xa0] ss:$16 sps:$4 sm:$0xff]   ;;  %v8651_v28 = vld [vmem:[#allocation2 + $0x88] ss:$16 sps:$4 sm:$0xff]   ;;  %v847_v31 = vpack.c.bf16 %v10053_v3, %v622_v4 }
 0x1f9   :  { %8100 = vmatprep.subr.mxu0 %v10047_v1  ;;  %8114 = vmatprep.subr.mxu1 %v10047_v1  ;;  %v8650_v26 = vld [vmem:[#allocation2 + $0x84] ss:$16 sps:$4 sm:$0xff]   ;;  %v8648_v27 = vld [vmem:[#allocation2 + $0x80] ss:$16 sps:$4 sm:$0xff]   ;;  %v8659_v30 = vld [vmem:[#allocation2 + $0x6c] ss:$16 sps:$4 sm:$0xff]  }
 0x1fa   :  { %8101 = vmatpush3.msra.mxu0 %v10047_v1  ;;  %8115 = vmatpush3.msra.mxu1 %v10047_v1  ;;  %v8656_v29 = vld [vmem:[#allocation2 + $0x64] ss:$16 sps:$4 sm:$0xff]   ;;  %v8654_v32 = vld [vmem:[#allocation2 + $0x60] ss:$16 sps:$4 sm:$0xff]   ;;  %v8657_v33 = vld [vmem:[#allocation2 + $0x68] ss:$16 sps:$4 sm:$0xff]  }
 0x1fb   :  { %8102 = vmatprep.subr.mxu0 %v10053_v3  ;;  %8116 = vmatprep.subr.mxu1 %v10053_v3  ;;  %v8662_v34 = vld [vmem:[#allocation2 + $0x44] ss:$16 sps:$4 sm:$0xff]   ;;  %v8665_v35 = vld [vmem:[#allocation2 + $0x4c] ss:$16 sps:$4 sm:$0xff]   ;;  %v8660_v36 = vld [vmem:[#allocation2 + $0x40] ss:$16 sps:$4 sm:$0xff]  }
 0x1fc   :  { %8103 = vmatpush3.msra.mxu0 %v10053_v3  ;;  %8117 = vmatpush3.msra.mxu1 %v10053_v3  ;;  %v8663_v37 = vld [vmem:[#allocation2 + $0x48] ss:$16 sps:$4 sm:$0xff]   ;;  %v8668_v38 = vld [vmem:[#allocation2 + $0x24] ss:$16 sps:$4 sm:$0xff]   ;;  %v8671_v39 = vld [vmem:[#allocation2 + $0x2c] ss:$16 sps:$4 sm:$0xff]  }
 0x1fd   :  { %8104 = vmatprep.subr.mxu0 %v622_v4  ;;  %8118 = vmatprep.subr.mxu1 %v622_v4  ;;  %v8666_v41 = vld [vmem:[#allocation2 + $0x20] ss:$16 sps:$4 sm:$0xff]   ;;  %v8669_v42 = vld [vmem:[#allocation2 + $0x28] ss:$16 sps:$4 sm:$0xff]   ;;  %v8674_v43 = vld [vmem:[#allocation2 + $0x4] ss:$16 sps:$4 sm:$0xff]  }
 0x1fe   :  { %8105 = vmatpush3.msra.mxu0 %v622_v4  ;;  %8119 = vmatpush3.msra.mxu1 %v622_v4  ;;  %v8677_v44 = vld [vmem:[#allocation2 + $0xc] ss:$16 sps:$4 sm:$0xff]   ;;  %v8672_v45 = vld [vmem:[#allocation2] ss:$16 sps:$4 sm:$0xff]   ;;  %v8675_v46 = vld [vmem:[#allocation2 + $0x8] ss:$16 sps:$4 sm:$0xff]  }
 0x1ff   :  { %8107 = vmatmul.mubr.msk.f32.vlgmr.msra.gmra.mxu0 %vm630_vm0, %v627_v5  ;;  %8121 = vmatmul.mubr.msk.f32.vlgmr.msra.gmra.mxu1 %vm630_vm0, %v729_v8  ;;  %v8680_v47 = vld [vmem:[#allocation2 + $0x164] ss:$16 sps:$4 sm:$0xff]   ;;  %v8683_v48 = vld [vmem:[#allocation2 + $0x16c] ss:$16 sps:$4 sm:$0xff]   ;;  %v8678_v51 = vld [vmem:[#allocation2 + $0x160] ss:$16 sps:$4 sm:$0xff]  }
 0x200   :  { %8109 = vmatprep.mubr.msk.f32.mxu0 %vm630_vm0, %v628_v6  ;;  %961 = vmatprep.subr.bf16.mxu0 %v8632_v10  ;;  %v8681_v52 = vld [vmem:[#allocation2 + $0x168] ss:$16 sps:$4 sm:$0xff]   ;;  %v8686_v54 = vld [vmem:[#allocation2 + $0x144] ss:$16 sps:$4 sm:$0xff]   ;;  %v8689_v55 = vld [vmem:[#allocation2 + $0x14c] ss:$16 sps:$4 sm:$0xff]  }
 0x201   :  { %8123 = vmatprep.mubr.msk.f32.mxu1 %vm630_vm0, %v730_v9  ;;  %1014 = vmatprep.subr.bf16.mxu1 %v8635_v12  ;;  %v8684_v57 = vld [vmem:[#allocation2 + $0x140] ss:$16 sps:$4 sm:$0xff]   ;;  %v8687_v58 = vld [vmem:[#allocation2 + $0x148] ss:$16 sps:$4 sm:$0xff]   ;;  %v8692_v59 = vld [vmem:[#allocation2 + $0x124] ss:$16 sps:$4 sm:$0xff]  }
 0x202   :  { %1015 = vmatpush1.bf16.msra.mxu1 %v8633_v13  ;;  %962 = vmatpush1.bf16.msra.mxu0 %v8630_v14  ;;  %v8695_v60 = vld [vmem:[#allocation2 + $0x12c] ss:$16 sps:$4 sm:$0xff]   ;;  %v8690_v62 = vld [vmem:[#allocation2 + $0x120] ss:$16 sps:$4 sm:$0xff]   ;;  %v8693_v63 = vld [vmem:[#allocation2 + $0x128] ss:$16 sps:$4 sm:$0xff]  }
 0x203   :  { %8110 = vmatmul.mubr.msk.f32.gmra.mxu0 %vm630_vm0, %v629_v11  ;;  %1016 = vmatprep.subr.bf16.mxu1 %v8641_v15  ;;  %v8698_v1 = vld [vmem:[#allocation2 + $0x104] ss:$16 sps:$4 sm:$0xff]   ;;  %v8701_v2 = vld [vmem:[#allocation2 + $0x10c] ss:$16 sps:$4 sm:$0xff]   ;;  %v8696_v4 = vld [vmem:[#allocation2 + $0x100] ss:$16 sps:$4 sm:$0xff]  }
 0x204   :  { %8124 = vmatmul.mubr.msk.f32.gmra.mxu1 %vm630_vm0, %v731_v17  ;;  %963 = vmatprep.subr.bf16.mxu0 %v8638_v16  ;;  %v8699_v5 = vld [vmem:[#allocation2 + $0x108] ss:$16 sps:$4 sm:$0xff]   ;;  %v10117_v15 = vld [vmem:[%s11762_s23 + $0xf0] sm:$0xff]  ;;  %s11893_s27 = sld [smem:[#allocation85_spill]]  ;;  %vm6152_vm5 = vcmask 1043456   ;;  %vm6148_vm6 = vcmask 31744  }
 0x205   :  { %985 = vmatprep.mubr.bf16.mxu0 %v9698_v22  ;;  %1038 = vmatprep.mubr.bf16.mxu1 %v9698_v22  ;;  %v10101_v11 = vld [vmem:[%s11762_s23 + $0xf8] sm:$0xff]  ;;  %v10120_v16 = vld [vmem:[%s11762_s23 + $0x1f0] sm:$0xff]  ;;  %s11894_s24 = sld [smem:[#allocation90_spill]]  ;;  %vm6539_vm7 = vcmask 519168   ;;  %vm7282_vm8 = vcmask 33792  }
 0x206   :  { %1017 = vmatpush1.bf16.msra.mxu1 %v8639_v18  ;;  %964 = vmatpush1.bf16.msra.mxu0 %v8636_v19  ;;  %v10104_v12 = vld [vmem:[%s11762_s23 + $0x1f8] sm:$0xff]  ;;  %v10125_v17 = vld [vmem:[%s11762_s23 + $0x70] sm:$0xff]  ;;  %v10133_v19 = vld [vmem:[%s11762_s23 + $0xe8] sm:$0xff]  ;;  %s11895_s21 = sld [smem:[#allocation95_spill]] }
 0x207   :  { %1018 = vmatprep.subr.bf16.mxu1 %v8647_v20  ;;  %965 = vmatprep.subr.bf16.mxu0 %v8644_v21  ;;  %v10109_v13 = vld [vmem:[%s11762_s23 + $0x78] sm:$0xff]  ;;  %11763 = vst [vmem:[#allocation106_spill] sm:$0xff] %v10125_v17  ;;  %v10128_v18 = vld [vmem:[%s11762_s23 + $0x170] sm:$0xff]  ;;  %11765 = vst [vmem:[#allocation108_spill] sm:$0xff] %v10133_v19  ;;  %s11896_s5 = sld [smem:[#allocation94_spill]] }
 0x208   :  { %v10112_v14 = vld [vmem:[%s11762_s23 + $0x178] sm:$0xff]  ;;  %11764 = vst [vmem:[#allocation107_spill] sm:$0xff] %v10128_v18  ;;  %v10136_v20 = vld [vmem:[%s11762_s23 + $0x1e8] sm:$0xff]  ;;  %s11897_s1 = sld [smem:[#allocation101_spill]] }
 0x209   :  { %11766 = vst [vmem:[#allocation109_spill] sm:$0xff] %v10136_v20  ;;  %v10141_v21 = vld [vmem:[%s11762_s23 + $0x68] sm:$0xff]  ;;  %s11898_s2 = sld [smem:[#allocation102_spill]] }
 0x20a   :  { %1019 = vmatpush1.bf16.msra.mxu1 %v8645_v23  ;;  %966 = vmatpush1.bf16.msra.mxu0 %v8642_v24  ;;  %11767 = vst [vmem:[#allocation110_spill] sm:$0xff] %v10141_v21  ;;  %v10149_v23 = vld [vmem:[%s11762_s23 + $0xe0] sm:$0xff]  ;;  %s11899_s12 = sld [smem:[#allocation99_spill]] }
 0x20b   :  { %1020 = vmatprep.subr.bf16.mxu1 %v8653_v25  ;;  %967 = vmatprep.subr.bf16.mxu0 %v8650_v26  ;;  %11769 = vst [vmem:[#allocation112_spill] sm:$0xff] %v10149_v23  ;;  %v10152_v24 = vld [vmem:[%s11762_s23 + $0x1e0] sm:$0xff]  ;;  %s11900_s7 = sld [smem:[#allocation103_spill]] }
 0x20c   :  { %11770 = vst [vmem:[#allocation113_spill] sm:$0xff] %v10152_v24  ;;  %v10157_v25 = vld [vmem:[%s11762_s23 + $0x60] sm:$0xff]  ;;  %s11901_s6 = sld [smem:[#allocation104_spill]] }
 0x20d   :  { %11771 = vst [vmem:[#allocation114_spill] sm:$0xff] %v10157_v25  ;;  %v10160_v26 = vld [vmem:[%s11762_s23 + $0x160] sm:$0xff]  ;;  %s11902_s13 = sld [smem:[#allocation105_spill]] }
 0x20e   :  { %1021 = vmatpush1.bf16.msra.mxu1 %v8651_v28  ;;  %968 = vmatpush1.bf16.msra.mxu0 %v8648_v27  ;;  %11772 = vst [vmem:[#allocation115_spill] sm:$0xff] %v10160_v26  ;;  %v10165_v27 = vld [vmem:[%s11762_s23 + $0xd8] sm:$0xff] }
 0x20f   :  { %1206 = vmatprep.subr.bf16.mxu1 %v8659_v30  ;;  %1153 = vmatprep.subr.bf16.mxu0 %v8656_v29  ;;  %11773 = vst [vmem:[#allocation116_spill] sm:$0xff] %v10165_v27  ;;  %v10168_v28 = vld [vmem:[%s11762_s23 + $0x1d8] sm:$0xff] }
 0x210   :  { %11774 = vst [vmem:[#allocation117_spill] sm:$0xff] %v10168_v28  ;;  %v10173_v29 = vld [vmem:[%s11762_s23 + $0x58] sm:$0xff] }
 0x211   :  { %7392 = vmatmul.mubr.msk.bf16.vlgmr.msra.gmra.mxu1 %vm946_vm1, %v847_v31  ;;  %7390 = vmatmul.mubr.msk.bf16.vlgmr.msra.gmra.mxu0 %vm946_vm1, %v847_v31  ;;  %11775 = vst [vmem:[#allocation118_spill] sm:$0xff] %v10173_v29  ;;  %v10176_v30 = vld [vmem:[%s11762_s23 + $0x158] sm:$0xff]  ;;  %v10181_v31 = vld [vmem:[%s11762_s23 + $0xd0] sm:$0xff] }
 0x212   :  { %1048 = vmatprep.mubr.bf16.mxu1 %v9698_v22  ;;  %995 = vmatprep.mubr.bf16.mxu0 %v9698_v22  ;;  %11776 = vst [vmem:[#allocation119_spill] sm:$0xff] %v10176_v30  ;;  %11777 = vst [vmem:[#allocation120_spill] sm:$0xff] %v10181_v31 }
 0x213   :  { %1154 = vmatpush1.bf16.msra.mxu0 %v8654_v32  ;;  %1207 = vmatpush1.bf16.msra.mxu1 %v8657_v33  ;;  %v10184_v32 = vld [vmem:[%s11762_s23 + $0x1d0] sm:$0xff] }
 0x214   :  { %1155 = vmatprep.subr.bf16.mxu0 %v8662_v34  ;;  %1208 = vmatprep.subr.bf16.mxu1 %v8665_v35  ;;  %11778 = vst [vmem:[#allocation121_spill] sm:$0xff] %v10184_v32  ;;  %v10189_v33 = vld [vmem:[%s11762_s23 + $0x50] sm:$0xff]  ;;  %v10197_v35 = vld [vmem:[%s11762_s23 + $0xc8] sm:$0xff] }
 0x215   :  { %11779 = vst [vmem:[#allocation122_spill] sm:$0xff] %v10189_v33  ;;  %v10192_v34 = vld [vmem:[%s11762_s23 + $0x150] sm:$0xff]  ;;  %11781 = vst [vmem:[#allocation124_spill] sm:$0xff] %v10197_v35 }
 0x216   :  { %11780 = vst [vmem:[#allocation123_spill] sm:$0xff] %v10192_v34 }
 0x217   :  { %1156 = vmatpush1.bf16.msra.mxu0 %v8660_v36  ;;  %1209 = vmatpush1.bf16.msra.mxu1 %v8663_v37  ;;  %v10200_v36 = vld [vmem:[%s11762_s23 + $0x1c8] sm:$0xff] }
 0x218   :  { %1157 = vmatprep.subr.bf16.mxu0 %v8668_v38  ;;  %1210 = vmatprep.subr.bf16.mxu1 %v8671_v39  ;;  %11782 = vst [vmem:[#allocation125_spill] sm:$0xff] %v10200_v36  ;;  %v10205_v37 = vld [vmem:[%s11762_s23 + $0x48] sm:$0xff]  ;;  %v10213_v39 = vld [vmem:[%s11762_s23 + $0xc0] sm:$0xff] }
 0x219   :  { %7393 = vmatmul.mubr.msk.bf16.gmra.mxu1 %vm946_vm1, %v848_v40  ;;  %7391 = vmatmul.mubr.msk.bf16.gmra.mxu0 %vm946_vm1, %v848_v40  ;;  %11783 = vst [vmem:[#allocation126_spill] sm:$0xff] %v10205_v37  ;;  %v10208_v38 = vld [vmem:[%s11762_s23 + $0x148] sm:$0xff]  ;;  %11785 = vst [vmem:[#allocation128_spill] sm:$0xff] %v10213_v39  ;;  %v10216_v40 = vld [vmem:[%s11762_s23 + $0x1c0] sm:$0xff] }
 0x21a   :  { %1230 = vmatprep.mubr.bf16.mxu1 %v9698_v22  ;;  %1177 = vmatprep.mubr.bf16.mxu0 %v9698_v22  ;;  %11784 = vst [vmem:[#allocation127_spill] sm:$0xff] %v10208_v38  ;;  %11786 = vst [vmem:[#allocation129_spill] sm:$0xff] %v10216_v40 }
 0x21b   :  { %1158 = vmatpush1.bf16.msra.mxu0 %v8666_v41  ;;  %1211 = vmatpush1.bf16.msra.mxu1 %v8669_v42  ;;  %v10221_v41 = vld [vmem:[%s11762_s23 + $0x40] sm:$0xff] }
 0x21c   :  { %1159 = vmatprep.subr.bf16.mxu0 %v8674_v43  ;;  %1212 = vmatprep.subr.bf16.mxu1 %v8677_v44  ;;  %11787 = vst [vmem:[#allocation130_spill] sm:$0xff] %v10221_v41  ;;  %v10224_v42 = vld [vmem:[%s11762_s23 + $0x140] sm:$0xff]  ;;  %v10229_v43 = vld [vmem:[%s11762_s23 + $0xb8] sm:$0xff] }
 0x21d   :  { %11788 = vst [vmem:[#allocation131_spill] sm:$0xff] %v10224_v42  ;;  %11789 = vst [vmem:[#allocation132_spill] sm:$0xff] %v10229_v43  ;;  %v10232_v44 = vld [vmem:[%s11762_s23 + $0x1b8] sm:$0xff] }
 0x21e   :  { %11790 = vst [vmem:[#allocation133_spill] sm:$0xff] %v10232_v44 }
 0x21f   :  { %1160 = vmatpush1.bf16.msra.mxu0 %v8672_v45  ;;  %1213 = vmatpush1.bf16.msra.mxu1 %v8675_v46  ;;  %v10237_v45 = vld [vmem:[%s11762_s23 + $0x38] sm:$0xff] }
 0x220   :  { %1364 = vmatprep.subr.bf16.mxu0 %v8680_v47  ;;  %1417 = vmatprep.subr.bf16.mxu1 %v8683_v48  ;;  %11791 = vst [vmem:[#allocation134_spill] sm:$0xff] %v10237_v45  ;;  %v10240_v46 = vld [vmem:[%s11762_s23 + $0x138] sm:$0xff]  ;;  %v10245_v47 = vld [vmem:[%s11762_s23 + $0xb0] sm:$0xff] }
 0x221   :  { %11792 = vst [vmem:[#allocation135_spill] sm:$0xff] %v10240_v46  ;;  %11793 = vst [vmem:[#allocation136_spill] sm:$0xff] %v10245_v47  ;;  %v10248_v48 = vld [vmem:[%s11762_s23 + $0x1b0] sm:$0xff] }
 0x222   :  { %11794 = vst [vmem:[#allocation137_spill] sm:$0xff] %v10248_v48 }
 0x2bf   :  { %v8108_v49 = vpop.f32.mrf.mxu0  ;;  %v8122_v3 = vpop.f32.mrf.mxu1 }
 0x2c1   :  { %v709_v50 = vpop.f32.mrf.mxu0  ;;  %v810_v6 = vpop.f32.mrf.mxu1 }
 0x2c2   :  { %v829_v53 = vpack.c.bf16 %v8108_v49, %v709_v50  ;;  %v1251_v7 = vpack.c.bf16 %v8122_v3, %v810_v6  ;;  %v10253_v49 = vld [vmem:[%s11762_s23 + $0x30] sm:$0xff]  ;;  %v10323_v3 = vld [vmem:[%s11762_s23 + $0x88] sm:$0xff] }
 0x2c3   :  { %v8111_v56 = vpop.f32.mrf.mxu0  ;;  %11795 = vst [vmem:[#allocation138_spill] sm:$0xff] %v10253_v49  ;;  %v10256_v50 = vld [vmem:[%s11762_s23 + $0x130] sm:$0xff]  ;;  %11813 = vst [vmem:[#allocation156_spill] sm:$0xff] %v10323_v3  ;;  %v10334_v6 = vld [vmem:[%s11762_s23 + $0x108] sm:$0xff] }
 0x2c4   :  { %7410 = vmatmul.mubr.msk.bf16.vlgmr.msra.gmra.mxu0 %vm946_vm1, %v829_v53  ;;  %7412 = vmatmul.mubr.msk.bf16.vlgmr.msra.gmra.mxu1 %vm946_vm1, %v829_v53  ;;  %v8125_v8 = vpop.f32.mrf.mxu1  ;;  %11796 = vst [vmem:[#allocation139_spill] sm:$0xff] %v10256_v50  ;;  %v10269_v53 = vld [vmem:[%s11762_s23 + $0x28] sm:$0xff]  ;;  %11816 = vst [vmem:[#allocation159_spill] sm:$0xff] %v10334_v6 }
 0x2c5   :  { %1365 = vmatpush1.bf16.msra.mxu0 %v8678_v51  ;;  %1418 = vmatpush1.bf16.msra.mxu1 %v8681_v52  ;;  %v719_v61 = vpop.f32.mrf.mxu0  ;;  %v10261_v51 = vld [vmem:[%s11762_s23 + $0xa8] sm:$0xff]  ;;  %11799 = vst [vmem:[#allocation142_spill] sm:$0xff] %v10269_v53 }
 0x2c6   :  { %1366 = vmatprep.subr.bf16.mxu0 %v8686_v54  ;;  %1419 = vmatprep.subr.bf16.mxu1 %v8689_v55  ;;  %v830_v0 = vpack.c.bf16 %v8111_v56, %v719_v61  ;;  %v820_v9 = vpop.f32.mrf.mxu1  ;;  %11797 = vst [vmem:[#allocation140_spill] sm:$0xff] %v10261_v51  ;;  %v10264_v52 = vld [vmem:[%s11762_s23 + $0x1a8] sm:$0xff]  ;;  %v10277_v55 = vld [vmem:[%s11762_s23 + $0xa0] sm:$0xff]  ;;  %v10301_v61 = vld [vmem:[%s11762_s23 + $0x18] sm:$0xff] }
 0x2c7   :  { %1187 = vmatprep.mubr.bf16.mxu0 %v9698_v22  ;;  %1240 = vmatprep.mubr.bf16.mxu1 %v9698_v22  ;;  %v1252_v10 = vpack.c.bf16 %v8125_v8, %v820_v9  ;;  %11798 = vst [vmem:[#allocation141_spill] sm:$0xff] %v10264_v52  ;;  %v10272_v54 = vld [vmem:[%s11762_s23 + $0x128] sm:$0xff]  ;;  %11801 = vst [vmem:[#allocation144_spill] sm:$0xff] %v10277_v55  ;;  %v10280_v56 = vld [vmem:[%s11762_s23 + $0x1a0] sm:$0xff] }
 0x2c8   :  { %11800 = vst [vmem:[#allocation143_spill] sm:$0xff] %v10272_v54  ;;  %11802 = vst [vmem:[#allocation145_spill] sm:$0xff] %v10280_v56  ;;  %v10342_v8 = vld [vmem:[%s11762_s23 + $0x180] sm:$0xff] }
 0x2c9   :  { %1367 = vmatpush1.bf16.msra.mxu0 %v8684_v57  ;;  %1420 = vmatpush1.bf16.msra.mxu1 %v8687_v58  ;;  %v10285_v57 = vld [vmem:[%s11762_s23 + $0x20] sm:$0xff]  ;;  %11807 = vst [vmem:[#allocation150_spill] sm:$0xff] %v10301_v61  ;;  %11818 = vst [vmem:[#allocation161_spill] sm:$0xff] %v10342_v8 }
 0x2ca   :  { %1368 = vmatprep.subr.bf16.mxu0 %v8692_v59  ;;  %1421 = vmatprep.subr.bf16.mxu1 %v8695_v60  ;;  %11803 = vst [vmem:[#allocation146_spill] sm:$0xff] %v10285_v57  ;;  %v10288_v58 = vld [vmem:[%s11762_s23 + $0x120] sm:$0xff]  ;;  %v10293_v59 = vld [vmem:[%s11762_s23 + $0x98] sm:$0xff] }
 0x2cb   :  { %11804 = vst [vmem:[#allocation147_spill] sm:$0xff] %v10288_v58  ;;  %11805 = vst [vmem:[#allocation148_spill] sm:$0xff] %v10293_v59  ;;  %v10296_v60 = vld [vmem:[%s11762_s23 + $0x198] sm:$0xff]  ;;  %v10345_v9 = vld [vmem:[%s11762_s23] sm:$0xff] }
 0x2cc   :  { %7411 = vmatmul.mubr.msk.bf16.gmra.mxu0 %vm946_vm1, %v830_v0  ;;  %7413 = vmatmul.mubr.msk.bf16.gmra.mxu1 %vm946_vm1, %v830_v0  ;;  %11806 = vst [vmem:[#allocation149_spill] sm:$0xff] %v10296_v60  ;;  %v10312_v0 = vld [vmem:[%s11762_s23 + $0x190] sm:$0xff]  ;;  %11819 = vst [vmem:[#allocation162_spill] sm:$0xff] %v10345_v9 }
 0x2cd   :  { %1369 = vmatpush1.bf16.msra.mxu0 %v8690_v62  ;;  %1422 = vmatpush1.bf16.msra.mxu1 %v8693_v63  ;;  %v10304_v62 = vld [vmem:[%s11762_s23 + $0x118] sm:$0xff]  ;;  %v10309_v63 = vld [vmem:[%s11762_s23 + $0x90] sm:$0xff]  ;;  %11810 = vst [vmem:[#allocation153_spill] sm:$0xff] %v10312_v0 }
 0x2ce   :  { %1370 = vmatprep.subr.bf16.mxu0 %v8698_v1  ;;  %1423 = vmatprep.subr.bf16.mxu1 %v8701_v2  ;;  %11808 = vst [vmem:[#allocation151_spill] sm:$0xff] %v10304_v62  ;;  %11809 = vst [vmem:[#allocation152_spill] sm:$0xff] %v10309_v63  ;;  %v10317_v1 = vld [vmem:[%s11762_s23 + $0x10] sm:$0xff] }
 0x2cf   :  { %1388 = vmatprep.mubr.bf16.mxu0 %v9698_v22  ;;  %1441 = vmatprep.mubr.bf16.mxu1 %v9698_v22  ;;  %11811 = vst [vmem:[#allocation154_spill] sm:$0xff] %v10317_v1  ;;  %v10320_v2 = vld [vmem:[%s11762_s23 + $0x110] sm:$0xff] }
 0x2d0   :  { %11812 = vst [vmem:[#allocation155_spill] sm:$0xff] %v10320_v2 }
 0x2d1   :  { %1371 = vmatpush1.bf16.msra.mxu0 %v8696_v4  ;;  %1424 = vmatpush1.bf16.msra.mxu1 %v8699_v5  ;;  %v10328_v4 = vld [vmem:[%s11762_s23 + $0x188] sm:$0xff] }
 0x2d2   :  { %7631 = vmatprep.subr.mxu0 %v10101_v11  ;;  %7666 = vmatprep.subr.mxu1 %v10104_v12  ;;  %11814 = vst [vmem:[#allocation157_spill] sm:$0xff] %v10328_v4  ;;  %v10331_v5 = vld [vmem:[%s11762_s23 + $0x8] sm:$0xff] }
 0x2d3   :  { %11815 = vst [vmem:[#allocation158_spill] sm:$0xff] %v10331_v5 }
 0x2d4   :  { %7430 = vmatmul.mubr.msk.bf16.vlgmr.msra.gmra.mxu0 %vm946_vm1, %v1251_v7  ;;  %7432 = vmatmul.mubr.msk.bf16.vlgmr.msra.gmra.mxu1 %vm946_vm1, %v1251_v7  ;;  %v10339_v7 = vld [vmem:[%s11762_s23 + $0x80] sm:$0xff] }
 0x2d5   :  { %1398 = vmatprep.mubr.bf16.mxu0 %v9698_v22  ;;  %1451 = vmatprep.mubr.bf16.mxu1 %v9698_v22  ;;  %v10144_v22 = vld [vmem:[%s11762_s23 + $0x168] sm:$0xff]  ;;  %11817 = vst [vmem:[#allocation160_spill] sm:$0xff] %v10339_v7 }
 0x2d6   :  { %7632 = vmatpush3.msra.mxu0 %v10109_v13  ;;  %7667 = vmatpush3.msra.mxu1 %v10112_v14  ;;  %11768 = vst [vmem:[#allocation111_spill] sm:$0xff] %v10144_v22 }
 0x2d7   :  { %7633 = vmatprep.subr.mxu0 %v10117_v15  ;;  %7668 = vmatprep.subr.mxu1 %v10120_v16 }
 0x2d8   :  { %7634 = vmatpush3.msra.mxu0 %v10125_v17  ;;  %7669 = vmatpush3.msra.mxu1 %v10128_v18 }
 0x2d9   :  { %7635 = vmatprep.subr.mxu0 %v10133_v19  ;;  %7670 = vmatprep.subr.mxu1 %v10136_v20 }
 0x2da   :  { %7636 = vmatpush3.msra.mxu0 %v10141_v21  ;;  %7671 = vmatpush3.msra.mxu1 %v10144_v22 }
 0x2db   :  { %7637 = vmatprep.subr.mxu0 %v10149_v23  ;;  %7672 = vmatprep.subr.mxu1 %v10152_v24 }
 0x2dc   :  { %7431 = vmatmul.mubr.msk.bf16.gmra.mxu0 %vm946_vm1, %v1252_v10  ;;  %7433 = vmatmul.mubr.msk.bf16.gmra.mxu1 %vm946_vm1, %v1252_v10  ;;  %v10352_v10 = vld [vmem:[%s11762_s23 + $0x100] sm:$0xff] }
 0x2dd   :  { %7638 = vmatpush3.msra.mxu0 %v10157_v25  ;;  %7673 = vmatpush3.msra.mxu1 %v10160_v26  ;;  %11820 = vst [vmem:[#allocation163_spill] sm:$0xff] %v10352_v10 }
 0x2de   :  { %7639 = vmatprep.subr.mxu0 %v10165_v27  ;;  %7674 = vmatprep.subr.mxu1 %v10168_v28 }
 0x2df   :  { %7640 = vmatpush3.msra.mxu0 %v10173_v29  ;;  %7675 = vmatpush3.msra.mxu1 %v10176_v30 }
 0x2e0   :  { %7641 = vmatprep.subr.mxu0 %v10181_v31  ;;  %7676 = vmatprep.subr.mxu1 %v10184_v32 }
 0x2e1   :  { %7642 = vmatpush3.msra.mxu0 %v10189_v33  ;;  %7677 = vmatpush3.msra.mxu1 %v10192_v34 }
 0x2e2   :  { %7643 = vmatprep.subr.mxu0 %v10197_v35  ;;  %7678 = vmatprep.subr.mxu1 %v10200_v36 }
 0x2e3   :  { %7644 = vmatpush3.msra.mxu0 %v10205_v37  ;;  %7679 = vmatpush3.msra.mxu1 %v10208_v38  ;;  %v1478_v37 = vld [vmem:[#allocation5] sm:$0xf] }
 0x2e4   :  { %7645 = vmatprep.subr.mxu0 %v10213_v39  ;;  %7680 = vmatprep.subr.mxu1 %v10216_v40 }
 0x2e5   :  { %7646 = vmatpush3.msra.mxu0 %v10221_v41  ;;  %7681 = vmatpush3.msra.mxu1 %v10224_v42 }
 0x2e6   :  { %7647 = vmatprep.subr.mxu0 %v10229_v43  ;;  %7682 = vmatprep.subr.mxu1 %v10232_v44 }
 0x2e7   :  { %7648 = vmatpush3.msra.mxu0 %v10237_v45  ;;  %7683 = vmatpush3.msra.mxu1 %v10240_v46 }
 0x2e8   :  { %7649 = vmatprep.subr.mxu0 %v10245_v47  ;;  %7684 = vmatprep.subr.mxu1 %v10248_v48 }
 0x2e9   :  { %7650 = vmatpush3.msra.mxu0 %v10253_v49  ;;  %7685 = vmatpush3.msra.mxu1 %v10256_v50  ;;  %v1480_v50 = vlaneseq }
 0x2ea   :  { %7651 = vmatprep.subr.mxu0 %v10261_v51  ;;  %7686 = vmatprep.subr.mxu1 %v10264_v52 }
 0x2eb   :  { %7652 = vmatpush3.msra.mxu0 %v10269_v53  ;;  %7687 = vmatpush3.msra.mxu1 %v10272_v54  ;;  %v10356_v45 = vshrl.u32 %v1480_v50, 7 }
 0x2ec   :  { %7653 = vmatprep.subr.mxu0 %v10277_v55  ;;  %7688 = vmatprep.subr.mxu1 %v10280_v56 }
 0x2ed   :  { %7654 = vmatpush3.msra.mxu0 %v10285_v57  ;;  %7689 = vmatpush3.msra.mxu1 %v10288_v58  ;;  %11821 = vst [vmem:[#allocation164_spill] sm:$0xff] %v10356_v45  ;;  %v10359_v40 = vsub.s32 0, %v10356_v45  ;;  %v10362_v39 = vsub.s32 2, %v10356_v45  ;;  %v10365_v35 = vsub.s32 1, %v10356_v45  ;;  %v10368_v34 = vsub.s32 3, %v10356_v45 }
 0x2ee   :  { %7655 = vmatprep.subr.mxu0 %v10293_v59  ;;  %7690 = vmatprep.subr.mxu1 %v10296_v60 }
 0x2ef   :  { %7656 = vmatpush3.msra.mxu0 %v10301_v61  ;;  %7691 = vmatpush3.msra.mxu1 %v10304_v62  ;;  %11822 = vst [vmem:[#allocation165_spill] sm:$0xff] %v10359_v40  ;;  %11823 = vst [vmem:[#allocation166_spill] sm:$0xff] %v10362_v39  ;;  %v1483_v30 = vrot.slane %v1478_v37, %v10359_v40  ;;  %v1491_v29 = vrot.slane %v1478_v37, %v10362_v39 }
 0x2f0   :  { %7657 = vmatprep.subr.mxu0 %v10309_v63  ;;  %7692 = vmatprep.subr.mxu1 %v10312_v0  ;;  %11824 = vst [vmem:[#allocation167_spill] sm:$0xff] %v10365_v35  ;;  %11825 = vst [vmem:[#allocation168_spill] sm:$0xff] %v10368_v34  ;;  %v10373_v26 = vrot.slane %v1478_v37, %v10365_v35  ;;  %v10376_v25 = vrot.slane %v1478_v37, %v10368_v34 }
 0x2f1   :  { %7658 = vmatpush3.msra.mxu0 %v10317_v1  ;;  %7693 = vmatpush3.msra.mxu1 %v10320_v2 }
 0x2f2   :  { %7659 = vmatprep.subr.mxu0 %v10323_v3  ;;  %7694 = vmatprep.subr.mxu1 %v10328_v4  ;;  %v987_v4 = vpop.f32.mrf.mxu0  ;;  %v1040_v3 = vpop.f32.mrf.mxu1 }
 0x2f3   :  { %7660 = vmatpush3.msra.mxu0 %v10331_v5  ;;  %7695 = vmatpush3.msra.mxu1 %v10334_v6 }
 0x2f4   :  { %7661 = vmatprep.subr.mxu0 %v10339_v7  ;;  %7696 = vmatprep.subr.mxu1 %v10342_v8  ;;  %v989_v2 = vpop.f32.mrf.mxu0  ;;  %v1042_v1 = vpop.f32.mrf.mxu1 }
 0x2f5   :  { %7662 = vmatpush3.msra.mxu0 %v10345_v9  ;;  %7697 = vmatpush3.msra.mxu1 %v10352_v10 }
 0x2f6   :  { %v991_v0 = vpop.f32.mrf.mxu0  ;;  %v1044_v63 = vpop.f32.mrf.mxu1 }
 0x2f8   :  { %v993_v62 = vpop.f32.mrf.mxu0  ;;  %v1046_v5 = vpop.f32.mrf.mxu1 }
 0x2fa   :  { %v997_v61 = vpop.f32.mrf.mxu0  ;;  %v1050_v6 = vpop.f32.mrf.mxu1 }
 0x2fc   :  { %v999_v60 = vpop.f32.mrf.mxu0  ;;  %v1052_v7 = vpop.f32.mrf.mxu1 }
 0x2fe   :  { %v1001_v59 = vpop.f32.mrf.mxu0  ;;  %v1054_v8 = vpop.f32.mrf.mxu1 }
 0x300   :  { %v1003_v58 = vpop.f32.mrf.mxu0  ;;  %v1056_v57 = vpop.f32.mrf.mxu1 }
 0x384   :  { %v1179_v56 = vpop.f32.mrf.mxu0  ;;  %v1232_v9 = vpop.f32.mrf.mxu1 }
 0x385   :  { %v1180_v28 = vadd.f32 %v1179_v56, %v987_v4  ;;  %v1233_v27 = vadd.f32 %v1232_v9, %v1040_v3 }
 0x386   :  { %v1181_v55 = vpop.f32.mrf.mxu0  ;;  %v1234_v10 = vpop.f32.mrf.mxu1 }
 0x387   :  { %v1182_v45 = vadd.f32 %v1181_v55, %v989_v2  ;;  %v1235_v22 = vadd.f32 %v1234_v10, %v1042_v1 }
 0x388   :  { %v1183_v54 = vpop.f32.mrf.mxu0  ;;  %v1236_v53 = vpop.f32.mrf.mxu1 }
 0x389   :  { %v1184_v32 = vadd.f32 %v1183_v54, %v991_v0  ;;  %v1237_v31 = vadd.f32 %v1236_v53, %v1044_v63 }
 0x38a   :  { %v1185_v52 = vpop.f32.mrf.mxu0  ;;  %v1238_v51 = vpop.f32.mrf.mxu1 }
 0x38b   :  { %v1186_v54 = vadd.f32 %v1185_v52, %v993_v62  ;;  %v1239_v53 = vadd.f32 %v1238_v51, %v1046_v5 }
 0x38c   :  { %v1189_v49 = vpop.f32.mrf.mxu0  ;;  %v1242_v48 = vpop.f32.mrf.mxu1 }
 0x38d   :  { %v1190_v63 = vadd.f32 %v1189_v49, %v997_v61  ;;  %v1243_v0 = vadd.f32 %v1242_v48, %v1050_v6 }
 0x38e   :  { %v1191_v47 = vpop.f32.mrf.mxu0  ;;  %v1244_v46 = vpop.f32.mrf.mxu1 }
 0x38f   :  { %v1192_v56 = vadd.f32 %v1191_v47, %v999_v60  ;;  %v1245_v3 = vadd.f32 %v1244_v46, %v1052_v7 }
 0x390   :  { %v1193_v44 = vpop.f32.mrf.mxu0  ;;  %v1246_v43 = vpop.f32.mrf.mxu1 }
 0x391   :  { %v1194_v35 = vadd.f32 %v1193_v44, %v1001_v59  ;;  %v1247_v19 = vadd.f32 %v1246_v43, %v1054_v8 }
 0x392   :  { %v1195_v42 = vpop.f32.mrf.mxu0  ;;  %v1248_v41 = vpop.f32.mrf.mxu1 }
 0x393   :  { %v1196_v55 = vadd.f32 %v1195_v42, %v1003_v58  ;;  %v1249_v1 = vadd.f32 %v1248_v41, %v1056_v57 }
 0x394   :  { %v1390_v38 = vpop.f32.mrf.mxu0  ;;  %v1443_v36 = vpop.f32.mrf.mxu1 }
 0x395   :  { %v1462_v4 = vadd.f32 %v1390_v38, %v1180_v28  ;;  %v1464_v9 = vadd.f32 %v1443_v36, %v1233_v27 }
 0x396   :  { %v1392_v50 = vpop.f32.mrf.mxu0  ;;  %v1445_v33 = vpop.f32.mrf.mxu1 }
 0x397   :  { %v10382_v28 = vadd.f32 %v1483_v30, %v1462_v4  ;;  %v10384_v27 = vadd.f32 %v1491_v29, %v1464_v9 }
 0x398   :  { %v1394_v24 = vpop.f32.mrf.mxu0  ;;  %v1447_v23 = vpop.f32.mrf.mxu1 }
 0x399   :  { %v1466_v21 = vadd.f32 %v1394_v24, %v1184_v32  ;;  %v1468_v20 = vadd.f32 %v1447_v23, %v1237_v31  ;;  %v1463_v31 = vadd.f32 %v1392_v50, %v1182_v45  ;;  %v1465_v32 = vadd.f32 %v1445_v33, %v1235_v22 }
 0x39a   :  { %v1396_v40 = vpop.f32.mrf.mxu0  ;;  %v1449_v39 = vpop.f32.mrf.mxu1 }
 0x39b   :  { %v1467_v37 = vadd.f32 %v1396_v40, %v1186_v54  ;;  %v1469_v34 = vadd.f32 %v1449_v39, %v1239_v53  ;;  %v10378_v24 = vadd.f32 %v1483_v30, %v1466_v21  ;;  %v10380_v23 = vadd.f32 %v1491_v29, %v1468_v20 }
 0x39c   :  { %v1400_v18 = vpop.f32.mrf.mxu0  ;;  %v1453_v17 = vpop.f32.mrf.mxu1  ;;  %v10401_v43 = vadd.f32 %v10373_v26, %v1463_v31 }
 0x39d   :  { %v1470_v48 = vadd.f32 %v1400_v18, %v1190_v63  ;;  %v1472_v49 = vadd.f32 %v1453_v17, %v1243_v0  ;;  %v10387_v39 = vadd.f32 %v10373_v26, %v1467_v37  ;;  %v10390_v21 = vadd.f32 %v10376_v25, %v1469_v34 }
 0x39e   :  { %v1402_v47 = vpop.f32.mrf.mxu0  ;;  %v1455_v46 = vpop.f32.mrf.mxu1  ;;  %v1516_v22 = vadd.f32 %v10378_v24, %v10382_v28  ;;  %v1534_v33 = vadd.f32 %v10380_v23, %v10384_v27  ;;  %v10404_v34 = vadd.f32 %v10376_v25, %v1465_v32 }
 0x39f   :  { %v1471_v36 = vadd.f32 %v1402_v47, %v1192_v56  ;;  %v1473_v38 = vadd.f32 %v1455_v46, %v1245_v3  ;;  %v10392_v20 = vadd.f32 %v1483_v30, %v1470_v48  ;;  %v10394_v40 = vadd.f32 %v1491_v29, %v1472_v49 }
 0x3a0   :  { %v1404_v18 = vpop.f32.mrf.mxu0  ;;  %v1457_v17 = vpop.f32.mrf.mxu1  ;;  %v1525_v59 = vadd.f32 %v10387_v39, %v10401_v43  ;;  %v1543_v60 = vadd.f32 %v10390_v21, %v10404_v34 }
 0x3a1   :  { %v1474_v41 = vadd.f32 %v1404_v18, %v1194_v35  ;;  %v1476_v42 = vadd.f32 %v1457_v17, %v1247_v19  ;;  %v10407_v44 = vadd.f32 %v10373_v26, %v1471_v36  ;;  %v10410_v45 = vadd.f32 %v10376_v25, %v1473_v38 }
 0x3a2   :  { %v1406_v51 = vpop.f32.mrf.mxu0  ;;  %v1459_v52 = vpop.f32.mrf.mxu1  ;;  %v1517_v57 = vadd.f32 %v1516_v22, %v10392_v20  ;;  %v1535_v58 = vadd.f32 %v1534_v33, %v10394_v40  ;;  %v10434_v22 = vld [vmem:[#allocation10 + $0x68] sm:$0xff]  ;;  %v10436_v33 = vld [vmem:[#allocation10 + $0x78] sm:$0xff] }
 0x3a3   :  { %v10414_v35 = vadd.f32 %v1483_v30, %v1474_v41  ;;  %v10416_v19 = vadd.f32 %v1491_v29, %v1476_v42  ;;  %v1475_v61 = vadd.f32 %v1406_v51, %v1196_v55  ;;  %v1477_v62 = vadd.f32 %v1459_v52, %v1249_v1  ;;  %1800 = vmatprep.subr.mxu0 %v10434_v22  ;;  %v10440_v41 = vld [vmem:[#allocation10 + $0x60] sm:$0xff]  ;;  %v10442_v42 = vld [vmem:[#allocation10 + $0x70] sm:$0xff]  ;;  %v10446_v51 = vld [vmem:[#allocation10 + $0x48] sm:$0xff] }
 0x3a4   :  { %v1526_v6 = vadd.f32 %v1525_v59, %v10407_v44  ;;  %v1544_v7 = vadd.f32 %v1543_v60, %v10410_v45  ;;  %1871 = vmatprep.subr.mxu1 %v10436_v33  ;;  %v10448_v52 = vld [vmem:[#allocation10 + $0x58] sm:$0xff]  ;;  %v10458_v59 = vld [vmem:[#allocation10 + $0x28] sm:$0xff] }
 0x3a5   :  { %v1518_v2 = vadd.f32 %v1517_v57, %v10414_v35  ;;  %v1536_v5 = vadd.f32 %v1535_v58, %v10416_v19  ;;  %v10427_v30 = vadd.f32 %v10373_v26, %v1475_v61  ;;  %v10430_v29 = vadd.f32 %v10376_v25, %v1477_v62  ;;  %v10452_v57 = vld [vmem:[#allocation10 + $0x40] sm:$0xff]  ;;  %v10454_v58 = vld [vmem:[#allocation10 + $0x50] sm:$0xff]  ;;  %v10460_v60 = vld [vmem:[#allocation10 + $0x38] sm:$0xff] }
 0x3a6   :  { %v10464_v61 = vld [vmem:[#allocation10 + $0x20] sm:$0xff]  ;;  %v10466_v62 = vld [vmem:[#allocation10 + $0x30] sm:$0xff] }
 0x3a7   :  { %v1519_v8 = vrot.slane %v1518_v2, 4  ;;  %v1537_v10 = vrot.slane %v1536_v5, 4  ;;  %v1527_v50 = vadd.f32 %v1526_v6, %v10427_v30  ;;  %v1545_v54 = vadd.f32 %v1544_v7, %v10430_v29  ;;  %v10476_v6 = vld [vmem:[#allocation10] sm:$0xff]  ;;  %v10478_v7 = vld [vmem:[#allocation10 + $0x10] sm:$0xff] }
 0x3a9   :  { %v1520_v53 = vadd.f32 %v1519_v8, %v1518_v2  ;;  %v1538_v63 = vadd.f32 %v1537_v10, %v1536_v5  ;;  %v1528_v0 = vrot.slane %v1527_v50, 4  ;;  %v1546_v56 = vrot.slane %v1545_v54, 4  ;;  %v10470_v2 = vld [vmem:[#allocation10 + $0x8] sm:$0xff]  ;;  %v10472_v5 = vld [vmem:[#allocation10 + $0x18] sm:$0xff] }
 0x3aa   :  { %v9699_v8 = vmov 0.0  }
 0x3ab   :  { %v1521_v3 = vrot.slane %v1520_v53, 2  ;;  %v1539_v4 = vrot.slane %v1538_v63, 2  ;;  %v1529_v9 = vadd.f32 %v1528_v0, %v1527_v50  ;;  %v1547_v37 = vadd.f32 %v1546_v56, %v1545_v54 }
 0x3ad   :  { %v1522_v55 = vadd.f32 %v1521_v3, %v1520_v53  ;;  %v1540_v26 = vadd.f32 %v1539_v4, %v1538_v63  ;;  %v1530_v1 = vrot.slane %v1529_v9, 2  ;;  %v1548_v31 = vrot.slane %v1547_v37, 2  ;;  %v11828_v4 = vld [vmem:[#allocation108_spill] sm:$0xff] }
 0x3af   :  { %v1531_v25 = vadd.f32 %v1530_v1, %v1529_v9  ;;  %v1549_v32 = vadd.f32 %v1548_v31, %v1547_v37  ;;  %v1523_v48 = vrot.slane %v1522_v55, 1  ;;  %v1541_v49 = vrot.slane %v1540_v26, 1  ;;  %v11829_v9 = vld [vmem:[#allocation109_spill] sm:$0xff]  ;;  %v11830_v37 = vld [vmem:[#allocation110_spill] sm:$0xff] }
 0x3b0   :  { %v11837_v1 = vld [vmem:[#allocation117_spill] sm:$0xff]  ;;  %v11838_v31 = vld [vmem:[#allocation118_spill] sm:$0xff] }
 0x3b1   :  { %v1532_v47 = vrot.slane %v1531_v25, 1  ;;  %v1550_v46 = vrot.slane %v1549_v32, 1  ;;  %v1524_v18 = vadd.f32 %v1523_v48, %v1522_v55  ;;  %v1542_v17 = vadd.f32 %v1541_v49, %v1540_v26  ;;  %v11831_v55 = vld [vmem:[#allocation111_spill] sm:$0xff]  ;;  %v11832_v26 = vld [vmem:[#allocation112_spill] sm:$0xff]  ;;  %v11841_v48 = vld [vmem:[#allocation121_spill] sm:$0xff] }
 0x3b2   :  { %v11842_v49 = vld [vmem:[#allocation122_spill] sm:$0xff] }
 0x3b3   :  { %v1533_v36 = vadd.f32 %v1532_v47, %v1531_v25  ;;  %v1551_v38 = vadd.f32 %v1550_v46, %v1549_v32  ;;  %v11839_v25 = vld [vmem:[#allocation119_spill] sm:$0xff]  ;;  %v11840_v32 = vld [vmem:[#allocation120_spill] sm:$0xff] }
 0x3b4   :  { %v11843_v47 = vld [vmem:[#allocation123_spill] sm:$0xff]  ;;  %v11844_v46 = vld [vmem:[#allocation124_spill] sm:$0xff] }
 0x3b5   :  { %1680 = vmatprep.mubr.f32.mxu0 %v1533_v36  ;;  %1750 = vmatprep.mubr.f32.mxu1 %v1551_v38  ;;  %v11845_v36 = vld [vmem:[#allocation125_spill] sm:$0xff]  ;;  %v11846_v38 = vld [vmem:[#allocation126_spill] sm:$0xff] }
 0x3b6   :  { %1681 = vmatmul.mubr.f32.vlgmr.msra.gmra.mxu0 %v1524_v18  ;;  %1751 = vmatmul.mubr.f32.vlgmr.msra.gmra.mxu1 %v1542_v17  ;;  %v11847_v18 = vld [vmem:[#allocation127_spill] sm:$0xff]  ;;  %v11848_v17 = vld [vmem:[#allocation128_spill] sm:$0xff] }
 0x3b7   :  { %1801 = vmatpush1.msra.mxu0 %v10440_v41  ;;  %1872 = vmatpush1.msra.mxu1 %v10442_v42 }
 0x3b8   :  { %1802 = vmatprep.subr.mxu0 %v10446_v51  ;;  %1873 = vmatprep.subr.mxu1 %v10448_v52 }
 0x3b9   :  { %1803 = vmatpush1.msra.mxu0 %v10452_v57  ;;  %1874 = vmatpush1.msra.mxu1 %v10454_v58 }
 0x3ba   :  { %1804 = vmatprep.subr.mxu0 %v10458_v59  ;;  %1875 = vmatprep.subr.mxu1 %v10460_v60 }
 0x3bb   :  { %1805 = vmatpush1.msra.mxu0 %v10464_v61  ;;  %1876 = vmatpush1.msra.mxu1 %v10466_v62 }
 0x3bc   :  { %1806 = vmatprep.subr.mxu0 %v10470_v2  ;;  %1877 = vmatprep.subr.mxu1 %v10472_v5 }
 0x3bd   :  { %1807 = vmatpush1.msra.mxu0 %v10476_v6  ;;  %1840 = vmatprep.mubr.f32.mxu0 %v9699_v8 }
 0x3be   :  { %1878 = vmatpush1.msra.mxu1 %v10478_v7  ;;  %1911 = vmatprep.mubr.f32.mxu1 %v9699_v8 }
 0x3bf   :  { %7701 = vmatprep.subr.mxu0 %v10101_v11  ;;  %7736 = vmatprep.subr.mxu1 %v10104_v12  ;;  %v11826_v11 = vld [vmem:[#allocation106_spill] sm:$0xff]  ;;  %v11827_v12 = vld [vmem:[#allocation107_spill] sm:$0xff] }
 0x476   :  { %v7663_v10 = vpop.f32.mrf.mxu0  ;;  %v7698_v50 = vpop.f32.mrf.mxu1 }
 0x478   :  { %v7664_v54 = vpop.f32.mrf.mxu0  ;;  %v7699_v53 = vpop.f32.mrf.mxu1 }
 0x479   :  { %v7665_v63 = vadd.f32 %v7664_v54, %v7663_v10  ;;  %v7700_v0 = vadd.f32 %v7699_v53, %v7698_v50  ;;  %v11849_v10 = vld [vmem:[#allocation129_spill] sm:$0xff]  ;;  %v11850_v50 = vld [vmem:[#allocation130_spill] sm:$0xff]  ;;  %v11851_v54 = vld [vmem:[#allocation131_spill] sm:$0xff] }
 0x47a   :  { %v11852_v53 = vld [vmem:[#allocation132_spill] sm:$0xff] }
 0x47b   :  { %v1753_v56 = vadd.f32 %v7700_v0, %v7665_v63  ;;  %v11853_v63 = vld [vmem:[#allocation133_spill] sm:$0xff]  ;;  %v11854_v0 = vld [vmem:[#allocation134_spill] sm:$0xff] }
 0x47d   :  { %v1756_v3 = vmul.f32 0.001953125, %v1753_v56  ;;  %v11855_v56 = vld [vmem:[#allocation135_spill] sm:$0xff] }
 0x47f   :  { %7434 = vmatmul.mubr.msk.f32.vlgmr.msra.gmra.mxu0 %vm630_vm0, %v1756_v3  ;;  %7435 = vmatmul.mubr.msk.f32.vlgmr.msra.gmra.mxu1 %vm630_vm0, %v1756_v3  ;;  %v11856_v3 = vld [vmem:[#allocation136_spill] sm:$0xff] }
 0x480   :  { %7702 = vmatpush3.msra.mxu0 %v10109_v13  ;;  %7737 = vmatpush3.msra.mxu1 %v10112_v14  ;;  %v11833_v13 = vld [vmem:[#allocation113_spill] sm:$0xff]  ;;  %v11834_v14 = vld [vmem:[#allocation114_spill] sm:$0xff] }
 0x481   :  { %7703 = vmatprep.subr.mxu0 %v10117_v15  ;;  %7738 = vmatprep.subr.mxu1 %v10120_v16  ;;  %v11835_v15 = vld [vmem:[#allocation115_spill] sm:$0xff]  ;;  %v11836_v16 = vld [vmem:[#allocation116_spill] sm:$0xff] }
 0x482   :  { %7704 = vmatpush3.msra.mxu0 %v11826_v11  ;;  %7739 = vmatpush3.msra.mxu1 %v11827_v12  ;;  %v11857_v11 = vld [vmem:[#allocation137_spill] sm:$0xff]  ;;  %v11858_v12 = vld [vmem:[#allocation138_spill] sm:$0xff] }
 0x483   :  { %7705 = vmatprep.subr.mxu0 %v11828_v4  ;;  %7740 = vmatprep.subr.mxu1 %v11829_v9  ;;  %v11859_v4 = vld [vmem:[#allocation139_spill] sm:$0xff]  ;;  %v11860_v9 = vld [vmem:[#allocation140_spill] sm:$0xff] }
 0x484   :  { %7706 = vmatpush3.msra.mxu0 %v11830_v37  ;;  %7741 = vmatpush3.msra.mxu1 %v11831_v55  ;;  %v11861_v37 = vld [vmem:[#allocation141_spill] sm:$0xff]  ;;  %v11862_v55 = vld [vmem:[#allocation142_spill] sm:$0xff] }
 0x485   :  { %7707 = vmatprep.subr.mxu0 %v11832_v26  ;;  %7742 = vmatprep.subr.mxu1 %v11833_v13  ;;  %v11863_v26 = vld [vmem:[#allocation143_spill] sm:$0xff]  ;;  %v11864_v13 = vld [vmem:[#allocation144_spill] sm:$0xff] }
 0x486   :  { %7708 = vmatpush3.msra.mxu0 %v11834_v14  ;;  %7743 = vmatpush3.msra.mxu1 %v11835_v15  ;;  %v11865_v14 = vld [vmem:[#allocation145_spill] sm:$0xff]  ;;  %v11866_v15 = vld [vmem:[#allocation146_spill] sm:$0xff] }
 0x487   :  { %7709 = vmatprep.subr.mxu0 %v11836_v16  ;;  %7744 = vmatprep.subr.mxu1 %v11837_v1  ;;  %v11867_v16 = vld [vmem:[#allocation147_spill] sm:$0xff]  ;;  %v11868_v1 = vld [vmem:[#allocation148_spill] sm:$0xff] }
 0x488   :  { %7710 = vmatpush3.msra.mxu0 %v11838_v31  ;;  %7745 = vmatpush3.msra.mxu1 %v11839_v25  ;;  %v11869_v31 = vld [vmem:[#allocation149_spill] sm:$0xff]  ;;  %v11870_v25 = vld [vmem:[#allocation150_spill] sm:$0xff] }
 0x489   :  { %7711 = vmatprep.subr.mxu0 %v11840_v32  ;;  %7746 = vmatprep.subr.mxu1 %v11841_v48  ;;  %v11871_v32 = vld [vmem:[#allocation151_spill] sm:$0xff]  ;;  %v11872_v48 = vld [vmem:[#allocation152_spill] sm:$0xff] }
 0x48a   :  { %7712 = vmatpush3.msra.mxu0 %v11842_v49  ;;  %7747 = vmatpush3.msra.mxu1 %v11843_v47  ;;  %v11873_v49 = vld [vmem:[#allocation153_spill] sm:$0xff]  ;;  %v11874_v47 = vld [vmem:[#allocation154_spill] sm:$0xff] }
 0x48b   :  { %7713 = vmatprep.subr.mxu0 %v11844_v46  ;;  %7748 = vmatprep.subr.mxu1 %v11845_v36  ;;  %v11875_v46 = vld [vmem:[#allocation155_spill] sm:$0xff]  ;;  %v11876_v36 = vld [vmem:[#allocation156_spill] sm:$0xff] }
 0x48c   :  { %7714 = vmatpush3.msra.mxu0 %v11846_v38  ;;  %7749 = vmatpush3.msra.mxu1 %v11847_v18  ;;  %v11877_v38 = vld [vmem:[#allocation157_spill] sm:$0xff]  ;;  %v11878_v18 = vld [vmem:[#allocation158_spill] sm:$0xff] }
 0x48d   :  { %7715 = vmatprep.subr.mxu0 %v11848_v17  ;;  %7750 = vmatprep.subr.mxu1 %v11849_v10  ;;  %v11879_v17 = vld [vmem:[#allocation159_spill] sm:$0xff]  ;;  %v11880_v10 = vld [vmem:[#allocation160_spill] sm:$0xff] }
 0x48e   :  { %7716 = vmatpush3.msra.mxu0 %v11850_v50  ;;  %7751 = vmatpush3.msra.mxu1 %v11851_v54  ;;  %v11881_v50 = vld [vmem:[#allocation161_spill] sm:$0xff]  ;;  %v11882_v54 = vld [vmem:[#allocation162_spill] sm:$0xff] }
 0x48f   :  { %7717 = vmatprep.subr.mxu0 %v11852_v53  ;;  %7752 = vmatprep.subr.mxu1 %v11853_v63  ;;  %v11883_v53 = vld [vmem:[#allocation163_spill] sm:$0xff] }
 0x490   :  { %7718 = vmatpush3.msra.mxu0 %v11854_v0  ;;  %7753 = vmatpush3.msra.mxu1 %v11855_v56  ;;  %v11884_v56 = vld [vmem:[#allocation165_spill] sm:$0xff] }
 0x491   :  { %7719 = vmatprep.subr.mxu0 %v11856_v3  ;;  %7754 = vmatprep.subr.mxu1 %v11857_v11 }
 0x492   :  { %7720 = vmatpush3.msra.mxu0 %v11858_v12  ;;  %7755 = vmatpush3.msra.mxu1 %v11859_v4 }
 0x493   :  { %7721 = vmatprep.subr.mxu0 %v11860_v9  ;;  %7756 = vmatprep.subr.mxu1 %v11861_v37 }
 0x494   :  { %7722 = vmatpush3.msra.mxu0 %v11862_v55  ;;  %7757 = vmatpush3.msra.mxu1 %v11863_v26 }
 0x495   :  { %7723 = vmatprep.subr.mxu0 %v11864_v13  ;;  %7758 = vmatprep.subr.mxu1 %v11865_v14 }
 0x496   :  { %7724 = vmatpush3.msra.mxu0 %v11866_v15  ;;  %7759 = vmatpush3.msra.mxu1 %v11867_v16 }
 0x497   :  { %7725 = vmatprep.subr.mxu0 %v11868_v1  ;;  %7760 = vmatprep.subr.mxu1 %v11869_v31 }
 0x498   :  { %7726 = vmatpush3.msra.mxu0 %v11870_v25  ;;  %7761 = vmatpush3.msra.mxu1 %v11871_v32 }
 0x499   :  { %7727 = vmatprep.subr.mxu0 %v11872_v48  ;;  %7762 = vmatprep.subr.mxu1 %v11873_v49 }
 0x49a   :  { %7728 = vmatpush3.msra.mxu0 %v11874_v47  ;;  %7763 = vmatpush3.msra.mxu1 %v11875_v46 }
 0x49b   :  { %7729 = vmatprep.subr.mxu0 %v11876_v36  ;;  %7764 = vmatprep.subr.mxu1 %v11877_v38 }
 0x49c   :  { %7730 = vmatpush3.msra.mxu0 %v11878_v18  ;;  %7765 = vmatpush3.msra.mxu1 %v11879_v17 }
 0x49d   :  { %7731 = vmatprep.subr.mxu0 %v11880_v10  ;;  %7766 = vmatprep.subr.mxu1 %v11881_v50 }
 0x49e   :  { %7732 = vmatpush3.msra.mxu0 %v11882_v54  ;;  %7767 = vmatpush3.msra.mxu1 %v11883_v53 }
 0x49f   :  { %2172 = vmatprep.subr.mxu0 %v10434_v22  ;;  %2243 = vmatprep.subr.mxu1 %v10436_v33 }
 0x53f   :  { %v1842_v63 = vpop.f32.mrf.mxu0  ;;  %v1913_v0 = vpop.f32.mrf.mxu1 }
 0x540   :  { %v1921_v3 = vrot.slane %v1842_v63, %v11884_v56  ;;  %v1929_v11 = vrot.slane %v1913_v0, %v11884_v56 }
 0x541   :  { %v1915_v26 = vpop.f32.mrf.mxu1 }
 0x542   :  { %v10555_v12 = vsub.f32 %v10382_v28, %v1921_v3  ;;  %v10558_v4 = vsub.f32 %v10378_v24, %v1921_v3  ;;  %v10561_v9 = vsub.f32 %v10392_v20, %v1921_v3  ;;  %v10564_v37 = vsub.f32 %v10414_v35, %v1921_v3  ;;  %v1844_v24 = vpop.f32.mrf.mxu0 }
 0x543   :  { %v10567_v22 = vsub.f32 %v10384_v27, %v1929_v11  ;;  %v10570_v33 = vsub.f32 %v10380_v23, %v1929_v11  ;;  %v10573_v55 = vsub.f32 %v10394_v40, %v1929_v11  ;;  %v10576_v28 = vsub.f32 %v10416_v19, %v1929_v11 }
 0x544   :  { %v1950_v20 = vmul.f32 %v10555_v12, %v10555_v12  ;;  %v1954_v35 = vmul.f32 %v10558_v4, %v10558_v4  ;;  %v1958_v40 = vmul.f32 %v10561_v9, %v10561_v9  ;;  %v1925_v19 = vrot.slane %v1844_v24, %v11884_v56 }
 0x545   :  { %v1952_v27 = vmul.f32 %v10567_v22, %v10567_v22  ;;  %v1956_v23 = vmul.f32 %v10570_v33, %v10570_v33  ;;  %v1933_v14 = vrot.slane %v1915_v26, %v11884_v56  ;;  %v1962_v15 = vmul.f32 %v10564_v37, %v10564_v37 }
 0x546   :  { %v1966_v13 = vadd.f32 %v1954_v35, %v1950_v20  ;;  %v1960_v16 = vmul.f32 %v10573_v55, %v10573_v55  ;;  %v1964_v1 = vmul.f32 %v10576_v28, %v10576_v28  ;;  %v10597_v32 = vsub.f32 %v10401_v43, %v1925_v19 }
 0x547   :  { %v1984_v31 = vadd.f32 %v1956_v23, %v1952_v27  ;;  %v10600_v48 = vsub.f32 %v10387_v39, %v1925_v19  ;;  %v10603_v49 = vsub.f32 %v10407_v44, %v1925_v19  ;;  %v10606_v46 = vsub.f32 %v10427_v30, %v1925_v19 }
 0x548   :  { %v1967_v25 = vadd.f32 %v1966_v13, %v1958_v40  ;;  %v10609_v36 = vsub.f32 %v10404_v34, %v1933_v14  ;;  %v10612_v38 = vsub.f32 %v10390_v21, %v1933_v14  ;;  %v1951_v43 = vmul.f32 %v10597_v32, %v10597_v32 }
 0x549   :  { %v1985_v47 = vadd.f32 %v1984_v31, %v1960_v16  ;;  %v1955_v39 = vmul.f32 %v10600_v48, %v10600_v48  ;;  %v1959_v44 = vmul.f32 %v10603_v49, %v10603_v49  ;;  %v10621_v30 = vsub.f32 %v10410_v45, %v1933_v14 }
 0x54a   :  { %v1968_v18 = vadd.f32 %v1967_v25, %v1962_v15  ;;  %v10624_v34 = vsub.f32 %v10430_v29, %v1933_v14  ;;  %v1953_v21 = vmul.f32 %v10609_v36, %v10609_v36  ;;  %v1957_v50 = vmul.f32 %v10612_v38, %v10612_v38 }
 0x54b   :  { %v1986_v17 = vadd.f32 %v1985_v47, %v1964_v1  ;;  %v1975_v10 = vadd.f32 %v1955_v39, %v1951_v43  ;;  %v1963_v53 = vmul.f32 %v10606_v46, %v10606_v46  ;;  %v1961_v0 = vmul.f32 %v10621_v30, %v10621_v30 }
 0x54c   :  { %v1969_v54 = vrot.slane %v1968_v18, 4  ;;  %v1993_v45 = vadd.f32 %v1957_v50, %v1953_v21  ;;  %v1965_v24 = vmul.f32 %v10624_v34, %v10624_v34 }
 0x54d   :  { %v1987_v63 = vrot.slane %v1986_v17, 4  ;;  %v1976_v3 = vadd.f32 %v1975_v10, %v1959_v44 }
 0x54e   :  { %v1970_v11 = vadd.f32 %v1969_v54, %v1968_v18  ;;  %v1994_v20 = vadd.f32 %v1993_v45, %v1961_v0 }
 0x54f   :  { %v1988_v29 = vadd.f32 %v1987_v63, %v1986_v17  ;;  %v1977_v26 = vadd.f32 %v1976_v3, %v1963_v53  ;;  %v11885_v53 = vld [vmem:[#allocation164_spill] sm:$0xff] }
 0x550   :  { %v1971_v35 = vrot.slane %v1970_v11, 2  ;;  %v1995_v23 = vadd.f32 %v1994_v20, %v1965_v24  ;;  %v2290_v20 = vld [vmem:[#allocation7] sm:$0xf] }
 0x551   :  { %v1978_v27 = vrot.slane %v1977_v26, 4  ;;  %v1989_v40 = vrot.slane %v1988_v29, 2 }
 0x552   :  { %v1996_v19 = vrot.slane %v1995_v23, 4  ;;  %v1972_v14 = vadd.f32 %v1971_v35, %v1970_v11 }
 0x553   :  { %v1979_v13 = vadd.f32 %v1978_v27, %v1977_v26  ;;  %v1990_v1 = vadd.f32 %v1989_v40, %v1988_v29  ;;  %v2358_v27 = vld [vmem:[#allocation8] sm:$0xf] }
 0x554   :  { %v1997_v16 = vadd.f32 %v1996_v19, %v1995_v23  ;;  %v1973_v47 = vrot.slane %v1972_v14, 1  ;;  %v11886_v40 = vld [vmem:[#allocation167_spill] sm:$0xff]  ;;  %v11887_v19 = vld [vmem:[#allocation168_spill] sm:$0xff] }
 0x555   :  { %v1980_v15 = vrot.slane %v1979_v13, 2  ;;  %v1991_v39 = vrot.slane %v1990_v1, 1 }
 0x556   :  { %v1998_v25 = vrot.slane %v1997_v16, 2  ;;  %v1974_v10 = vadd.f32 %v1973_v47, %v1972_v14  ;;  %v2375_v14 = vrot.slane %v2358_v27, %v11887_v19 }
 0x557   :  { %v1981_v31 = vadd.f32 %v1980_v15, %v1979_v13  ;;  %v1992_v50 = vadd.f32 %v1991_v39, %v1990_v1  ;;  %v2367_v13 = vrot.slane %v2358_v27, %v11886_v40  ;;  %v2363_v15 = vrot.slane %v2358_v27, %v11884_v56 }
 0x558   :  { %v1999_v43 = vadd.f32 %v1998_v25, %v1997_v16  ;;  %v11888_v16 = vld [vmem:[#allocation166_spill] sm:$0xff] }
 0x559   :  { %v1982_v18 = vrot.slane %v1981_v31, 1  ;;  %v2371_v1 = vrot.slane %v2358_v27, %v11888_v16 }
 0x55a   :  { %v2000_v44 = vrot.slane %v1999_v43, 1 }
 0x55b   :  { %v1983_v17 = vadd.f32 %v1982_v18, %v1981_v31 }
 0x55c   :  { %v2001_v21 = vadd.f32 %v2000_v44, %v1999_v43 }
 0x55d   :  { %2066 = vmatprep.mubr.f32.mxu0 %v1983_v17 }
 0x55e   :  { %2067 = vmatmul.mubr.f32.vlgmr.msra.gmra.mxu0 %v1974_v10  ;;  %2136 = vmatprep.mubr.f32.mxu1 %v2001_v21 }
 0x55f   :  { %2173 = vmatpush1.msra.mxu0 %v10440_v41  ;;  %2137 = vmatmul.mubr.f32.vlgmr.msra.gmra.mxu1 %v1992_v50 }
 0x560   :  { %2174 = vmatprep.subr.mxu0 %v10446_v51  ;;  %2244 = vmatpush1.msra.mxu1 %v10442_v42 }
 0x561   :  { %2175 = vmatpush1.msra.mxu0 %v10452_v57  ;;  %2245 = vmatprep.subr.mxu1 %v10448_v52 }
 0x562   :  { %2176 = vmatprep.subr.mxu0 %v10458_v59  ;;  %2246 = vmatpush1.msra.mxu1 %v10454_v58 }
 0x563   :  { %2177 = vmatpush1.msra.mxu0 %v10464_v61  ;;  %2247 = vmatprep.subr.mxu1 %v10460_v60 }
 0x564   :  { %2178 = vmatprep.subr.mxu0 %v10470_v2  ;;  %2248 = vmatpush1.msra.mxu1 %v10466_v62  ;;  %v9700_v2 = vmov 1966171168  }
 0x565   :  { %2179 = vmatpush1.msra.mxu0 %v10476_v6  ;;  %2249 = vmatprep.subr.mxu1 %v10472_v5  ;;  %v2298_v5 = vunpack.c.l.s4 %v9700_v2 }
 0x566   :  { %2212 = vmatprep.mubr.f32.mxu0 %v9699_v8  ;;  %2250 = vmatpush1.msra.mxu1 %v10478_v7 }
 0x567   :  { %2283 = vmatprep.mubr.f32.mxu1 %v9699_v8  ;;  %v2299_v6 = vunpack.c.0.s8 %v2298_v5 }
 0x569   :  { %v10657_v63 = vsub.s32 %v2299_v6, %v11885_v53 }
 0x61e   :  { %v7733_v41 = vpop.f32.mrf.mxu0 }
 0x61f   :  { %v7768_v42 = vpop.f32.mrf.mxu1 }
 0x620   :  { %v7734_v51 = vpop.f32.mrf.mxu0 }
 0x621   :  { %v7735_v52 = vadd.f32 %v7734_v51, %v7733_v41  ;;  %v7769_v57 = vpop.f32.mrf.mxu1 }
 0x622   :  { %v7770_v58 = vadd.f32 %v7769_v57, %v7768_v42 }
 0x624   :  { %v2139_v59 = vadd.f32 %v7770_v58, %v7735_v52 }
 0x626   :  { %v2142_v60 = vmul.f32 0.001953125, %v2139_v59 }
 0x628   :  { %v2143_v61 = vadd.f32 1e-05, %v2142_v60 }
 0x62a   :  { %8882 = vrsqrt.f32 %v2143_v61 }
 0x637   :  { %v8883_v62 = vpop.eup %8882 }
 0x638   :  { %7436 = vmatmul.mubr.msk.f32.vlgmr.msra.gmra.mxu0 %vm630_vm0, %v8883_v62  ;;  %7437 = vmatmul.mubr.msk.f32.vlgmr.msra.gmra.mxu1 %vm630_vm0, %v8883_v62 }
 0x639   :  { %2484 = vmatprep.mubr.f32.mxu0 %v9699_v8  ;;  %2561 = vmatprep.mubr.f32.mxu1 %v9699_v8 }
 0x6f8   :  { %v2214_v7 = vpop.f32.mrf.mxu0  ;;  %v2285_v54 = vpop.f32.mrf.mxu1 }
 0x6fa   :  { %v2216_v0 = vpop.f32.mrf.mxu0  ;;  %v2287_v45 = vpop.f32.mrf.mxu1 }
 0x6fb   :  { %v2295_v3 = vcombine.low %v2214_v7, %v2216_v0  ;;  %v2296_v11 = vcombine.low %v2285_v54, %v2287_v45 }
 0x6fd   :  { %v2303_v29 = vrot.slane %v2295_v3, %v10657_v63  ;;  %v2310_v24 = vrot.slane %v2296_v11, %v10657_v63 }
 0x6ff   :  { %v2311_v26 = vcombine.low %v2303_v29, %v2310_v24 }
 0x701   :  { %v2318_v35 = vrot.slane %v2311_v26, %v10657_v63 }
 0x703   :  { %v2320_v23 = vmul.f32 %v2318_v35, %v2290_v20 }
 0x705   :  { %v2325_v31 = vrot.slane %v2320_v23, %v11884_v56  ;;  %v2333_v25 = vrot.slane %v2320_v23, %v11888_v16  ;;  %v2329_v47 = vrot.slane %v2320_v23, %v11886_v40  ;;  %v2337_v18 = vrot.slane %v2320_v23, %v11887_v19  ;;  %v2412_v23 = vld [vmem:[#allocation14] sm:$0xff]  ;;  %v2775_v19 = vld [vmem:[%s11889_s17 + $0xf8] sm:$0xff]  ;;  %v2575_v16 = vld [vmem:[#allocation16 + $0x8] sm:$0xff] }
 0x707   :  { %v2355_v43 = vmul.f32 %v2329_v47, %v10606_v46  ;;  %v2357_v39 = vmul.f32 %v2337_v18, %v10624_v34  ;;  %v2354_v17 = vmul.f32 %v2325_v31, %v10564_v37  ;;  %v2356_v44 = vmul.f32 %v2333_v25, %v10576_v28 }
 0x708   :  { %v2351_v10 = vmul.f32 %v2329_v47, %v10603_v49  ;;  %v2353_v21 = vmul.f32 %v2337_v18, %v10621_v30  ;;  %v2350_v50 = vmul.f32 %v2325_v31, %v10561_v9  ;;  %v2352_v41 = vmul.f32 %v2333_v25, %v10573_v55 }
 0x709   :  { %v2393_v42 = vadd.f32 %v2367_v13, %v2355_v43  ;;  %v2395_v51 = vadd.f32 %v2375_v14, %v2357_v39  ;;  %v2392_v52 = vadd.f32 %v2363_v15, %v2354_v17  ;;  %v2394_v57 = vadd.f32 %v2371_v1, %v2356_v44  ;;  %v2771_v43 = vld [vmem:[%s11889_s17 + $0xd8] sm:$0xff]  ;;  %v2770_v17 = vld [vmem:[%s11889_s17 + $0xd0] sm:$0xff] }
 0x70a   :  { %v2389_v58 = vadd.f32 %v2367_v13, %v2351_v10  ;;  %v2391_v46 = vadd.f32 %v2375_v14, %v2353_v21  ;;  %v2388_v59 = vadd.f32 %v2363_v15, %v2350_v50  ;;  %v2390_v34 = vadd.f32 %v2371_v1, %v2352_v41  ;;  %v2835_v39 = vld [vmem:[%s11889_s17 + $0x2d8] sm:$0xff]  ;;  %v2834_v44 = vld [vmem:[%s11889_s17 + $0x2d0] sm:$0xff]  ;;  %v2769_v10 = vld [vmem:[%s11889_s17 + $0xc8] sm:$0xff] }
 0x70b   :  { %v2409_v60 = vmax.f32 %v2393_v42, 0.0  ;;  %v2411_v37 = vmax.f32 %v2395_v51, 0.0  ;;  %v2408_v61 = vmax.f32 %v2392_v52, 0.0  ;;  %v2410_v28 = vmax.f32 %v2394_v57, 0.0  ;;  %v2833_v21 = vld [vmem:[%s11889_s17 + $0x2c8] sm:$0xff]  ;;  %v2768_v50 = vld [vmem:[%s11889_s17 + $0xc0] sm:$0xff] }
 0x70c   :  { %v2405_v62 = vmax.f32 %v2389_v58, 0.0  ;;  %v2407_v49 = vmax.f32 %v2391_v46, 0.0  ;;  %v2404_v30 = vmax.f32 %v2388_v59, 0.0  ;;  %v2347_v9 = vmul.f32 %v2329_v47, %v10600_v48  ;;  %v2832_v41 = vld [vmem:[%s11889_s17 + $0x2c0] sm:$0xff]  ;;  %v2767_v42 = vld [vmem:[%s11889_s17 + $0xb8] sm:$0xff]  ;;  %v2766_v52 = vld [vmem:[%s11889_s17 + $0xb0] sm:$0xff] }
 0x70d   :  { %2444 = vmatprep.subr.mxu0 %v2409_v60  ;;  %2521 = vmatprep.subr.mxu1 %v2411_v37  ;;  %v2349_v55 = vmul.f32 %v2337_v18, %v10612_v38  ;;  %v2346_v2 = vmul.f32 %v2325_v31, %v10558_v4  ;;  %v2406_v5 = vmax.f32 %v2390_v34, 0.0  ;;  %v2348_v6 = vmul.f32 %v2333_v25, %v10570_v33  ;;  %v2831_v51 = vld [vmem:[%s11889_s17 + $0x2b8] sm:$0xff]  ;;  %v2830_v57 = vld [vmem:[%s11889_s17 + $0x2b0] sm:$0xff]  ;;  %v2765_v58 = vld [vmem:[%s11889_s17 + $0xa8] sm:$0xff] }
 0x70e   :  { %2445 = vmatpush1.msra.mxu0 %v2408_v61  ;;  %2522 = vmatpush1.msra.mxu1 %v2410_v28  ;;  %v2343_v7 = vmul.f32 %v2329_v47, %v10597_v32  ;;  %v2345_v54 = vmul.f32 %v2337_v18, %v10609_v36  ;;  %v2385_v53 = vadd.f32 %v2367_v13, %v2347_v9  ;;  %v2772_v47 = vld [vmem:[%s11889_s17 + $0xe0] sm:$0xff]  ;;  %v2829_v46 = vld [vmem:[%s11889_s17 + $0x2a8] sm:$0xff] }
 0x70f   :  { %2446 = vmatprep.subr.mxu0 %v2405_v62  ;;  %2523 = vmatprep.subr.mxu1 %v2407_v49  ;;  %v2387_v0 = vadd.f32 %v2375_v14, %v2349_v55  ;;  %v2384_v45 = vadd.f32 %v2363_v15, %v2346_v2  ;;  %v2386_v48 = vadd.f32 %v2371_v1, %v2348_v6  ;;  %v2836_v18 = vld [vmem:[%s11889_s17 + $0x2e0] sm:$0xff]  ;;  %v2759_v55 = vld [vmem:[%s11889_s17 + $0x78] sm:$0xff]  ;;  %v2822_v6 = vld [vmem:[%s11889_s17 + $0x270] sm:$0xff] }
 0x710   :  { %2447 = vmatpush1.msra.mxu0 %v2404_v30  ;;  %2524 = vmatpush1.msra.mxu1 %v2406_v5  ;;  %v2381_v38 = vadd.f32 %v2367_v13, %v2343_v7  ;;  %v2383_v3 = vadd.f32 %v2375_v14, %v2345_v54  ;;  %v2401_v4 = vmax.f32 %v2385_v53, 0.0  ;;  %v2342_v29 = vmul.f32 %v2325_v31, %v10555_v12  ;;  %v2413_v12 = vld [vmem:[#allocation14 + $0x8] sm:$0xff]  ;;  %v2773_v31 = vld [vmem:[%s11889_s17 + $0xe8] sm:$0xff]  ;;  %v2764_v59 = vld [vmem:[%s11889_s17 + $0xa0] sm:$0xff] }
 0x711   :  { %v2403_v11 = vmax.f32 %v2387_v0, 0.0  ;;  %v2400_v24 = vmax.f32 %v2384_v45, 0.0  ;;  %v2402_v33 = vmax.f32 %v2386_v48, 0.0  ;;  %v2344_v32 = vmul.f32 %v2333_v25, %v10567_v22  ;;  %v2574_v22 = vld [vmem:[#allocation16] sm:$0xff]  ;;  %v2837_v25 = vld [vmem:[%s11889_s17 + $0x2e8] sm:$0xff] }
 0x712   :  { %2448 = vmatprep.subr.mxu0 %v2401_v4  ;;  %v2397_v36 = vmax.f32 %v2381_v38, 0.0  ;;  %v2399_v26 = vmax.f32 %v2383_v3, 0.0  ;;  %v2380_v20 = vadd.f32 %v2363_v15, %v2342_v29  ;;  %v2839_v14 = vld [vmem:[%s11889_s17 + $0x2f8] sm:$0xff]  ;;  %v2774_v15 = vld [vmem:[%s11889_s17 + $0xf0] sm:$0xff]  ;;  %v2828_v34 = vld [vmem:[%s11889_s17 + $0x2a0] sm:$0xff] }
 0x713   :  { %2525 = vmatprep.subr.mxu1 %v2403_v11  ;;  %2449 = vmatpush1.msra.mxu0 %v2400_v24  ;;  %v2382_v35 = vadd.f32 %v2371_v1, %v2344_v32  ;;  %v2838_v1 = vld [vmem:[%s11889_s17 + $0x2f0] sm:$0xff]  ;;  %v2824_v9 = vld [vmem:[%s11889_s17 + $0x280] sm:$0xff]  ;;  %v2823_v2 = vld [vmem:[%s11889_s17 + $0x278] sm:$0xff] }
 0x714   :  { %2526 = vmatpush1.msra.mxu1 %v2402_v33  ;;  %2450 = vmatprep.subr.mxu0 %v2397_v36  ;;  %v2396_v27 = vmax.f32 %v2380_v20, 0.0  ;;  %v2757_v7 = vld [vmem:[%s11889_s17 + $0x68] sm:$0xff]  ;;  %v2756_v53 = vld [vmem:[%s11889_s17 + $0x60] sm:$0xff]  ;;  %v2755_v45 = vld [vmem:[%s11889_s17 + $0x58] sm:$0xff] }
 0x715   :  { %2527 = vmatprep.subr.mxu1 %v2399_v26  ;;  %v2398_v13 = vmax.f32 %v2382_v35, 0.0  ;;  %v2821_v54 = vld [vmem:[%s11889_s17 + $0x268] sm:$0xff]  ;;  %v2820_v0 = vld [vmem:[%s11889_s17 + $0x260] sm:$0xff]  ;;  %v2819_v48 = vld [vmem:[%s11889_s17 + $0x258] sm:$0xff] }
 0x716   :  { %2451 = vmatpush1.msra.mxu0 %v2396_v27  ;;  %v2754_v38 = vld [vmem:[%s11889_s17 + $0x50] sm:$0xff]  ;;  %v2752_v29 = vld [vmem:[%s11889_s17 + $0x40] sm:$0xff]  ;;  %v2815_v32 = vld [vmem:[%s11889_s17 + $0x238] sm:$0xff] }
 0x717   :  { %2528 = vmatpush1.msra.mxu1 %v2398_v13  ;;  %7438 = vmatmul.mubr.msk.f32.vlgmr.msra.gmra.mxu0 %vm630_vm0, %v2412_v23  ;;  %v2818_v3 = vld [vmem:[%s11889_s17 + $0x250] sm:$0xff]  ;;  %v2749_v20 = vld [vmem:[%s11889_s17 + $0x28] sm:$0xff] }
 0x718   :  { %7440 = vmatmul.mubr.msk.f32.vlgmr.msra.gmra.mxu1 %vm630_vm0, %v2412_v23  ;;  %2606 = vmatprep.subr.mxu0 %v2409_v60  ;;  %v2763_v60 = vld [vmem:[%s11889_s17 + $0x98] sm:$0xff]  ;;  %v2813_v35 = vld [vmem:[%s11889_s17 + $0x228] sm:$0xff]  ;;  %v2812_v23 = vld [vmem:[%s11889_s17 + $0x220] sm:$0xff] }
 0x719   :  { %2683 = vmatprep.subr.mxu1 %v2411_v37  ;;  %2607 = vmatpush1.msra.mxu0 %v2408_v61  ;;  %v2827_v37 = vld [vmem:[%s11889_s17 + $0x298] sm:$0xff]  ;;  %v2762_v61 = vld [vmem:[%s11889_s17 + $0x90] sm:$0xff] }
 0x71a   :  { %2684 = vmatpush1.msra.mxu1 %v2410_v28  ;;  %2608 = vmatprep.subr.mxu0 %v2405_v62  ;;  %v2826_v28 = vld [vmem:[%s11889_s17 + $0x290] sm:$0xff]  ;;  %v2761_v62 = vld [vmem:[%s11889_s17 + $0x88] sm:$0xff] }
 0x71b   :  { %2685 = vmatprep.subr.mxu1 %v2407_v49  ;;  %2490 = vmatprep.mubr.f32.mxu0 %v9699_v8  ;;  %v2825_v49 = vld [vmem:[%s11889_s17 + $0x288] sm:$0xff] }
 0x71c   :  { %2567 = vmatprep.mubr.f32.mxu1 %v9699_v8  ;;  %2609 = vmatpush1.msra.mxu0 %v2404_v30  ;;  %v2760_v30 = vld [vmem:[%s11889_s17 + $0x80] sm:$0xff] }
 0x71d   :  { %2686 = vmatpush1.msra.mxu1 %v2406_v5  ;;  %7439 = vmatmul.mubr.msk.f32.gmra.mxu0 %vm630_vm0, %v2413_v12  ;;  %v2758_v5 = vld [vmem:[%s11889_s17 + $0x70] sm:$0xff] }
 0x71e   :  { %7441 = vmatmul.mubr.msk.f32.gmra.mxu1 %vm630_vm0, %v2413_v12  ;;  %2610 = vmatprep.subr.mxu0 %v2401_v4  ;;  %v2753_v4 = vld [vmem:[%s11889_s17 + $0x48] sm:$0xff]  ;;  %v2811_v12 = vld [vmem:[%s11889_s17 + $0x218] sm:$0xff] }
 0x71f   :  { %2687 = vmatprep.subr.mxu1 %v2403_v11  ;;  %2611 = vmatpush1.msra.mxu0 %v2400_v24  ;;  %v2817_v11 = vld [vmem:[%s11889_s17 + $0x248] sm:$0xff]  ;;  %v2816_v24 = vld [vmem:[%s11889_s17 + $0x240] sm:$0xff] }
 0x720   :  { %2688 = vmatpush1.msra.mxu1 %v2402_v33  ;;  %2612 = vmatprep.subr.mxu0 %v2397_v36  ;;  %v2751_v33 = vld [vmem:[%s11889_s17 + $0x38] sm:$0xff]  ;;  %v2750_v36 = vld [vmem:[%s11889_s17 + $0x30] sm:$0xff] }
 0x721   :  { %2689 = vmatprep.subr.mxu1 %v2399_v26  ;;  %2613 = vmatpush1.msra.mxu0 %v2396_v27  ;;  %v2814_v26 = vld [vmem:[%s11889_s17 + $0x230] sm:$0xff]  ;;  %v2748_v27 = vld [vmem:[%s11889_s17 + $0x20] sm:$0xff] }
 0x722   :  { %2646 = vmatprep.mubr.f32.mxu0 %v9699_v8  ;;  %2690 = vmatpush1.msra.mxu1 %v2398_v13  ;;  %v2747_v13 = vld [vmem:[%s11889_s17 + $0x18] sm:$0xff] }
 0x723   :  { %2723 = vmatprep.mubr.f32.mxu1 %v9699_v8  ;;  %7442 = vmatmul.mubr.msk.f32.vlgmr.msra.gmra.mxu0 %vm630_vm0, %v2574_v22 }
 0x724   :  { %7444 = vmatmul.mubr.msk.f32.vlgmr.msra.gmra.mxu1 %vm630_vm0, %v2574_v22  ;;  %2652 = vmatprep.mubr.f32.mxu0 %v9699_v8  ;;  %v2746_v22 = vld [vmem:[%s11889_s17 + $0x10] sm:$0xff] }
 0x725   :  { %2729 = vmatprep.mubr.f32.mxu1 %v9699_v8  ;;  %2872 = vmatprep.subr.mxu0 %v2775_v19  ;;  %v2810_v19 = vld [vmem:[%s11889_s17 + $0x210] sm:$0xff] }
 0x726   :  { %2949 = vmatprep.subr.mxu1 %v2839_v14  ;;  %2873 = vmatpush1.msra.mxu0 %v2774_v15  ;;  %v2745_v14 = vld [vmem:[%s11889_s17 + $0x8] sm:$0xff] }
 0x727   :  { %7443 = vmatmul.mubr.msk.f32.gmra.mxu0 %vm630_vm0, %v2575_v16  ;;  %2950 = vmatpush1.msra.mxu1 %v2838_v1  ;;  %v2809_v15 = vld [vmem:[%s11889_s17 + $0x208] sm:$0xff]  ;;  %v2808_v1 = vld [vmem:[%s11889_s17 + $0x200] sm:$0xff] }
 0x728   :  { %7445 = vmatmul.mubr.msk.f32.gmra.mxu1 %vm630_vm0, %v2575_v16  ;;  %2874 = vmatprep.subr.mxu0 %v2773_v31  ;;  %v2744_v16 = vld [vmem:[%s11889_s17] sm:$0xff]  ;;  %v2807_v31 = vld [vmem:[%s11889_s17 + $0x1f8] sm:$0xff] }
 0x729   :  { %2951 = vmatprep.subr.mxu1 %v2837_v25  ;;  %2875 = vmatpush1.msra.mxu0 %v2772_v47  ;;  %v2871_v25 = vld [vmem:[%s11889_s17 + $0x3f8] sm:$0xff]  ;;  %v2806_v47 = vld [vmem:[%s11889_s17 + $0x1f0] sm:$0xff] }
 0x72a   :  { %2952 = vmatpush1.msra.mxu1 %v2836_v18  ;;  %2876 = vmatprep.subr.mxu0 %v2771_v43  ;;  %v2870_v18 = vld [vmem:[%s11889_s17 + $0x3f0] sm:$0xff]  ;;  %v2805_v43 = vld [vmem:[%s11889_s17 + $0x1e8] sm:$0xff] }
 0x72b   :  { %2953 = vmatprep.subr.mxu1 %v2835_v39  ;;  %2877 = vmatpush1.msra.mxu0 %v2770_v17  ;;  %v2869_v39 = vld [vmem:[%s11889_s17 + $0x3e8] sm:$0xff]  ;;  %v2804_v17 = vld [vmem:[%s11889_s17 + $0x1e0] sm:$0xff] }
 0x72c   :  { %2954 = vmatpush1.msra.mxu1 %v2834_v44  ;;  %2878 = vmatprep.subr.mxu0 %v2769_v10  ;;  %v2868_v44 = vld [vmem:[%s11889_s17 + $0x3e0] sm:$0xff]  ;;  %v2803_v10 = vld [vmem:[%s11889_s17 + $0x1d8] sm:$0xff] }
 0x72d   :  { %2955 = vmatprep.subr.mxu1 %v2833_v21  ;;  %2879 = vmatpush1.msra.mxu0 %v2768_v50  ;;  %v2867_v21 = vld [vmem:[%s11889_s17 + $0x3d8] sm:$0xff]  ;;  %v2802_v50 = vld [vmem:[%s11889_s17 + $0x1d0] sm:$0xff] }
 0x72e   :  { %2956 = vmatpush1.msra.mxu1 %v2832_v41  ;;  %2880 = vmatprep.subr.mxu0 %v2767_v42  ;;  %v2866_v41 = vld [vmem:[%s11889_s17 + $0x3d0] sm:$0xff]  ;;  %v2801_v42 = vld [vmem:[%s11889_s17 + $0x1c8] sm:$0xff] }
 0x72f   :  { %2957 = vmatprep.subr.mxu1 %v2831_v51  ;;  %2881 = vmatpush1.msra.mxu0 %v2766_v52  ;;  %v2865_v51 = vld [vmem:[%s11889_s17 + $0x3c8] sm:$0xff]  ;;  %v2800_v52 = vld [vmem:[%s11889_s17 + $0x1c0] sm:$0xff] }
 0x730   :  { %2958 = vmatpush1.msra.mxu1 %v2830_v57  ;;  %2882 = vmatprep.subr.mxu0 %v2765_v58  ;;  %v2864_v57 = vld [vmem:[%s11889_s17 + $0x3c0] sm:$0xff]  ;;  %v2799_v58 = vld [vmem:[%s11889_s17 + $0x1b8] sm:$0xff] }
 0x731   :  { %2959 = vmatprep.subr.mxu1 %v2829_v46  ;;  %2883 = vmatpush1.msra.mxu0 %v2764_v59  ;;  %v2863_v46 = vld [vmem:[%s11889_s17 + $0x3b8] sm:$0xff]  ;;  %v2798_v59 = vld [vmem:[%s11889_s17 + $0x1b0] sm:$0xff] }
 0x732   :  { %2960 = vmatpush1.msra.mxu1 %v2828_v34  ;;  %2884 = vmatprep.subr.mxu0 %v2763_v60  ;;  %v2862_v34 = vld [vmem:[%s11889_s17 + $0x3b0] sm:$0xff]  ;;  %v2797_v60 = vld [vmem:[%s11889_s17 + $0x1a8] sm:$0xff] }
 0x733   :  { %2961 = vmatprep.subr.mxu1 %v2827_v37  ;;  %2885 = vmatpush1.msra.mxu0 %v2762_v61  ;;  %v2861_v37 = vld [vmem:[%s11889_s17 + $0x3a8] sm:$0xff]  ;;  %v2796_v61 = vld [vmem:[%s11889_s17 + $0x1a0] sm:$0xff] }
 0x734   :  { %2962 = vmatpush1.msra.mxu1 %v2826_v28  ;;  %2886 = vmatprep.subr.mxu0 %v2761_v62  ;;  %v2860_v28 = vld [vmem:[%s11889_s17 + $0x3a0] sm:$0xff]  ;;  %v2795_v62 = vld [vmem:[%s11889_s17 + $0x198] sm:$0xff] }
 0x735   :  { %2963 = vmatprep.subr.mxu1 %v2825_v49  ;;  %2887 = vmatpush1.msra.mxu0 %v2760_v30  ;;  %v2859_v49 = vld [vmem:[%s11889_s17 + $0x398] sm:$0xff]  ;;  %v2794_v30 = vld [vmem:[%s11889_s17 + $0x190] sm:$0xff] }
 0x736   :  { %2964 = vmatpush1.msra.mxu1 %v2824_v9  ;;  %2888 = vmatprep.subr.mxu0 %v2759_v55  ;;  %v2858_v9 = vld [vmem:[%s11889_s17 + $0x390] sm:$0xff]  ;;  %v2793_v55 = vld [vmem:[%s11889_s17 + $0x188] sm:$0xff] }
 0x737   :  { %2965 = vmatprep.subr.mxu1 %v2823_v2  ;;  %2889 = vmatpush1.msra.mxu0 %v2758_v5  ;;  %v2857_v2 = vld [vmem:[%s11889_s17 + $0x388] sm:$0xff]  ;;  %v2792_v5 = vld [vmem:[%s11889_s17 + $0x180] sm:$0xff] }
 0x738   :  { %2966 = vmatpush1.msra.mxu1 %v2822_v6  ;;  %2890 = vmatprep.subr.mxu0 %v2757_v7  ;;  %v2856_v6 = vld [vmem:[%s11889_s17 + $0x380] sm:$0xff]  ;;  %v2791_v7 = vld [vmem:[%s11889_s17 + $0x178] sm:$0xff] }
 0x739   :  { %2967 = vmatprep.subr.mxu1 %v2821_v54  ;;  %2891 = vmatpush1.msra.mxu0 %v2756_v53  ;;  %v2855_v54 = vld [vmem:[%s11889_s17 + $0x378] sm:$0xff]  ;;  %v2790_v53 = vld [vmem:[%s11889_s17 + $0x170] sm:$0xff] }
 0x73a   :  { %2968 = vmatpush1.msra.mxu1 %v2820_v0  ;;  %2892 = vmatprep.subr.mxu0 %v2755_v45  ;;  %v2854_v0 = vld [vmem:[%s11889_s17 + $0x370] sm:$0xff]  ;;  %v2789_v45 = vld [vmem:[%s11889_s17 + $0x168] sm:$0xff] }
 0x73b   :  { %2969 = vmatprep.subr.mxu1 %v2819_v48  ;;  %2893 = vmatpush1.msra.mxu0 %v2754_v38  ;;  %v2853_v48 = vld [vmem:[%s11889_s17 + $0x368] sm:$0xff]  ;;  %v2788_v38 = vld [vmem:[%s11889_s17 + $0x160] sm:$0xff] }
 0x73c   :  { %2970 = vmatpush1.msra.mxu1 %v2818_v3  ;;  %2894 = vmatprep.subr.mxu0 %v2753_v4  ;;  %v2852_v3 = vld [vmem:[%s11889_s17 + $0x360] sm:$0xff]  ;;  %v2787_v4 = vld [vmem:[%s11889_s17 + $0x158] sm:$0xff] }
 0x73d   :  { %2971 = vmatprep.subr.mxu1 %v2817_v11  ;;  %2895 = vmatpush1.msra.mxu0 %v2752_v29  ;;  %v2851_v11 = vld [vmem:[%s11889_s17 + $0x358] sm:$0xff]  ;;  %v2786_v29 = vld [vmem:[%s11889_s17 + $0x150] sm:$0xff] }
 0x73e   :  { %2972 = vmatpush1.msra.mxu1 %v2816_v24  ;;  %2896 = vmatprep.subr.mxu0 %v2751_v33  ;;  %v2850_v24 = vld [vmem:[%s11889_s17 + $0x350] sm:$0xff]  ;;  %v2785_v33 = vld [vmem:[%s11889_s17 + $0x148] sm:$0xff] }
 0x73f   :  { %2973 = vmatprep.subr.mxu1 %v2815_v32  ;;  %2897 = vmatpush1.msra.mxu0 %v2750_v36  ;;  %v2849_v32 = vld [vmem:[%s11889_s17 + $0x348] sm:$0xff]  ;;  %v2784_v36 = vld [vmem:[%s11889_s17 + $0x140] sm:$0xff] }
 0x740   :  { %2974 = vmatpush1.msra.mxu1 %v2814_v26  ;;  %2898 = vmatprep.subr.mxu0 %v2749_v20  ;;  %v2848_v26 = vld [vmem:[%s11889_s17 + $0x340] sm:$0xff]  ;;  %v2783_v20 = vld [vmem:[%s11889_s17 + $0x138] sm:$0xff] }
 0x741   :  { %2975 = vmatprep.subr.mxu1 %v2813_v35  ;;  %2899 = vmatpush1.msra.mxu0 %v2748_v27  ;;  %v2847_v35 = vld [vmem:[%s11889_s17 + $0x338] sm:$0xff]  ;;  %v2782_v27 = vld [vmem:[%s11889_s17 + $0x130] sm:$0xff] }
 0x742   :  { %2976 = vmatpush1.msra.mxu1 %v2812_v23  ;;  %2900 = vmatprep.subr.mxu0 %v2747_v13  ;;  %v2846_v23 = vld [vmem:[%s11889_s17 + $0x330] sm:$0xff]  ;;  %v2781_v13 = vld [vmem:[%s11889_s17 + $0x128] sm:$0xff] }
 0x743   :  { %2977 = vmatprep.subr.mxu1 %v2811_v12  ;;  %2901 = vmatpush1.msra.mxu0 %v2746_v22  ;;  %v2845_v12 = vld [vmem:[%s11889_s17 + $0x328] sm:$0xff]  ;;  %v2780_v22 = vld [vmem:[%s11889_s17 + $0x120] sm:$0xff] }
 0x744   :  { %2978 = vmatpush1.msra.mxu1 %v2810_v19  ;;  %2902 = vmatprep.subr.mxu0 %v2745_v14  ;;  %v2844_v19 = vld [vmem:[%s11889_s17 + $0x320] sm:$0xff]  ;;  %v2779_v14 = vld [vmem:[%s11889_s17 + $0x118] sm:$0xff] }
 0x745   :  { %2979 = vmatprep.subr.mxu1 %v2809_v15  ;;  %2903 = vmatpush1.msra.mxu0 %v2744_v16  ;;  %v2843_v15 = vld [vmem:[%s11889_s17 + $0x318] sm:$0xff]  ;;  %v2778_v16 = vld [vmem:[%s11889_s17 + $0x110] sm:$0xff] }
 0x746   :  { %2980 = vmatpush1.msra.mxu1 %v2808_v1  ;;  %2904 = vmatprep.subr.mxu0 %v2807_v31  ;;  %v2842_v1 = vld [vmem:[%s11889_s17 + $0x310] sm:$0xff]  ;;  %v2777_v31 = vld [vmem:[%s11889_s17 + $0x108] sm:$0xff] }
 0x747   :  { %2981 = vmatprep.subr.mxu1 %v2871_v25  ;;  %2905 = vmatpush2.msra.mxu0 %v2806_v47  ;;  %v2841_v25 = vld [vmem:[%s11889_s17 + $0x308] sm:$0xff]  ;;  %v2776_v47 = vld [vmem:[%s11889_s17 + $0x100] sm:$0xff] }
 0x748   :  { %2982 = vmatpush2.msra.mxu1 %v2870_v18  ;;  %2906 = vmatprep.subr.mxu0 %v2805_v43  ;;  %v2840_v18 = vld [vmem:[%s11889_s17 + $0x300] sm:$0xff]  ;;  %v3057_v43 = vld [vmem:[%s11890_s26 + $0xf8] sm:$0xff] }
 0x749   :  { %2983 = vmatprep.subr.mxu1 %v2869_v39  ;;  %2907 = vmatpush2.msra.mxu0 %v2804_v17  ;;  %v3121_v39 = vld [vmem:[%s11890_s26 + $0x2f8] sm:$0xff] }
 0x74a   :  { %2984 = vmatpush2.msra.mxu1 %v2868_v44  ;;  %2908 = vmatprep.subr.mxu0 %v2803_v10 }
 0x74b   :  { %2985 = vmatprep.subr.mxu1 %v2867_v21  ;;  %2909 = vmatpush2.msra.mxu0 %v2802_v50 }
 0x74c   :  { %2986 = vmatpush2.msra.mxu1 %v2866_v41  ;;  %2910 = vmatprep.subr.mxu0 %v2801_v42 }
 0x74d   :  { %2987 = vmatprep.subr.mxu1 %v2865_v51  ;;  %2911 = vmatpush2.msra.mxu0 %v2800_v52 }
 0x74e   :  { %2988 = vmatpush2.msra.mxu1 %v2864_v57  ;;  %2912 = vmatprep.subr.mxu0 %v2799_v58 }
 0x74f   :  { %2989 = vmatprep.subr.mxu1 %v2863_v46  ;;  %2913 = vmatpush2.msra.mxu0 %v2798_v59 }
 0x750   :  { %2990 = vmatpush2.msra.mxu1 %v2862_v34  ;;  %2914 = vmatprep.subr.mxu0 %v2797_v60 }
 0x751   :  { %2991 = vmatprep.subr.mxu1 %v2861_v37  ;;  %2915 = vmatpush2.msra.mxu0 %v2796_v61  ;;  %v3056_v61 = vld [vmem:[%s11890_s26 + $0xf0] sm:$0xff] }
 0x752   :  { %2992 = vmatpush2.msra.mxu1 %v2860_v28  ;;  %2916 = vmatprep.subr.mxu0 %v2795_v62 }
 0x753   :  { %2993 = vmatprep.subr.mxu1 %v2859_v49  ;;  %2917 = vmatpush2.msra.mxu0 %v2794_v30  ;;  %v3120_v49 = vld [vmem:[%s11890_s26 + $0x2f0] sm:$0xff]  ;;  %v3055_v30 = vld [vmem:[%s11890_s26 + $0xe8] sm:$0xff] }
 0x754   :  { %2994 = vmatpush2.msra.mxu1 %v2858_v9  ;;  %2918 = vmatprep.subr.mxu0 %v2793_v55  ;;  %v3119_v55 = vld [vmem:[%s11890_s26 + $0x2e8] sm:$0xff] }
 0x755   :  { %2995 = vmatprep.subr.mxu1 %v2857_v2  ;;  %2919 = vmatpush2.msra.mxu0 %v2792_v5  ;;  %v3054_v2 = vld [vmem:[%s11890_s26 + $0xe0] sm:$0xff] }
 0x756   :  { %2996 = vmatpush2.msra.mxu1 %v2856_v6  ;;  %2920 = vmatprep.subr.mxu0 %v2791_v7  ;;  %v3118_v7 = vld [vmem:[%s11890_s26 + $0x2e0] sm:$0xff] }
 0x757   :  { %2997 = vmatprep.subr.mxu1 %v2855_v54  ;;  %2921 = vmatpush2.msra.mxu0 %v2790_v53  ;;  %v3053_v53 = vld [vmem:[%s11890_s26 + $0xd8] sm:$0xff] }
 0x758   :  { %2998 = vmatpush2.msra.mxu1 %v2854_v0  ;;  %2922 = vmatprep.subr.mxu0 %v2789_v45  ;;  %v3117_v0 = vld [vmem:[%s11890_s26 + $0x2d8] sm:$0xff] }
 0x759   :  { %2999 = vmatprep.subr.mxu1 %v2853_v48  ;;  %2923 = vmatpush2.msra.mxu0 %v2788_v38  ;;  %v3052_v48 = vld [vmem:[%s11890_s26 + $0xd0] sm:$0xff] }
 0x75a   :  { %3000 = vmatpush2.msra.mxu1 %v2852_v3  ;;  %2924 = vmatprep.subr.mxu0 %v2787_v4  ;;  %v3116_v3 = vld [vmem:[%s11890_s26 + $0x2d0] sm:$0xff]  ;;  %v3051_v4 = vld [vmem:[%s11890_s26 + $0xc8] sm:$0xff] }
 0x75b   :  { %3001 = vmatprep.subr.mxu1 %v2851_v11  ;;  %2925 = vmatpush2.msra.mxu0 %v2786_v29  ;;  %v3115_v11 = vld [vmem:[%s11890_s26 + $0x2c8] sm:$0xff]  ;;  %v3050_v29 = vld [vmem:[%s11890_s26 + $0xc0] sm:$0xff] }
 0x75c   :  { %3002 = vmatpush2.msra.mxu1 %v2850_v24  ;;  %2926 = vmatprep.subr.mxu0 %v2785_v33  ;;  %v3114_v24 = vld [vmem:[%s11890_s26 + $0x2c0] sm:$0xff]  ;;  %v3049_v33 = vld [vmem:[%s11890_s26 + $0xb8] sm:$0xff] }
 0x75d   :  { %3003 = vmatprep.subr.mxu1 %v2849_v32  ;;  %2927 = vmatpush2.msra.mxu0 %v2784_v36  ;;  %v3113_v32 = vld [vmem:[%s11890_s26 + $0x2b8] sm:$0xff]  ;;  %v3048_v36 = vld [vmem:[%s11890_s26 + $0xb0] sm:$0xff] }
 0x75e   :  { %3004 = vmatpush2.msra.mxu1 %v2848_v26  ;;  %2928 = vmatprep.subr.mxu0 %v2783_v20  ;;  %v3112_v26 = vld [vmem:[%s11890_s26 + $0x2b0] sm:$0xff]  ;;  %v3047_v20 = vld [vmem:[%s11890_s26 + $0xa8] sm:$0xff] }
 0x75f   :  { %3005 = vmatprep.subr.mxu1 %v2847_v35  ;;  %2929 = vmatpush2.msra.mxu0 %v2782_v27  ;;  %v3111_v35 = vld [vmem:[%s11890_s26 + $0x2a8] sm:$0xff]  ;;  %v3046_v27 = vld [vmem:[%s11890_s26 + $0xa0] sm:$0xff] }
 0x760   :  { %3006 = vmatpush2.msra.mxu1 %v2846_v23  ;;  %2930 = vmatprep.subr.mxu0 %v2781_v13  ;;  %v3110_v23 = vld [vmem:[%s11890_s26 + $0x2a0] sm:$0xff]  ;;  %v3045_v13 = vld [vmem:[%s11890_s26 + $0x98] sm:$0xff] }
 0x761   :  { %3007 = vmatprep.subr.mxu1 %v2845_v12  ;;  %2931 = vmatpush2.msra.mxu0 %v2780_v22  ;;  %v3109_v12 = vld [vmem:[%s11890_s26 + $0x298] sm:$0xff]  ;;  %v3044_v22 = vld [vmem:[%s11890_s26 + $0x90] sm:$0xff] }
 0x762   :  { %3008 = vmatpush2.msra.mxu1 %v2844_v19  ;;  %2932 = vmatprep.subr.mxu0 %v2779_v14  ;;  %v3108_v19 = vld [vmem:[%s11890_s26 + $0x290] sm:$0xff]  ;;  %v3043_v14 = vld [vmem:[%s11890_s26 + $0x88] sm:$0xff] }
 0x763   :  { %3009 = vmatprep.subr.mxu1 %v2843_v15  ;;  %2933 = vmatpush2.msra.mxu0 %v2778_v16  ;;  %v3107_v15 = vld [vmem:[%s11890_s26 + $0x288] sm:$0xff]  ;;  %v3042_v16 = vld [vmem:[%s11890_s26 + $0x80] sm:$0xff] }
 0x764   :  { %3010 = vmatpush2.msra.mxu1 %v2842_v1  ;;  %2934 = vmatprep.subr.mxu0 %v2777_v31  ;;  %v3106_v1 = vld [vmem:[%s11890_s26 + $0x280] sm:$0xff]  ;;  %v3041_v31 = vld [vmem:[%s11890_s26 + $0x78] sm:$0xff] }
 0x765   :  { %3011 = vmatprep.subr.mxu1 %v2841_v25  ;;  %2935 = vmatpush2.msra.mxu0 %v2776_v47  ;;  %v3105_v25 = vld [vmem:[%s11890_s26 + $0x278] sm:$0xff]  ;;  %v3040_v47 = vld [vmem:[%s11890_s26 + $0x70] sm:$0xff] }
 0x766   :  { %3012 = vmatpush2.msra.mxu1 %v2840_v18  ;;  %3154 = vmatprep.subr.mxu0 %v3057_v43  ;;  %v3104_v18 = vld [vmem:[%s11890_s26 + $0x270] sm:$0xff]  ;;  %v3039_v43 = vld [vmem:[%s11890_s26 + $0x68] sm:$0xff] }
 0x767   :  { %3231 = vmatprep.subr.mxu1 %v3121_v39  ;;  %v3103_v39 = vld [vmem:[%s11890_s26 + $0x268] sm:$0xff] }
 0x7d7   :  { %v2486_v17 = vpop.f32.mrf.mxu0 }
 0x7d8   :  { %v2563_v44 = vpop.f32.mrf.mxu1 }
 0x7d9   :  { %v2488_v10 = vpop.f32.mrf.mxu0 }
 0x7da   :  { %v2565_v21 = vpop.f32.mrf.mxu1 }
 0x7dd   :  { %v2492_v50 = vpop.f32.mrf.mxu0 }
 0x7de   :  { %v2569_v41 = vpop.f32.mrf.mxu1 }
 0x7df   :  { %v2494_v42 = vpop.f32.mrf.mxu0 }
 0x7e0   :  { %v2571_v51 = vpop.f32.mrf.mxu1 }
 0x7e3   :  { %v2648_v52 = vpop.f32.mrf.mxu0 }
 0x7e4   :  { %v2725_v57 = vpop.f32.mrf.mxu1  ;;  %v10830_v34 = vmax.f32 %v2486_v17, %v2648_v52  ;;  %v3038_v17 = vld [vmem:[%s11890_s26 + $0x60] sm:$0xff] }
 0x7e5   :  { %v2650_v58 = vpop.f32.mrf.mxu0  ;;  %v10833_v28 = vmax.f32 %v2563_v44, %v2725_v57  ;;  %v3102_v44 = vld [vmem:[%s11890_s26 + $0x260] sm:$0xff] }
 0x7e6   :  { %v2737_v46 = vmax.f32 %v2488_v10, %v2650_v58  ;;  %v2727_v59 = vpop.f32.mrf.mxu1  ;;  %v3037_v10 = vld [vmem:[%s11890_s26 + $0x58] sm:$0xff]  ;;  %v3034_v52 = vld [vmem:[%s11890_s26 + $0x40] sm:$0xff] }
 0x7e7   :  { %v2739_v60 = vmax.f32 %v2565_v21, %v2727_v59  ;;  %v2654_v37 = vpop.f32.mrf.mxu0  ;;  %v3101_v21 = vld [vmem:[%s11890_s26 + $0x258] sm:$0xff]  ;;  %v3098_v57 = vld [vmem:[%s11890_s26 + $0x240] sm:$0xff]  ;;  %v3032_v59 = vld [vmem:[%s11890_s26 + $0x30] sm:$0xff] }
 0x7e8   :  { %v2731_v62 = vpop.f32.mrf.mxu1  ;;  %2936 = vmatprep.mubr.f32.mxu0 %v2737_v46  ;;  %v10848_v45 = vmax.f32 %v2492_v50, %v2654_v37  ;;  %v3036_v50 = vld [vmem:[%s11890_s26 + $0x50] sm:$0xff]  ;;  %v3033_v58 = vld [vmem:[%s11890_s26 + $0x38] sm:$0xff]  ;;  %v3031_v37 = vld [vmem:[%s11890_s26 + $0x28] sm:$0xff] }
 0x7e9   :  { %3013 = vmatprep.mubr.f32.mxu1 %v2739_v60  ;;  %v2656_v9 = vpop.f32.mrf.mxu0  ;;  %2937 = vmatmul.mubr.f32.vlgmr.msra.gmra.mxu0 %v10830_v34  ;;  %v10852_v38 = vmax.f32 %v2569_v41, %v2731_v62  ;;  %v3100_v41 = vld [vmem:[%s11890_s26 + $0x250] sm:$0xff]  ;;  %v3030_v62 = vld [vmem:[%s11890_s26 + $0x20] sm:$0xff] }
 0x7ea   :  { %v10840_v5 = vmax.f32 %v2494_v42, %v2656_v9  ;;  %v2733_v6 = vpop.f32.mrf.mxu1  ;;  %3014 = vmatmul.mubr.f32.vlgmr.msra.gmra.mxu1 %v10833_v28  ;;  %3155 = vmatpush1.msra.mxu0 %v3056_v61  ;;  %v3035_v42 = vld [vmem:[%s11890_s26 + $0x48] sm:$0xff]  ;;  %v3093_v9 = vld [vmem:[%s11890_s26 + $0x218] sm:$0xff] }
 0x7eb   :  { %v10844_v54 = vmax.f32 %v2571_v51, %v2733_v6  ;;  %3232 = vmatpush1.msra.mxu1 %v3120_v49  ;;  %3156 = vmatprep.subr.mxu0 %v3055_v30  ;;  %v3099_v51 = vld [vmem:[%s11890_s26 + $0x248] sm:$0xff]  ;;  %v3094_v49 = vld [vmem:[%s11890_s26 + $0x220] sm:$0xff]  ;;  %v3029_v30 = vld [vmem:[%s11890_s26 + $0x18] sm:$0xff] }
 0x7ec   :  { %3233 = vmatprep.subr.mxu1 %v3119_v55  ;;  %3157 = vmatpush1.msra.mxu0 %v3054_v2  ;;  %v3095_v61 = vld [vmem:[%s11890_s26 + $0x228] sm:$0xff]  ;;  %v3028_v55 = vld [vmem:[%s11890_s26 + $0x10] sm:$0xff] }
 0x7ed   :  { %3234 = vmatpush1.msra.mxu1 %v3118_v7  ;;  %2942 = vmatprep.mubr.f32.mxu0 %v10840_v5  ;;  %v3092_v2 = vld [vmem:[%s11890_s26 + $0x210] sm:$0xff]  ;;  %v3027_v6 = vld [vmem:[%s11890_s26 + $0x8] sm:$0xff] }
 0x7ee   :  { %3019 = vmatprep.mubr.f32.mxu1 %v10844_v54  ;;  %3158 = vmatprep.subr.mxu0 %v3053_v53  ;;  %v3091_v7 = vld [vmem:[%s11890_s26 + $0x208] sm:$0xff]  ;;  %v3026_v53 = vld [vmem:[%s11890_s26] sm:$0xff] }
 0x7ef   :  { %3235 = vmatprep.subr.mxu1 %v3117_v0  ;;  %2943 = vmatmul.mubr.f32.gmra.mxu0 %v10848_v45  ;;  %v3090_v0 = vld [vmem:[%s11890_s26 + $0x200] sm:$0xff] }
 0x7f0   :  { %3020 = vmatmul.mubr.f32.gmra.mxu1 %v10852_v38  ;;  %3159 = vmatpush1.msra.mxu0 %v3052_v48  ;;  %v3089_v48 = vld [vmem:[%s11890_s26 + $0x1f8] sm:$0xff] }
 0x7f1   :  { %3236 = vmatpush1.msra.mxu1 %v3116_v3  ;;  %3160 = vmatprep.subr.mxu0 %v3051_v4  ;;  %v3153_v3 = vld [vmem:[%s11890_s26 + $0x3f8] sm:$0xff]  ;;  %v3088_v4 = vld [vmem:[%s11890_s26 + $0x1f0] sm:$0xff] }
 0x7f2   :  { %3218 = vmatprep.mubr.f32.mxu0 %v2737_v46  ;;  %3237 = vmatprep.subr.mxu1 %v3115_v11  ;;  %v3097_v46 = vld [vmem:[%s11890_s26 + $0x238] sm:$0xff]  ;;  %v3152_v11 = vld [vmem:[%s11890_s26 + $0x3f0] sm:$0xff] }
 0x7f3   :  { %3295 = vmatprep.mubr.f32.mxu1 %v2739_v60  ;;  %3161 = vmatpush1.msra.mxu0 %v3050_v29  ;;  %v3096_v60 = vld [vmem:[%s11890_s26 + $0x230] sm:$0xff]  ;;  %v3087_v29 = vld [vmem:[%s11890_s26 + $0x1e8] sm:$0xff] }
 0x7f4   :  { %3238 = vmatpush1.msra.mxu1 %v3114_v24  ;;  %3162 = vmatprep.subr.mxu0 %v3049_v33  ;;  %v3151_v24 = vld [vmem:[%s11890_s26 + $0x3e8] sm:$0xff]  ;;  %v3086_v33 = vld [vmem:[%s11890_s26 + $0x1e0] sm:$0xff] }
 0x7f5   :  { %3239 = vmatprep.subr.mxu1 %v3113_v32  ;;  %3163 = vmatpush1.msra.mxu0 %v3048_v36  ;;  %v3150_v32 = vld [vmem:[%s11890_s26 + $0x3e0] sm:$0xff]  ;;  %v3085_v36 = vld [vmem:[%s11890_s26 + $0x1d8] sm:$0xff] }
 0x7f6   :  { %3240 = vmatpush1.msra.mxu1 %v3112_v26  ;;  %3164 = vmatprep.subr.mxu0 %v3047_v20  ;;  %v3149_v26 = vld [vmem:[%s11890_s26 + $0x3d8] sm:$0xff]  ;;  %v3084_v20 = vld [vmem:[%s11890_s26 + $0x1d0] sm:$0xff] }
 0x7f7   :  { %3241 = vmatprep.subr.mxu1 %v3111_v35  ;;  %3165 = vmatpush1.msra.mxu0 %v3046_v27  ;;  %v3148_v35 = vld [vmem:[%s11890_s26 + $0x3d0] sm:$0xff]  ;;  %v3083_v27 = vld [vmem:[%s11890_s26 + $0x1c8] sm:$0xff] }
 0x7f8   :  { %3242 = vmatpush1.msra.mxu1 %v3110_v23  ;;  %3166 = vmatprep.subr.mxu0 %v3045_v13  ;;  %v3147_v23 = vld [vmem:[%s11890_s26 + $0x3c8] sm:$0xff]  ;;  %v3082_v13 = vld [vmem:[%s11890_s26 + $0x1c0] sm:$0xff] }
 0x7f9   :  { %3243 = vmatprep.subr.mxu1 %v3109_v12  ;;  %3167 = vmatpush1.msra.mxu0 %v3044_v22  ;;  %v3146_v12 = vld [vmem:[%s11890_s26 + $0x3c0] sm:$0xff]  ;;  %v3081_v22 = vld [vmem:[%s11890_s26 + $0x1b8] sm:$0xff] }
 0x7fa   :  { %3244 = vmatpush1.msra.mxu1 %v3108_v19  ;;  %3168 = vmatprep.subr.mxu0 %v3043_v14  ;;  %v3145_v19 = vld [vmem:[%s11890_s26 + $0x3b8] sm:$0xff]  ;;  %v3080_v14 = vld [vmem:[%s11890_s26 + $0x1b0] sm:$0xff] }
 0x7fb   :  { %3245 = vmatprep.subr.mxu1 %v3107_v15  ;;  %3169 = vmatpush1.msra.mxu0 %v3042_v16  ;;  %v3144_v15 = vld [vmem:[%s11890_s26 + $0x3b0] sm:$0xff]  ;;  %v3079_v16 = vld [vmem:[%s11890_s26 + $0x1a8] sm:$0xff] }
 0x7fc   :  { %3246 = vmatpush1.msra.mxu1 %v3106_v1  ;;  %3170 = vmatprep.subr.mxu0 %v3041_v31  ;;  %v3143_v1 = vld [vmem:[%s11890_s26 + $0x3a8] sm:$0xff]  ;;  %v3078_v31 = vld [vmem:[%s11890_s26 + $0x1a0] sm:$0xff] }
 0x7fd   :  { %3247 = vmatprep.subr.mxu1 %v3105_v25  ;;  %3171 = vmatpush1.msra.mxu0 %v3040_v47  ;;  %v3142_v25 = vld [vmem:[%s11890_s26 + $0x3a0] sm:$0xff]  ;;  %v3077_v47 = vld [vmem:[%s11890_s26 + $0x198] sm:$0xff] }
 0x7fe   :  { %3248 = vmatpush1.msra.mxu1 %v3104_v18  ;;  %3172 = vmatprep.subr.mxu0 %v3039_v43  ;;  %v3141_v18 = vld [vmem:[%s11890_s26 + $0x398] sm:$0xff]  ;;  %v3076_v43 = vld [vmem:[%s11890_s26 + $0x190] sm:$0xff] }
 0x7ff   :  { %3249 = vmatprep.subr.mxu1 %v3103_v39  ;;  %3173 = vmatpush1.msra.mxu0 %v3038_v17  ;;  %v3140_v39 = vld [vmem:[%s11890_s26 + $0x390] sm:$0xff]  ;;  %v3075_v17 = vld [vmem:[%s11890_s26 + $0x188] sm:$0xff] }
 0x800   :  { %3250 = vmatpush1.msra.mxu1 %v3102_v44  ;;  %3174 = vmatprep.subr.mxu0 %v3037_v10  ;;  %v3139_v44 = vld [vmem:[%s11890_s26 + $0x388] sm:$0xff]  ;;  %v3074_v10 = vld [vmem:[%s11890_s26 + $0x180] sm:$0xff] }
 0x801   :  { %3251 = vmatprep.subr.mxu1 %v3101_v21  ;;  %3175 = vmatpush1.msra.mxu0 %v3036_v50  ;;  %v3138_v21 = vld [vmem:[%s11890_s26 + $0x380] sm:$0xff]  ;;  %v3073_v50 = vld [vmem:[%s11890_s26 + $0x178] sm:$0xff] }
 0x802   :  { %3252 = vmatpush1.msra.mxu1 %v3100_v41  ;;  %3176 = vmatprep.subr.mxu0 %v3035_v42  ;;  %v3137_v41 = vld [vmem:[%s11890_s26 + $0x378] sm:$0xff]  ;;  %v3072_v42 = vld [vmem:[%s11890_s26 + $0x170] sm:$0xff] }
 0x803   :  { %3253 = vmatprep.subr.mxu1 %v3099_v51  ;;  %3177 = vmatpush1.msra.mxu0 %v3034_v52  ;;  %v3136_v51 = vld [vmem:[%s11890_s26 + $0x370] sm:$0xff]  ;;  %v3071_v52 = vld [vmem:[%s11890_s26 + $0x168] sm:$0xff] }
 0x804   :  { %3254 = vmatpush1.msra.mxu1 %v3098_v57  ;;  %3178 = vmatprep.subr.mxu0 %v3033_v58  ;;  %v3135_v57 = vld [vmem:[%s11890_s26 + $0x368] sm:$0xff]  ;;  %v3070_v58 = vld [vmem:[%s11890_s26 + $0x160] sm:$0xff] }
 0x805   :  { %3255 = vmatprep.subr.mxu1 %v3097_v46  ;;  %3179 = vmatpush1.msra.mxu0 %v3032_v59  ;;  %v3134_v46 = vld [vmem:[%s11890_s26 + $0x360] sm:$0xff]  ;;  %v3069_v59 = vld [vmem:[%s11890_s26 + $0x158] sm:$0xff] }
 0x806   :  { %3256 = vmatpush1.msra.mxu1 %v3096_v60  ;;  %3180 = vmatprep.subr.mxu0 %v3031_v37  ;;  %v3133_v60 = vld [vmem:[%s11890_s26 + $0x358] sm:$0xff]  ;;  %v3068_v37 = vld [vmem:[%s11890_s26 + $0x150] sm:$0xff] }
 0x807   :  { %3257 = vmatprep.subr.mxu1 %v3095_v61  ;;  %3181 = vmatpush1.msra.mxu0 %v3030_v62  ;;  %v3132_v61 = vld [vmem:[%s11890_s26 + $0x350] sm:$0xff]  ;;  %v3067_v62 = vld [vmem:[%s11890_s26 + $0x148] sm:$0xff] }
 0x808   :  { %3258 = vmatpush1.msra.mxu1 %v3094_v49  ;;  %3182 = vmatprep.subr.mxu0 %v3029_v30  ;;  %v3131_v49 = vld [vmem:[%s11890_s26 + $0x348] sm:$0xff]  ;;  %v3066_v30 = vld [vmem:[%s11890_s26 + $0x140] sm:$0xff] }
 0x809   :  { %3259 = vmatprep.subr.mxu1 %v3093_v9  ;;  %3183 = vmatpush1.msra.mxu0 %v3028_v55  ;;  %v3130_v9 = vld [vmem:[%s11890_s26 + $0x340] sm:$0xff]  ;;  %v3065_v55 = vld [vmem:[%s11890_s26 + $0x138] sm:$0xff] }
 0x80a   :  { %3260 = vmatpush1.msra.mxu1 %v3092_v2  ;;  %3184 = vmatprep.subr.mxu0 %v3027_v6  ;;  %v3129_v2 = vld [vmem:[%s11890_s26 + $0x338] sm:$0xff]  ;;  %v3064_v6 = vld [vmem:[%s11890_s26 + $0x130] sm:$0xff] }
 0x80b   :  { %3261 = vmatprep.subr.mxu1 %v3091_v7  ;;  %3185 = vmatpush1.msra.mxu0 %v3026_v53  ;;  %v3128_v7 = vld [vmem:[%s11890_s26 + $0x330] sm:$0xff]  ;;  %v3063_v53 = vld [vmem:[%s11890_s26 + $0x128] sm:$0xff] }
 0x80c   :  { %3262 = vmatpush1.msra.mxu1 %v3090_v0  ;;  %3186 = vmatprep.subr.mxu0 %v3089_v48  ;;  %v3127_v0 = vld [vmem:[%s11890_s26 + $0x328] sm:$0xff]  ;;  %v3062_v48 = vld [vmem:[%s11890_s26 + $0x120] sm:$0xff] }
 0x80d   :  { %3263 = vmatprep.subr.mxu1 %v3153_v3  ;;  %3187 = vmatpush2.msra.mxu0 %v3088_v4  ;;  %v3126_v3 = vld [vmem:[%s11890_s26 + $0x320] sm:$0xff]  ;;  %v3061_v4 = vld [vmem:[%s11890_s26 + $0x118] sm:$0xff] }
 0x80e   :  { %3264 = vmatpush2.msra.mxu1 %v3152_v11  ;;  %3188 = vmatprep.subr.mxu0 %v3087_v29  ;;  %v3125_v11 = vld [vmem:[%s11890_s26 + $0x318] sm:$0xff]  ;;  %v3060_v29 = vld [vmem:[%s11890_s26 + $0x110] sm:$0xff] }
 0x80f   :  { %3265 = vmatprep.subr.mxu1 %v3151_v24  ;;  %3189 = vmatpush2.msra.mxu0 %v3086_v33  ;;  %v3124_v24 = vld [vmem:[%s11890_s26 + $0x310] sm:$0xff]  ;;  %v3059_v33 = vld [vmem:[%s11890_s26 + $0x108] sm:$0xff] }
 0x810   :  { %3266 = vmatpush2.msra.mxu1 %v3150_v32  ;;  %3190 = vmatprep.subr.mxu0 %v3085_v36  ;;  %v3123_v32 = vld [vmem:[%s11890_s26 + $0x308] sm:$0xff]  ;;  %v3058_v36 = vld [vmem:[%s11890_s26 + $0x100] sm:$0xff] }
 0x811   :  { %3267 = vmatprep.subr.mxu1 %v3149_v26  ;;  %3191 = vmatpush2.msra.mxu0 %v3084_v20  ;;  %v3122_v26 = vld [vmem:[%s11890_s26 + $0x300] sm:$0xff] }
 0x812   :  { %3268 = vmatpush2.msra.mxu1 %v3148_v35  ;;  %3192 = vmatprep.subr.mxu0 %v3083_v27 }
 0x813   :  { %3269 = vmatprep.subr.mxu1 %v3147_v23  ;;  %3193 = vmatpush2.msra.mxu0 %v3082_v13 }
 0x814   :  { %3270 = vmatpush2.msra.mxu1 %v3146_v12  ;;  %3194 = vmatprep.subr.mxu0 %v3081_v22 }
 0x815   :  { %3271 = vmatprep.subr.mxu1 %v3145_v19  ;;  %3195 = vmatpush2.msra.mxu0 %v3080_v14 }
 0x816   :  { %3272 = vmatpush2.msra.mxu1 %v3144_v15  ;;  %3196 = vmatprep.subr.mxu0 %v3079_v16 }
 0x817   :  { %3273 = vmatprep.subr.mxu1 %v3143_v1  ;;  %3197 = vmatpush2.msra.mxu0 %v3078_v31 }
 0x818   :  { %3274 = vmatpush2.msra.mxu1 %v3142_v25  ;;  %3198 = vmatprep.subr.mxu0 %v3077_v47 }
 0x819   :  { %3275 = vmatprep.subr.mxu1 %v3141_v18  ;;  %3199 = vmatpush2.msra.mxu0 %v3076_v43 }
 0x81a   :  { %3276 = vmatpush2.msra.mxu1 %v3140_v39  ;;  %3200 = vmatprep.subr.mxu0 %v3075_v17 }
 0x81b   :  { %3277 = vmatprep.subr.mxu1 %v3139_v44  ;;  %3201 = vmatpush2.msra.mxu0 %v3074_v10 }
 0x81c   :  { %3278 = vmatpush2.msra.mxu1 %v3138_v21  ;;  %3202 = vmatprep.subr.mxu0 %v3073_v50 }
 0x81d   :  { %3279 = vmatprep.subr.mxu1 %v3137_v41  ;;  %3203 = vmatpush2.msra.mxu0 %v3072_v42  ;;  %v3312_v41 = vld [vmem:[#allocation25] sm:$0xff]  ;;  %v3398_v42 = vld [vmem:[#allocation26] sm:$0xff] }
 0x81e   :  { %3280 = vmatpush2.msra.mxu1 %v3136_v51  ;;  %3204 = vmatprep.subr.mxu0 %v3071_v52  ;;  %v8704_v51 = vld [vmem:[#allocation17 + $0x174] ss:$8 sps:$4 sm:$0xff]   ;;  %v8702_v52 = vld [vmem:[#allocation17 + $0x170] ss:$8 sps:$4 sm:$0xff]  }
 0x81f   :  { %3281 = vmatprep.subr.mxu1 %v3135_v57  ;;  %3205 = vmatpush2.msra.mxu0 %v3070_v58  ;;  %v8707_v57 = vld [vmem:[#allocation17 + $0x164] ss:$8 sps:$4 sm:$0xff]   ;;  %v8752_v58 = vld [vmem:[#allocation17 + $0x74] ss:$8 sps:$4 sm:$0xff]  }
 0x820   :  { %3282 = vmatpush2.msra.mxu1 %v3134_v46  ;;  %3206 = vmatprep.subr.mxu0 %v3069_v59  ;;  %v3313_v46 = vld [vmem:[#allocation25 + $0x8] sm:$0xff]  ;;  %v3399_v59 = vld [vmem:[#allocation26 + $0x8] sm:$0xff] }
 0x821   :  { %3283 = vmatprep.subr.mxu1 %v3133_v60  ;;  %3207 = vmatpush2.msra.mxu0 %v3068_v37  ;;  %v8750_v60 = vld [vmem:[#allocation17 + $0x70] ss:$8 sps:$4 sm:$0xff]   ;;  %v8705_v37 = vld [vmem:[#allocation17 + $0x160] ss:$8 sps:$4 sm:$0xff]  }
 0x822   :  { %3284 = vmatpush2.msra.mxu1 %v3132_v61  ;;  %3208 = vmatprep.subr.mxu0 %v3067_v62  ;;  %v8758_v61 = vld [vmem:[#allocation17 + $0x64] ss:$8 sps:$4 sm:$0xff]  }
 0x823   :  { %3285 = vmatprep.subr.mxu1 %v3131_v49  ;;  %3209 = vmatpush2.msra.mxu0 %v3066_v30  ;;  %v8710_v49 = vld [vmem:[#allocation17 + $0x154] ss:$8 sps:$4 sm:$0xff]   ;;  %v8756_v30 = vld [vmem:[#allocation17 + $0x60] ss:$8 sps:$4 sm:$0xff]  }
 0x824   :  { %3286 = vmatpush2.msra.mxu1 %v3130_v9  ;;  %3210 = vmatprep.subr.mxu0 %v3065_v55  ;;  %v8708_v9 = vld [vmem:[#allocation17 + $0x150] ss:$8 sps:$4 sm:$0xff]   ;;  %v8764_v55 = vld [vmem:[#allocation17 + $0x54] ss:$8 sps:$4 sm:$0xff]  }
 0x825   :  { %3287 = vmatprep.subr.mxu1 %v3129_v2  ;;  %3211 = vmatpush2.msra.mxu0 %v3064_v6  ;;  %v8713_v2 = vld [vmem:[#allocation17 + $0x144] ss:$8 sps:$4 sm:$0xff]   ;;  %v8762_v6 = vld [vmem:[#allocation17 + $0x50] ss:$8 sps:$4 sm:$0xff]  }
 0x826   :  { %3288 = vmatpush2.msra.mxu1 %v3128_v7  ;;  %3212 = vmatprep.subr.mxu0 %v3063_v53  ;;  %v8711_v7 = vld [vmem:[#allocation17 + $0x140] ss:$8 sps:$4 sm:$0xff]   ;;  %v8770_v53 = vld [vmem:[#allocation17 + $0x44] ss:$8 sps:$4 sm:$0xff]  }
 0x827   :  { %3289 = vmatprep.subr.mxu1 %v3127_v0  ;;  %3213 = vmatpush2.msra.mxu0 %v3062_v48  ;;  %v8716_v0 = vld [vmem:[#allocation17 + $0x134] ss:$8 sps:$4 sm:$0xff]   ;;  %v8768_v48 = vld [vmem:[#allocation17 + $0x40] ss:$8 sps:$4 sm:$0xff]  }
 0x828   :  { %3290 = vmatpush2.msra.mxu1 %v3126_v3  ;;  %3214 = vmatprep.subr.mxu0 %v3061_v4  ;;  %v8714_v3 = vld [vmem:[#allocation17 + $0x130] ss:$8 sps:$4 sm:$0xff]   ;;  %v8776_v4 = vld [vmem:[#allocation17 + $0x34] ss:$8 sps:$4 sm:$0xff]  }
 0x829   :  { %3291 = vmatprep.subr.mxu1 %v3125_v11  ;;  %3215 = vmatpush2.msra.mxu0 %v3060_v29  ;;  %v8719_v11 = vld [vmem:[#allocation17 + $0x124] ss:$8 sps:$4 sm:$0xff]   ;;  %v8774_v29 = vld [vmem:[#allocation17 + $0x30] ss:$8 sps:$4 sm:$0xff]  }
 0x82a   :  { %3292 = vmatpush2.msra.mxu1 %v3124_v24  ;;  %3216 = vmatprep.subr.mxu0 %v3059_v33  ;;  %v8717_v24 = vld [vmem:[#allocation17 + $0x120] ss:$8 sps:$4 sm:$0xff]   ;;  %v8782_v33 = vld [vmem:[#allocation17 + $0x24] ss:$8 sps:$4 sm:$0xff]  }
 0x82b   :  { %3293 = vmatprep.subr.mxu1 %v3123_v32  ;;  %3217 = vmatpush2.msra.mxu0 %v3058_v36  ;;  %v8722_v32 = vld [vmem:[#allocation17 + $0x114] ss:$8 sps:$4 sm:$0xff]   ;;  %v8780_v36 = vld [vmem:[#allocation17 + $0x20] ss:$8 sps:$4 sm:$0xff]  }
 0x82c   :  { %3294 = vmatpush2.msra.mxu1 %v3122_v26  ;;  %3219 = vmatmul.mubr.f32.vlgmr.msra.gmra.mxu0 %v10830_v34  ;;  %v8720_v26 = vld [vmem:[#allocation17 + $0x110] ss:$8 sps:$4 sm:$0xff]  }
 0x82d   :  { %3296 = vmatmul.mubr.f32.vlgmr.msra.gmra.mxu1 %v10833_v28  ;;  %3224 = vmatprep.mubr.f32.mxu0 %v10840_v5 }
 0x82e   :  { %3301 = vmatprep.mubr.f32.mxu1 %v10844_v54 }
 0x830   :  { %3225 = vmatmul.mubr.f32.gmra.mxu0 %v10848_v45 }
 0x831   :  { %3302 = vmatmul.mubr.f32.gmra.mxu1 %v10852_v38  ;;  %3385 = vmatprep.mubr.f32.mxu0 %v9699_v8 }
 0x832   :  { %3470 = vmatprep.mubr.f32.mxu1 %v9699_v8 }
 0x8a9   :  { %v2938_v20 = vpop.f32.mrf.mxu0 }
 0x8aa   :  { %v3015_v35 = vpop.f32.mrf.mxu1 }
 0x8ab   :  { %v2940_v27 = vpop.f32.mrf.mxu0  ;;  %v3016_v38 = vadd.f32 %v3015_v35, %v2938_v20  ;;  %v8788_v20 = vld [vmem:[#allocation17 + $0x14] ss:$8 sps:$4 sm:$0xff]   ;;  %v8725_v35 = vld [vmem:[#allocation17 + $0x104] ss:$8 sps:$4 sm:$0xff]  }
 0x8ac   :  { %v3017_v23 = vpop.f32.mrf.mxu1 }
 0x8ad   :  { %v3018_v44 = vadd.f32 %v3017_v23, %v2940_v27  ;;  %v8786_v27 = vld [vmem:[#allocation17 + $0x10] ss:$8 sps:$4 sm:$0xff]   ;;  %v8723_v23 = vld [vmem:[#allocation17 + $0x100] ss:$8 sps:$4 sm:$0xff]  }
 0x8af   :  { %v2944_v13 = vpop.f32.mrf.mxu0 }
 0x8b0   :  { %v3021_v34 = vpop.f32.mrf.mxu1 }
 0x8b1   :  { %v2946_v12 = vpop.f32.mrf.mxu0  ;;  %v3022_v16 = vadd.f32 %v3021_v34, %v2944_v13  ;;  %v8794_v13 = vld [vmem:[#allocation17 + $0x4] ss:$8 sps:$4 sm:$0xff]   ;;  %v8728_v34 = vld [vmem:[#allocation17 + $0x1f4] ss:$8 sps:$4 sm:$0xff]  }
 0x8b2   :  { %v3023_v28 = vpop.f32.mrf.mxu1 }
 0x8b3   :  { %v3024_v25 = vadd.f32 %v3023_v28, %v2946_v12  ;;  %v8792_v12 = vld [vmem:[#allocation17] ss:$8 sps:$4 sm:$0xff]   ;;  %v8726_v28 = vld [vmem:[#allocation17 + $0x1f0] ss:$8 sps:$4 sm:$0xff]  }
 0x8ec   :  { %v3220_v22 = vpop.f32.mrf.mxu0 }
 0x8ed   :  { %v3297_v5 = vpop.f32.mrf.mxu1 }
 0x8ee   :  { %v3222_v19 = vpop.f32.mrf.mxu0  ;;  %v3298_v14 = vadd.f32 %v3297_v5, %v3220_v22  ;;  %v8800_v22 = vld [vmem:[#allocation17 + $0xf4] ss:$8 sps:$4 sm:$0xff]   ;;  %v8731_v5 = vld [vmem:[#allocation17 + $0x1e4] ss:$8 sps:$4 sm:$0xff]  }
 0x8ef   :  { %v3299_v54 = vpop.f32.mrf.mxu1 }
 0x8f0   :  { %v3226_v45 = vpop.f32.mrf.mxu0  ;;  %v10982_v18 = vmax.f32 %v3016_v38, %v3298_v14  ;;  %v3300_v43 = vadd.f32 %v3299_v54, %v3222_v19  ;;  %v8798_v19 = vld [vmem:[#allocation17 + $0xf0] ss:$8 sps:$4 sm:$0xff]   ;;  %v8729_v54 = vld [vmem:[#allocation17 + $0x1e0] ss:$8 sps:$4 sm:$0xff]   ;;  %v8806_v14 = vld [vmem:[#allocation17 + $0xe4] ss:$8 sps:$4 sm:$0xff]  }
 0x8f1   :  { %v3303_v15 = vpop.f32.mrf.mxu1  ;;  %v8732_v38 = vld [vmem:[#allocation17 + $0x1d0] ss:$8 sps:$4 sm:$0xff]  }
 0x8f2   :  { %v3304_v1 = vadd.f32 %v3303_v15, %v3226_v45  ;;  %v3228_v31 = vpop.f32.mrf.mxu0  ;;  %v3309_v50 = vmax.f32 %v3018_v44, %v3300_v43  ;;  %v8734_v45 = vld [vmem:[#allocation17 + $0x1d4] ss:$8 sps:$4 sm:$0xff]   ;;  %v8804_v15 = vld [vmem:[#allocation17 + $0xe0] ss:$8 sps:$4 sm:$0xff]   ;;  %v8738_v44 = vld [vmem:[#allocation17 + $0x1b0] ss:$8 sps:$4 sm:$0xff]  }
 0x8f3   :  { %v3305_v47 = vpop.f32.mrf.mxu1  ;;  %v8740_v43 = vld [vmem:[#allocation17 + $0x1b4] ss:$8 sps:$4 sm:$0xff]  }
 0x8f4   :  { %v10984_v39 = vmax.f32 %v3022_v16, %v3304_v1  ;;  %v3306_v17 = vadd.f32 %v3305_v47, %v3228_v31  ;;  %v8812_v16 = vld [vmem:[#allocation17 + $0xd4] ss:$8 sps:$4 sm:$0xff]   ;;  %v8737_v1 = vld [vmem:[#allocation17 + $0x1c4] ss:$8 sps:$4 sm:$0xff]   ;;  %v8810_v31 = vld [vmem:[#allocation17 + $0xd0] ss:$8 sps:$4 sm:$0xff]  }
 0x8f5   :  { %v8818_v47 = vld [vmem:[#allocation17 + $0xc4] ss:$8 sps:$4 sm:$0xff]  }
 0x8f6   :  { %v3517_v10 = vpack.c.bf16 %v10984_v39, %v10982_v18  ;;  %v3311_v21 = vmax.f32 %v3024_v25, %v3306_v17  ;;  %v8735_v25 = vld [vmem:[#allocation17 + $0x1c0] ss:$8 sps:$4 sm:$0xff]  }
 0x8f7   :  { %v8816_v17 = vld [vmem:[#allocation17 + $0xc0] ss:$8 sps:$4 sm:$0xff]  }
 0x8f8   :  { %3349 = vmatprep.subr.mxu0 %v3311_v21  ;;  %3434 = vmatprep.subr.mxu1 %v3311_v21  ;;  %v3518_v62 = vpack.c.bf16 %v3311_v21, %v3309_v50  ;;  %v8824_v21 = vld [vmem:[#allocation17 + $0xb4] ss:$8 sps:$4 sm:$0xff]  }
 0x8f9   :  { %3350 = vmatpush1.msra.mxu0 %v10984_v39  ;;  %3435 = vmatpush1.msra.mxu1 %v10984_v39  ;;  %v8777_v39 = vld [vmem:[#allocation17 + $0x230] ss:$8 sps:$4 sm:$0xff]  }
 0x8fa   :  { %3351 = vmatprep.subr.mxu0 %v3309_v50  ;;  %3436 = vmatprep.subr.mxu1 %v3309_v50  ;;  %v8743_v50 = vld [vmem:[#allocation17 + $0x1a4] ss:$8 sps:$4 sm:$0xff]  }
 0x8fb   :  { %3352 = vmatpush1.msra.mxu0 %v10982_v18  ;;  %3437 = vmatpush1.msra.mxu1 %v10982_v18  ;;  %v8779_v18 = vld [vmem:[#allocation17 + $0x234] ss:$8 sps:$4 sm:$0xff]  }
 0x8fc   :  { %7446 = vmatmul.mubr.msk.f32.vlgmr.msra.gmra.mxu0 %vm3314_vm2, %v3312_v41  ;;  %7448 = vmatmul.mubr.msk.f32.vlgmr.msra.gmra.mxu1 %vm3314_vm2, %v3398_v42  ;;  %v8822_v41 = vld [vmem:[#allocation17 + $0xb0] ss:$8 sps:$4 sm:$0xff]   ;;  %v8741_v42 = vld [vmem:[#allocation17 + $0x1a0] ss:$8 sps:$4 sm:$0xff]  }
 0x8fd   :  { %3712 = vmatprep.subr.bf16.mxu0 %v8704_v51  ;;  %3391 = vmatprep.mubr.f32.mxu0 %v9699_v8  ;;  %v8830_v51 = vld [vmem:[#allocation17 + $0xa4] ss:$8 sps:$4 sm:$0xff]  }
 0x8fe   :  { %3713 = vmatpush1.bf16.msra.mxu0 %v8702_v52  ;;  %3476 = vmatprep.mubr.f32.mxu1 %v9699_v8  ;;  %v8746_v52 = vld [vmem:[#allocation17 + $0x194] ss:$8 sps:$4 sm:$0xff]  }
 0x8ff   :  { %3714 = vmatprep.subr.bf16.mxu0 %v8707_v57  ;;  %3915 = vmatprep.subr.bf16.mxu1 %v8752_v58  ;;  %v8828_v57 = vld [vmem:[#allocation17 + $0xa0] ss:$8 sps:$4 sm:$0xff]   ;;  %v8744_v58 = vld [vmem:[#allocation17 + $0x190] ss:$8 sps:$4 sm:$0xff]  }
 0x900   :  { %7447 = vmatmul.mubr.msk.f32.gmra.mxu0 %vm3314_vm2, %v3313_v46  ;;  %7449 = vmatmul.mubr.msk.f32.gmra.mxu1 %vm3314_vm2, %v3399_v59  ;;  %v8749_v46 = vld [vmem:[#allocation17 + $0x184] ss:$8 sps:$4 sm:$0xff]   ;;  %v8747_v59 = vld [vmem:[#allocation17 + $0x180] ss:$8 sps:$4 sm:$0xff]  }
 0x901   :  { %3744 = vmatprep.mubr.bf16.mxu0 %v3518_v62  ;;  %3916 = vmatpush1.bf16.msra.mxu1 %v8750_v60  ;;  %v8755_v60 = vld [vmem:[#allocation17 + $0x274] ss:$8 sps:$4 sm:$0xff]  }
 0x902   :  { %3715 = vmatpush1.bf16.msra.mxu0 %v8705_v37  ;;  %3917 = vmatprep.subr.bf16.mxu1 %v8758_v61  ;;  %v8753_v37 = vld [vmem:[#allocation17 + $0x270] ss:$8 sps:$4 sm:$0xff]   ;;  %v8761_v61 = vld [vmem:[#allocation17 + $0x264] ss:$8 sps:$4 sm:$0xff]   ;;  %v8836_v62 = vld [vmem:[#allocation17 + $0x94] ss:$8 sps:$4 sm:$0xff]  }
 0x903   :  { %3716 = vmatprep.subr.bf16.mxu0 %v8710_v49  ;;  %v8759_v49 = vld [vmem:[#allocation17 + $0x260] ss:$8 sps:$4 sm:$0xff]  }
 0x905   :  { %3918 = vmatpush1.bf16.msra.mxu1 %v8756_v30  ;;  %v8834_v30 = vld [vmem:[#allocation17 + $0x90] ss:$8 sps:$4 sm:$0xff]  }
 0x906   :  { %3717 = vmatpush1.bf16.msra.mxu0 %v8708_v9  ;;  %3919 = vmatprep.subr.bf16.mxu1 %v8764_v55  ;;  %v8767_v9 = vld [vmem:[#allocation17 + $0x254] ss:$8 sps:$4 sm:$0xff]   ;;  %v8842_v55 = vld [vmem:[#allocation17 + $0x84] ss:$8 sps:$4 sm:$0xff]  }
 0x907   :  { %3718 = vmatprep.subr.bf16.mxu0 %v8713_v2  ;;  %v8765_v2 = vld [vmem:[#allocation17 + $0x250] ss:$8 sps:$4 sm:$0xff]  }
 0x909   :  { %3920 = vmatpush1.bf16.msra.mxu1 %v8762_v6  ;;  %v8840_v6 = vld [vmem:[#allocation17 + $0x80] ss:$8 sps:$4 sm:$0xff]  }
 0x90a   :  { %3719 = vmatpush1.bf16.msra.mxu0 %v8711_v7  ;;  %3921 = vmatprep.subr.bf16.mxu1 %v8770_v53  ;;  %v8773_v7 = vld [vmem:[#allocation17 + $0x244] ss:$8 sps:$4 sm:$0xff]   ;;  %v8771_v53 = vld [vmem:[#allocation17 + $0x240] ss:$8 sps:$4 sm:$0xff]  }
 0x90b   :  { %3720 = vmatprep.subr.bf16.mxu0 %v8716_v0  ;;  %v8783_v0 = vld [vmem:[#allocation17 + $0x220] ss:$8 sps:$4 sm:$0xff]  }
 0x90d   :  { %3922 = vmatpush1.bf16.msra.mxu1 %v8768_v48  ;;  %v8791_v48 = vld [vmem:[#allocation17 + $0x214] ss:$8 sps:$4 sm:$0xff]  }
 0x90e   :  { %3721 = vmatpush1.bf16.msra.mxu0 %v8714_v3  ;;  %3923 = vmatprep.subr.bf16.mxu1 %v8776_v4  ;;  %v8789_v3 = vld [vmem:[#allocation17 + $0x210] ss:$8 sps:$4 sm:$0xff]   ;;  %v8797_v4 = vld [vmem:[#allocation17 + $0x204] ss:$8 sps:$4 sm:$0xff]  }
 0x90f   :  { %3722 = vmatprep.subr.bf16.mxu0 %v8719_v11  ;;  %v8795_v11 = vld [vmem:[#allocation17 + $0x200] ss:$8 sps:$4 sm:$0xff]  }
 0x911   :  { %3924 = vmatpush1.bf16.msra.mxu1 %v8774_v29  ;;  %v8803_v29 = vld [vmem:[#allocation17 + $0x2f4] ss:$8 sps:$4 sm:$0xff]  }
 0x912   :  { %3723 = vmatpush1.bf16.msra.mxu0 %v8717_v24  ;;  %3925 = vmatprep.subr.bf16.mxu1 %v8782_v33  ;;  %v8801_v24 = vld [vmem:[#allocation17 + $0x2f0] ss:$8 sps:$4 sm:$0xff]   ;;  %v8809_v33 = vld [vmem:[#allocation17 + $0x2e4] ss:$8 sps:$4 sm:$0xff]  }
 0x913   :  { %3724 = vmatprep.subr.bf16.mxu0 %v8722_v32  ;;  %v8807_v32 = vld [vmem:[#allocation17 + $0x2e0] ss:$8 sps:$4 sm:$0xff]  }
 0x915   :  { %3926 = vmatpush1.bf16.msra.mxu1 %v8780_v36  ;;  %v8815_v36 = vld [vmem:[#allocation17 + $0x2d4] ss:$8 sps:$4 sm:$0xff]  }
 0x916   :  { %3725 = vmatpush1.bf16.msra.mxu0 %v8720_v26  ;;  %3927 = vmatprep.subr.bf16.mxu1 %v8788_v20  ;;  %v8813_v26 = vld [vmem:[#allocation17 + $0x2d0] ss:$8 sps:$4 sm:$0xff]   ;;  %v8821_v20 = vld [vmem:[#allocation17 + $0x2c4] ss:$8 sps:$4 sm:$0xff]  }
 0x917   :  { %3726 = vmatprep.subr.bf16.mxu0 %v8725_v35  ;;  %v8819_v35 = vld [vmem:[#allocation17 + $0x2c0] ss:$8 sps:$4 sm:$0xff]  }
 0x919   :  { %3928 = vmatpush1.bf16.msra.mxu1 %v8786_v27  ;;  %v8827_v27 = vld [vmem:[#allocation17 + $0x2b4] ss:$8 sps:$4 sm:$0xff]  }
 0x91a   :  { %3727 = vmatpush1.bf16.msra.mxu0 %v8723_v23  ;;  %3929 = vmatprep.subr.bf16.mxu1 %v8794_v13  ;;  %v8825_v23 = vld [vmem:[#allocation17 + $0x2b0] ss:$8 sps:$4 sm:$0xff]   ;;  %v8833_v13 = vld [vmem:[#allocation17 + $0x2a4] ss:$8 sps:$4 sm:$0xff]  }
 0x91b   :  { %3728 = vmatprep.subr.bf16.mxu0 %v8728_v34  ;;  %v8831_v34 = vld [vmem:[#allocation17 + $0x2a0] ss:$8 sps:$4 sm:$0xff]  }
 0x91d   :  { %3930 = vmatpush1.bf16.msra.mxu1 %v8792_v12  ;;  %v8839_v12 = vld [vmem:[#allocation17 + $0x294] ss:$8 sps:$4 sm:$0xff]  }
 0x91e   :  { %3729 = vmatpush2.bf16.msra.mxu0 %v8726_v28  ;;  %3931 = vmatprep.subr.bf16.mxu1 %v8800_v22  ;;  %v8837_v28 = vld [vmem:[#allocation17 + $0x290] ss:$8 sps:$4 sm:$0xff]   ;;  %v8845_v22 = vld [vmem:[#allocation17 + $0x284] ss:$8 sps:$4 sm:$0xff]  }
 0x91f   :  { %3730 = vmatprep.subr.bf16.mxu0 %v8731_v5  ;;  %v8843_v5 = vld [vmem:[#allocation17 + $0x280] ss:$8 sps:$4 sm:$0xff]  }
 0x921   :  { %3932 = vmatpush2.bf16.msra.mxu1 %v8798_v19  ;;  %v11002_v19 = vld [vmem:[%s11891_s14 + $0xf8] sm:$0xff] }
 0x922   :  { %3731 = vmatpush2.bf16.msra.mxu0 %v8729_v54  ;;  %3933 = vmatprep.subr.bf16.mxu1 %v8806_v14 }
 0x923   :  { %3732 = vmatprep.subr.bf16.mxu0 %v8734_v45 }
 0x925   :  { %3934 = vmatpush2.bf16.msra.mxu1 %v8804_v15 }
 0x926   :  { %3733 = vmatpush2.bf16.msra.mxu0 %v8732_v38  ;;  %3935 = vmatprep.subr.bf16.mxu1 %v8812_v16 }
 0x927   :  { %3734 = vmatprep.subr.bf16.mxu0 %v8737_v1 }
 0x929   :  { %3936 = vmatpush2.bf16.msra.mxu1 %v8810_v31 }
 0x92a   :  { %3735 = vmatpush2.bf16.msra.mxu0 %v8735_v25  ;;  %3937 = vmatprep.subr.bf16.mxu1 %v8818_v47 }
 0x92b   :  { %3736 = vmatprep.subr.bf16.mxu0 %v8740_v43 }
 0x92d   :  { %3938 = vmatpush2.bf16.msra.mxu1 %v8816_v17 }
 0x92e   :  { %3737 = vmatpush2.bf16.msra.mxu0 %v8738_v44  ;;  %3939 = vmatprep.subr.bf16.mxu1 %v8824_v21  ;;  %v11006_v44 = vld [vmem:[%s11891_s14 + $0x78] sm:$0xff]  ;;  %v11009_v21 = vld [vmem:[%s11891_s14 + $0xf0] sm:$0xff] }
 0x92f   :  { %3738 = vmatprep.subr.bf16.mxu0 %v8743_v50  ;;  %v11012_v50 = vld [vmem:[%s11891_s14 + $0x70] sm:$0xff] }
 0x931   :  { %3940 = vmatpush2.bf16.msra.mxu1 %v8822_v41  ;;  %v11019_v41 = vld [vmem:[%s11891_s14 + $0xe8] sm:$0xff] }
 0x932   :  { %3739 = vmatpush2.bf16.msra.mxu0 %v8741_v42  ;;  %3941 = vmatprep.subr.bf16.mxu1 %v8830_v51  ;;  %v11023_v42 = vld [vmem:[%s11891_s14 + $0x68] sm:$0xff]  ;;  %v11027_v51 = vld [vmem:[%s11891_s14 + $0xe0] sm:$0xff] }
 0x933   :  { %3740 = vmatprep.subr.bf16.mxu0 %v8746_v52  ;;  %v11031_v52 = vld [vmem:[%s11891_s14 + $0x60] sm:$0xff] }
 0x935   :  { %3942 = vmatpush2.bf16.msra.mxu1 %v8828_v57  ;;  %v11035_v57 = vld [vmem:[%s11891_s14 + $0xd8] sm:$0xff] }
 0x936   :  { %3741 = vmatpush2.bf16.msra.mxu0 %v8744_v58  ;;  %3943 = vmatprep.subr.bf16.mxu1 %v8836_v62  ;;  %v11039_v58 = vld [vmem:[%s11891_s14 + $0x58] sm:$0xff]  ;;  %v11063_v62 = vld [vmem:[%s11891_s14 + $0x40] sm:$0xff] }
 0x937   :  { %3742 = vmatprep.subr.bf16.mxu0 %v8749_v46  ;;  %v11043_v46 = vld [vmem:[%s11891_s14 + $0xd0] sm:$0xff] }
 0x939   :  { %3944 = vmatpush2.bf16.msra.mxu1 %v8834_v30  ;;  %v11071_v30 = vld [vmem:[%s11891_s14 + $0x38] sm:$0xff] }
 0x93a   :  { %3743 = vmatpush2.bf16.msra.mxu0 %v8747_v59  ;;  %3945 = vmatprep.subr.bf16.mxu1 %v8842_v55  ;;  %v11047_v59 = vld [vmem:[%s11891_s14 + $0x50] sm:$0xff] }
 0x93b   :  { %4153 = vmatprep.subr.bf16.mxu0 %v8755_v60  ;;  %v11051_v60 = vld [vmem:[%s11891_s14 + $0xc8] sm:$0xff]  ;;  %v11079_v55 = vld [vmem:[%s11891_s14 + $0x30] sm:$0xff] }
 0x93d   :  { %3745 = vmatmul.mubr.bf16.vlgmr.msra.gmra.mxu0 %v3517_v10  ;;  %3946 = vmatpush2.bf16.msra.mxu1 %v8840_v6  ;;  %v8785_v10 = vld [vmem:[#allocation17 + $0x224] ss:$8 sps:$4 sm:$0xff]   ;;  %v11087_v6 = vld [vmem:[%s11891_s14 + $0x28] sm:$0xff] }
 0x93e   :  { %4154 = vmatpush1.bf16.msra.mxu0 %v8753_v37  ;;  %7771 = vmatprep.subr.mxu1 %v11002_v19  ;;  %v11055_v37 = vld [vmem:[%s11891_s14 + $0x48] sm:$0xff] }
 0x93f   :  { %4155 = vmatprep.subr.bf16.mxu0 %v8761_v61  ;;  %v11059_v61 = vld [vmem:[%s11891_s14 + $0xc0] sm:$0xff] }
 0x942   :  { %4156 = vmatpush1.bf16.msra.mxu0 %v8759_v49  ;;  %v11067_v49 = vld [vmem:[%s11891_s14 + $0xb8] sm:$0xff] }
 0x943   :  { %4157 = vmatprep.subr.bf16.mxu0 %v8767_v9  ;;  %v11075_v9 = vld [vmem:[%s11891_s14 + $0xb0] sm:$0xff] }
 0x946   :  { %4158 = vmatpush1.bf16.msra.mxu0 %v8765_v2  ;;  %v11083_v2 = vld [vmem:[%s11891_s14 + $0xa8] sm:$0xff] }
 0x947   :  { %4159 = vmatprep.subr.bf16.mxu0 %v8773_v7  ;;  %v11091_v7 = vld [vmem:[%s11891_s14 + $0xa0] sm:$0xff] }
 0x94a   :  { %4160 = vmatpush1.bf16.msra.mxu0 %v8771_v53  ;;  %v11095_v53 = vld [vmem:[%s11891_s14 + $0x20] sm:$0xff] }
 0x94b   :  { %4161 = vmatprep.subr.bf16.mxu0 %v8779_v18  ;;  %v11098_v18 = vld [vmem:[%s11891_s14 + $0x98] sm:$0xff] }
 0x94e   :  { %4162 = vmatpush1.bf16.msra.mxu0 %v8777_v39  ;;  %v11101_v39 = vld [vmem:[%s11891_s14 + $0x18] sm:$0xff] }
 0x94f   :  { %4163 = vmatprep.subr.bf16.mxu0 %v8785_v10  ;;  %v11105_v10 = vld [vmem:[%s11891_s14 + $0x90] sm:$0xff] }
 0x952   :  { %4164 = vmatpush1.bf16.msra.mxu0 %v8783_v0  ;;  %v11109_v0 = vld [vmem:[%s11891_s14 + $0x10] sm:$0xff] }
 0x953   :  { %4165 = vmatprep.subr.bf16.mxu0 %v8791_v48  ;;  %v11113_v48 = vld [vmem:[%s11891_s14 + $0x88] sm:$0xff] }
 0x956   :  { %4166 = vmatpush1.bf16.msra.mxu0 %v8789_v3  ;;  %v11117_v3 = vld [vmem:[%s11891_s14 + $0x8] sm:$0xff] }
 0x957   :  { %4167 = vmatprep.subr.bf16.mxu0 %v8797_v4  ;;  %v11121_v4 = vld [vmem:[%s11891_s14 + $0x80] sm:$0xff] }
 0x95a   :  { %4168 = vmatpush1.bf16.msra.mxu0 %v8795_v11  ;;  %v11125_v11 = vld [vmem:[%s11891_s14] sm:$0xff] }
 0x95b   :  { %4169 = vmatprep.subr.bf16.mxu0 %v8803_v29  ;;  %v4340_v29 = vld [vmem:[#allocation23 + $0x38] sm:$0xff] }
 0x95e   :  { %4170 = vmatpush2.bf16.msra.mxu0 %v8801_v24 }
 0x95f   :  { %4171 = vmatprep.subr.bf16.mxu0 %v8809_v33 }
 0x962   :  { %4172 = vmatpush2.bf16.msra.mxu0 %v8807_v32 }
 0x963   :  { %4173 = vmatprep.subr.bf16.mxu0 %v8815_v36 }
 0x966   :  { %4174 = vmatpush2.bf16.msra.mxu0 %v8813_v26 }
 0x967   :  { %4175 = vmatprep.subr.bf16.mxu0 %v8821_v20 }
 0x96a   :  { %4176 = vmatpush2.bf16.msra.mxu0 %v8819_v35 }
 0x96b   :  { %4177 = vmatprep.subr.bf16.mxu0 %v8827_v27  ;;  %v4200_v27 = vld [vmem:[#allocation19] sm:$0x3] }
 0x96e   :  { %4178 = vmatpush2.bf16.msra.mxu0 %v8825_v23 }
 0x96f   :  { %4179 = vmatprep.subr.bf16.mxu0 %v8833_v13 }
 0x972   :  { %4180 = vmatpush2.bf16.msra.mxu0 %v8831_v34 }
 0x973   :  { %4181 = vmatprep.subr.bf16.mxu0 %v8839_v12 }
 0x976   :  { %4182 = vmatpush2.bf16.msra.mxu0 %v8837_v28 }
 0x977   :  { %4183 = vmatprep.subr.bf16.mxu0 %v8845_v22 }
 0x97a   :  { %4184 = vmatpush2.bf16.msra.mxu0 %v8843_v5  ;;  %v4205_v5 = vrot.slane %v4200_v27, %v11884_v56 }
 0x97b   :  { %4545 = vmatprep.subr.mxu0 %v4340_v29 }
 0x9bc   :  { %v3387_v54 = vpop.f32.mrf.mxu0  ;;  %v3472_v14 = vpop.f32.mrf.mxu1 }
 0x9be   :  { %v3389_v45 = vpop.f32.mrf.mxu0  ;;  %v3474_v15 = vpop.f32.mrf.mxu1 }
 0x9c0   :  { %v3393_v38 = vpop.f32.mrf.mxu0  ;;  %v3478_v16 = vpop.f32.mrf.mxu1 }
 0x9c1   :  { %v3483_v43 = vpack.c.bf16 %v3393_v38, %v3387_v54  ;;  %v3958_v17 = vpack.c.bf16 %v3478_v16, %v3472_v14 }
 0x9c2   :  { %v3395_v1 = vpop.f32.mrf.mxu0  ;;  %v3480_v31 = vpop.f32.mrf.mxu1 }
 0x9c3   :  { %v3484_v25 = vpack.c.bf16 %v3395_v1, %v3389_v45  ;;  %v3959_v47 = vpack.c.bf16 %v3480_v31, %v3474_v15  ;;  %v4209_v15 = vrot.slane %v4200_v27, %v11886_v40 }
 0x9c5   :  { %3947 = vmatprep.mubr.bf16.mxu1 %v3484_v25  ;;  %4185 = vmatprep.mubr.bf16.mxu0 %v3959_v47 }
 0x9c6   :  { %3948 = vmatmul.mubr.bf16.vlgmr.msra.gmra.mxu1 %v3483_v43  ;;  %4186 = vmatmul.mubr.bf16.vlgmr.msra.gmra.mxu0 %v3958_v17 }
 0x9c7   :  { %7772 = vmatpush3.msra.mxu1 %v11006_v44  ;;  %4585 = vmatprep.mubr.f32.mxu0 %v9699_v8 }
 0x9c8   :  { %7773 = vmatprep.subr.mxu1 %v11009_v21 }
 0x9c9   :  { %7774 = vmatpush3.msra.mxu1 %v11012_v50 }
 0x9ca   :  { %7775 = vmatprep.subr.mxu1 %v11019_v41 }
 0x9cb   :  { %7776 = vmatpush3.msra.mxu1 %v11023_v42 }
 0x9cc   :  { %7777 = vmatprep.subr.mxu1 %v11027_v51 }
 0x9cd   :  { %7778 = vmatpush3.msra.mxu1 %v11031_v52 }
 0x9ce   :  { %7779 = vmatprep.subr.mxu1 %v11035_v57 }
 0x9cf   :  { %7780 = vmatpush3.msra.mxu1 %v11039_v58 }
 0x9d0   :  { %7781 = vmatprep.subr.mxu1 %v11043_v46 }
 0x9d1   :  { %7782 = vmatpush3.msra.mxu1 %v11047_v59 }
 0x9d2   :  { %7783 = vmatprep.subr.mxu1 %v11051_v60 }
 0x9d3   :  { %7784 = vmatpush3.msra.mxu1 %v11055_v37 }
 0x9d4   :  { %7785 = vmatprep.subr.mxu1 %v11059_v61 }
 0x9d5   :  { %7786 = vmatpush3.msra.mxu1 %v11063_v62 }
 0x9d6   :  { %7787 = vmatprep.subr.mxu1 %v11067_v49 }
 0x9d7   :  { %7788 = vmatpush3.msra.mxu1 %v11071_v30 }
 0x9d8   :  { %7789 = vmatprep.subr.mxu1 %v11075_v9 }
 0x9d9   :  { %7790 = vmatpush3.msra.mxu1 %v11079_v55 }
 0x9da   :  { %7791 = vmatprep.subr.mxu1 %v11083_v2 }
 0x9db   :  { %7792 = vmatpush3.msra.mxu1 %v11087_v6 }
 0x9dc   :  { %7793 = vmatprep.subr.mxu1 %v11091_v7 }
 0x9dd   :  { %7794 = vmatpush3.msra.mxu1 %v11095_v53 }
 0x9de   :  { %7795 = vmatprep.subr.mxu1 %v11098_v18 }
 0x9df   :  { %7796 = vmatpush3.msra.mxu1 %v11101_v39 }
 0x9e0   :  { %7797 = vmatprep.subr.mxu1 %v11105_v10 }
 0x9e1   :  { %7798 = vmatpush3.msra.mxu1 %v11109_v0 }
 0x9e2   :  { %7799 = vmatprep.subr.mxu1 %v11113_v48 }
 0x9e3   :  { %7800 = vmatpush3.msra.mxu1 %v11117_v3 }
 0x9e4   :  { %7801 = vmatprep.subr.mxu1 %v11121_v4 }
 0x9e5   :  { %7802 = vmatpush3.msra.mxu1 %v11125_v11 }
 0x9e6   :  { %4368 = vmatprep.subr.mxu1 %v4340_v29 }
 0x9fd   :  { %v3746_v24 = vpop.f32.mrf.mxu0 }
 0x9ff   :  { %v3748_v33 = vpop.f32.mrf.mxu0 }
 0xa01   :  { %v3750_v32 = vpop.f32.mrf.mxu0 }
 0xa03   :  { %v3752_v36 = vpop.f32.mrf.mxu0 }
 0xa86   :  { %v3949_v26 = vpop.f32.mrf.mxu1  ;;  %v4187_v20 = vpop.f32.mrf.mxu0 }
 0xa87   :  { %v3950_v35 = vadd.f32 %v3949_v26, %v3746_v24 }
 0xa88   :  { %v3951_v23 = vpop.f32.mrf.mxu1  ;;  %v4189_v13 = vpop.f32.mrf.mxu0 }
 0xa89   :  { %v3952_v34 = vadd.f32 %v3951_v23, %v3748_v33  ;;  %v4196_v22 = vadd.f32 %v4187_v20, %v3950_v35 }
 0xa8a   :  { %v3953_v12 = vpop.f32.mrf.mxu1  ;;  %v4191_v28 = vpop.f32.mrf.mxu0 }
 0xa8b   :  { %v3954_v54 = vadd.f32 %v3953_v12, %v3750_v32  ;;  %v4197_v45 = vadd.f32 %v4189_v13, %v3952_v34  ;;  %v11132_v31 = vadd.f32 %v4205_v5, %v4196_v22  ;;  %v4339_v22 = vld [vmem:[#allocation23 + $0x30] sm:$0xff] }
 0xa8c   :  { %v3955_v14 = vpop.f32.mrf.mxu1  ;;  %v4193_v1 = vpop.f32.mrf.mxu0  ;;  %4546 = vmatpush1.msra.mxu0 %v4339_v22 }
 0xa8d   :  { %v4198_v38 = vadd.f32 %v4191_v28, %v3954_v54  ;;  %v3956_v16 = vadd.f32 %v3955_v14, %v3752_v36  ;;  %v11136_v43 = vadd.f32 %v4209_v15, %v4197_v45  ;;  %v4337_v54 = vld [vmem:[#allocation23 + $0x20] sm:$0xff]  ;;  %v4336_v14 = vld [vmem:[#allocation23 + $0x18] sm:$0xff]  ;;  %v4335_v45 = vld [vmem:[#allocation23 + $0x10] sm:$0xff] }
 0xa8f   :  { %v11134_v25 = vadd.f32 %v4205_v5, %v4198_v38  ;;  %v4199_v47 = vadd.f32 %v4193_v1, %v3956_v16  ;;  %v4338_v5 = vld [vmem:[#allocation23 + $0x28] sm:$0xff]  ;;  %v4333_v38 = vld [vmem:[#allocation23] sm:$0xff] }
 0xa90   :  { %4547 = vmatprep.subr.mxu0 %v4338_v5 }
 0xa91   :  { %v4216_v17 = vadd.f32 %v11134_v25, %v11132_v31  ;;  %v11140_v29 = vadd.f32 %v4209_v15, %v4199_v47  ;;  %4548 = vmatpush1.msra.mxu0 %v4337_v54  ;;  %v4334_v15 = vld [vmem:[#allocation23 + $0x8] sm:$0xff] }
 0xa92   :  { %4549 = vmatprep.subr.mxu0 %v4336_v14 }
 0xa93   :  { %v4217_v24 = vrot.slane %v4216_v17, 4  ;;  %v4223_v33 = vadd.f32 %v11140_v29, %v11136_v43  ;;  %4550 = vmatpush1.msra.mxu0 %v4335_v45 }
 0xa94   :  { %4551 = vmatprep.subr.mxu0 %v4334_v15 }
 0xa95   :  { %v4218_v32 = vadd.f32 %v4217_v24, %v4216_v17  ;;  %v4224_v26 = vrot.slane %v4223_v33, 4  ;;  %4552 = vmatpush1.msra.mxu0 %v4333_v38  ;;  %v4828_v24 = vld [vmem:[%s11892_s28 + $0xe8] sm:$0xff] }
 0xa97   :  { %v4219_v36 = vrot.slane %v4218_v32, 2  ;;  %v4225_v20 = vadd.f32 %v4224_v26, %v4223_v33  ;;  %v4812_v33 = vld [vmem:[%s11892_s28 + $0x68] sm:$0xff]  ;;  %v4811_v26 = vld [vmem:[%s11892_s28 + $0x60] sm:$0xff] }
 0xa99   :  { %v4220_v35 = vadd.f32 %v4219_v36, %v4218_v32  ;;  %v4226_v27 = vrot.slane %v4225_v20, 2  ;;  %v4827_v32 = vld [vmem:[%s11892_s28 + $0xe0] sm:$0xff]  ;;  %v4826_v36 = vld [vmem:[%s11892_s28 + $0xd8] sm:$0xff] }
 0xa9b   :  { %v4227_v23 = vadd.f32 %v4226_v27, %v4225_v20  ;;  %v4221_v13 = vrot.slane %v4220_v35, 1  ;;  %v4810_v20 = vld [vmem:[%s11892_s28 + $0x58] sm:$0xff]  ;;  %v4809_v27 = vld [vmem:[%s11892_s28 + $0x50] sm:$0xff] }
 0xa9d   :  { %v4228_v34 = vrot.slane %v4227_v23, 1  ;;  %v4222_v28 = vadd.f32 %v4221_v13, %v4220_v35  ;;  %v4825_v35 = vld [vmem:[%s11892_s28 + $0xd0] sm:$0xff]  ;;  %v4808_v13 = vld [vmem:[%s11892_s28 + $0x48] sm:$0xff] }
 0xa9f   :  { %v4229_v12 = vadd.f32 %v4228_v34, %v4227_v23  ;;  %v4824_v23 = vld [vmem:[%s11892_s28 + $0xc8] sm:$0xff]  ;;  %v4823_v34 = vld [vmem:[%s11892_s28 + $0xc0] sm:$0xff] }
 0xaa1   :  { %4326 = vmatprep.mubr.f32.mxu1 %v4229_v12  ;;  %v4807_v12 = vld [vmem:[%s11892_s28 + $0x40] sm:$0xff] }
 0xaa2   :  { %4327 = vmatmul.mubr.f32.vlgmr.msra.gmra.mxu1 %v4222_v28  ;;  %v4822_v28 = vld [vmem:[%s11892_s28 + $0xb8] sm:$0xff] }
 0xaa3   :  { %4408 = vmatprep.mubr.f32.mxu1 %v9699_v8  ;;  %4369 = vmatpush1.msra.mxu1 %v4339_v22  ;;  %v4806_v22 = vld [vmem:[%s11892_s28 + $0x38] sm:$0xff] }
 0xaa4   :  { %4370 = vmatprep.subr.mxu1 %v4338_v5  ;;  %v4821_v5 = vld [vmem:[%s11892_s28 + $0xb0] sm:$0xff] }
 0xaa5   :  { %4371 = vmatpush1.msra.mxu1 %v4337_v54  ;;  %v4805_v54 = vld [vmem:[%s11892_s28 + $0x30] sm:$0xff] }
 0xaa6   :  { %4372 = vmatprep.subr.mxu1 %v4336_v14  ;;  %v4820_v14 = vld [vmem:[%s11892_s28 + $0xa8] sm:$0xff] }
 0xaa7   :  { %4373 = vmatpush1.msra.mxu1 %v4335_v45  ;;  %v4804_v45 = vld [vmem:[%s11892_s28 + $0x28] sm:$0xff] }
 0xaa8   :  { %4374 = vmatprep.subr.mxu1 %v4334_v15 }
 0xaa9   :  { %4375 = vmatpush1.msra.mxu1 %v4333_v38 }
 0xaaa   :  { %7806 = vmatprep.subr.mxu1 %v11002_v19 }
 0xb62   :  { %v7803_v16 = vpop.f32.mrf.mxu1 }
 0xb64   :  { %v7804_v1 = vpop.f32.mrf.mxu1 }
 0xb65   :  { %v7805_v47 = vadd.f32 %v7804_v1, %v7803_v16 }
 0xb67   :  { %v4332_v17 = vmul.f32 0.0078125, %v7805_v47  ;;  %v4592_v47 = vld [vmem:[#allocation20] sm:$0x3] }
 0xb69   :  { %7546 = vmatmul.mubr.msk.f32.vlgmr.msra.gmra.mxu1 %vm630_vm0, %v4332_v17 }
 0xb6a   :  { %7807 = vmatpush3.msra.mxu1 %v11006_v44 }
 0xb6b   :  { %7808 = vmatprep.subr.mxu1 %v11009_v21 }
 0xb6c   :  { %7809 = vmatpush3.msra.mxu1 %v11012_v50 }
 0xb6d   :  { %7810 = vmatprep.subr.mxu1 %v11019_v41 }
 0xb6e   :  { %7811 = vmatpush3.msra.mxu1 %v11023_v42 }
 0xb6f   :  { %7812 = vmatprep.subr.mxu1 %v11027_v51 }
 0xb70   :  { %7813 = vmatpush3.msra.mxu1 %v11031_v52 }
 0xb71   :  { %7814 = vmatprep.subr.mxu1 %v11035_v57 }
 0xb72   :  { %7815 = vmatpush3.msra.mxu1 %v11039_v58 }
 0xb73   :  { %7816 = vmatprep.subr.mxu1 %v11043_v46 }
 0xb74   :  { %7817 = vmatpush3.msra.mxu1 %v11047_v59 }
 0xb75   :  { %7818 = vmatprep.subr.mxu1 %v11051_v60 }
 0xb76   :  { %7819 = vmatpush3.msra.mxu1 %v11055_v37 }
 0xb77   :  { %7820 = vmatprep.subr.mxu1 %v11059_v61 }
 0xb78   :  { %7821 = vmatpush3.msra.mxu1 %v11063_v62 }
 0xb79   :  { %7822 = vmatprep.subr.mxu1 %v11067_v49 }
 0xb7a   :  { %7823 = vmatpush3.msra.mxu1 %v11071_v30 }
 0xb7b   :  { %7824 = vmatprep.subr.mxu1 %v11075_v9 }
 0xb7c   :  { %7825 = vmatpush3.msra.mxu1 %v11079_v55 }
 0xb7d   :  { %7826 = vmatprep.subr.mxu1 %v11083_v2 }
 0xb7e   :  { %7827 = vmatpush3.msra.mxu1 %v11087_v6 }
 0xb7f   :  { %7828 = vmatprep.subr.mxu1 %v11091_v7 }
 0xb80   :  { %7829 = vmatpush3.msra.mxu1 %v11095_v53 }
 0xb81   :  { %7830 = vmatprep.subr.mxu1 %v11098_v18 }
 0xb82   :  { %7831 = vmatpush3.msra.mxu1 %v11101_v39 }
 0xb83   :  { %7832 = vmatprep.subr.mxu1 %v11105_v10 }
 0xb84   :  { %7833 = vmatpush3.msra.mxu1 %v11109_v0 }
 0xb85   :  { %7834 = vmatprep.subr.mxu1 %v11113_v48 }
 0xb86   :  { %7835 = vmatpush3.msra.mxu1 %v11117_v3 }
 0xb87   :  { %7836 = vmatprep.subr.mxu1 %v11121_v4 }
 0xb88   :  { %7837 = vmatpush3.msra.mxu1 %v11125_v11 }
 0xc29   :  { %v4410_v19 = vpop.f32.mrf.mxu1 }
 0xc2a   :  { %v4418_v44 = vrot.slane %v4410_v19, %v11884_v56  ;;  %v4627_v19 = vld [vmem:[#allocation22] sm:$0x3] }
 0xc2b   :  { %v4412_v21 = vpop.f32.mrf.mxu1 }
 0xc2c   :  { %v11180_v50 = vsub.f32 %v11132_v31, %v4418_v44  ;;  %v11183_v41 = vsub.f32 %v11134_v25, %v4418_v44  ;;  %v4422_v42 = vrot.slane %v4412_v21, %v11884_v56  ;;  %v4830_v31 = vld [vmem:[%s11892_s28 + $0xf8] sm:$0xff] }
 0xc2d   :  { %v4814_v25 = vld [vmem:[%s11892_s28 + $0x78] sm:$0xff]  ;;  %7841 = vmatprep.subr.mxu0 %v4830_v31 }
 0xc2e   :  { %v4427_v51 = vmul.f32 %v11180_v50, %v11180_v50  ;;  %v4429_v52 = vmul.f32 %v11183_v41, %v11183_v41  ;;  %v11191_v57 = vsub.f32 %v11136_v43, %v4422_v42  ;;  %v11194_v58 = vsub.f32 %v11140_v29, %v4422_v42  ;;  %v4829_v43 = vld [vmem:[%s11892_s28 + $0xf0] sm:$0xff]  ;;  %v4925_v31 = vld [vmem:[#allocation29 + $0xc0] sm:$0xff] }
 0xc2f   :  { %v4813_v29 = vld [vmem:[%s11892_s28 + $0x70] sm:$0xff] }
 0xc30   :  { %v4431_v46 = vadd.f32 %v4429_v52, %v4427_v51  ;;  %v4428_v59 = vmul.f32 %v11191_v57, %v11191_v57  ;;  %v4430_v60 = vmul.f32 %v11194_v58, %v11194_v58  ;;  %v4632_v51 = vrot.slane %v4627_v19, %v11884_v56 }
 0xc31   :  { %v4636_v52 = vrot.slane %v4627_v19, %v11886_v40 }
 0xc32   :  { %v4432_v37 = vrot.slane %v4431_v46, 4  ;;  %v4438_v61 = vadd.f32 %v4430_v60, %v4428_v59 }
 0xc34   :  { %v4433_v62 = vadd.f32 %v4432_v37, %v4431_v46  ;;  %v4439_v49 = vrot.slane %v4438_v61, 4 }
 0xc36   :  { %v4434_v30 = vrot.slane %v4433_v62, 2  ;;  %v4440_v9 = vadd.f32 %v4439_v49, %v4438_v61 }
 0xc38   :  { %v4441_v55 = vrot.slane %v4440_v9, 2  ;;  %v4435_v2 = vadd.f32 %v4434_v30, %v4433_v62 }
 0xc3a   :  { %v4442_v6 = vadd.f32 %v4441_v55, %v4440_v9  ;;  %v4436_v7 = vrot.slane %v4435_v2, 1 }
 0xc3c   :  { %v4443_v53 = vrot.slane %v4442_v6, 1  ;;  %v4437_v39 = vadd.f32 %v4436_v7, %v4435_v2  ;;  %v4930_v7 = vld [vmem:[#allocation29 + $0xe8] sm:$0xff] }
 0xc3e   :  { %v4444_v18 = vadd.f32 %v4443_v53, %v4442_v6  ;;  %v4647_v6 = vld [vmem:[%s11893_s27] sm:$0xff] }
 0xc3f   :  { %v4914_v53 = vld [vmem:[#allocation29 + $0x68] sm:$0xff] }
 0xc40   :  { %4509 = vmatprep.mubr.f32.mxu1 %v4444_v18  ;;  %v4929_v18 = vld [vmem:[#allocation29 + $0xe0] sm:$0xff] }
 0xc41   :  { %4510 = vmatmul.mubr.f32.vlgmr.msra.gmra.mxu1 %v4437_v39  ;;  %v4913_v39 = vld [vmem:[#allocation29 + $0x60] sm:$0xff] }
 0xc42   :  { %4715 = vmatprep.mubr.f32.mxu1 %v9699_v8 }
 0xd01   :  { %v7838_v10 = vpop.f32.mrf.mxu1 }
 0xd03   :  { %v7839_v0 = vpop.f32.mrf.mxu1 }
 0xd04   :  { %v7840_v48 = vadd.f32 %v7839_v0, %v7838_v10  ;;  %v4928_v10 = vld [vmem:[#allocation29 + $0xd8] sm:$0xff] }
 0xd05   :  { %v4912_v0 = vld [vmem:[#allocation29 + $0x58] sm:$0xff] }
 0xd06   :  { %v4515_v3 = vmul.f32 0.0078125, %v7840_v48  ;;  %v4927_v48 = vld [vmem:[#allocation29 + $0xd0] sm:$0xff] }
 0xd08   :  { %v4516_v4 = vadd.f32 1e-05, %v4515_v3  ;;  %v4911_v3 = vld [vmem:[#allocation29 + $0x50] sm:$0xff] }
 0xd0a   :  { %8884 = vrsqrt.f32 %v4516_v4  ;;  %v4926_v4 = vld [vmem:[#allocation29 + $0xc8] sm:$0xff] }
 0xd17   :  { %v8885_v11 = vpop.eup %8884 }
 0xd18   :  { %7547 = vmatmul.mubr.msk.f32.vlgmr.msra.gmra.mxu0 %vm630_vm0, %v8885_v11  ;;  %v4910_v11 = vld [vmem:[#allocation29 + $0x48] sm:$0xff] }
 0xd19   :  { %7842 = vmatpush3.msra.mxu0 %v4814_v25  ;;  %v4909_v25 = vld [vmem:[#allocation29 + $0x40] sm:$0xff] }
 0xd1a   :  { %7843 = vmatprep.subr.mxu0 %v4829_v43  ;;  %v4924_v43 = vld [vmem:[#allocation29 + $0xb8] sm:$0xff] }
 0xd1b   :  { %7844 = vmatpush3.msra.mxu0 %v4813_v29  ;;  %v4908_v29 = vld [vmem:[#allocation29 + $0x38] sm:$0xff] }
 0xd1c   :  { %7845 = vmatprep.subr.mxu0 %v4828_v24  ;;  %v4923_v24 = vld [vmem:[#allocation29 + $0xb0] sm:$0xff] }
 0xd1d   :  { %7846 = vmatpush3.msra.mxu0 %v4812_v33  ;;  %v4907_v33 = vld [vmem:[#allocation29 + $0x30] sm:$0xff] }
 0xd1e   :  { %7847 = vmatprep.subr.mxu0 %v4827_v32  ;;  %v4922_v32 = vld [vmem:[#allocation29 + $0xa8] sm:$0xff] }
 0xd1f   :  { %7848 = vmatpush3.msra.mxu0 %v4811_v26  ;;  %v4906_v26 = vld [vmem:[#allocation29 + $0x28] sm:$0xff] }
 0xd20   :  { %7849 = vmatprep.subr.mxu0 %v4826_v36  ;;  %v4819_v36 = vld [vmem:[%s11892_s28 + $0xa0] sm:$0xff] }
 0xd21   :  { %7850 = vmatpush3.msra.mxu0 %v4810_v20  ;;  %v4921_v20 = vld [vmem:[#allocation29 + $0xa0] sm:$0xff] }
 0xd22   :  { %7851 = vmatprep.subr.mxu0 %v4825_v35  ;;  %v4803_v35 = vld [vmem:[%s11892_s28 + $0x20] sm:$0xff] }
 0xd23   :  { %7852 = vmatpush3.msra.mxu0 %v4809_v27  ;;  %v4905_v27 = vld [vmem:[#allocation29 + $0x20] sm:$0xff] }
 0xd24   :  { %7853 = vmatprep.subr.mxu0 %v4824_v23  ;;  %v4818_v23 = vld [vmem:[%s11892_s28 + $0x98] sm:$0xff] }
 0xd25   :  { %7854 = vmatpush3.msra.mxu0 %v4808_v13  ;;  %v4920_v13 = vld [vmem:[#allocation29 + $0x98] sm:$0xff] }
 0xd26   :  { %7855 = vmatprep.subr.mxu0 %v4823_v34  ;;  %v4802_v34 = vld [vmem:[%s11892_s28 + $0x18] sm:$0xff] }
 0xd27   :  { %7856 = vmatpush3.msra.mxu0 %v4807_v12  ;;  %v4904_v12 = vld [vmem:[#allocation29 + $0x18] sm:$0xff] }
 0xd28   :  { %7857 = vmatprep.subr.mxu0 %v4822_v28  ;;  %v4817_v28 = vld [vmem:[%s11892_s28 + $0x90] sm:$0xff] }
 0xd29   :  { %7858 = vmatpush3.msra.mxu0 %v4806_v22  ;;  %v4919_v22 = vld [vmem:[#allocation29 + $0x90] sm:$0xff] }
 0xd2a   :  { %7859 = vmatprep.subr.mxu0 %v4821_v5  ;;  %v4801_v5 = vld [vmem:[%s11892_s28 + $0x10] sm:$0xff] }
 0xd2b   :  { %7860 = vmatpush3.msra.mxu0 %v4805_v54  ;;  %v4903_v54 = vld [vmem:[#allocation29 + $0x10] sm:$0xff] }
 0xd2c   :  { %7861 = vmatprep.subr.mxu0 %v4820_v14  ;;  %v4816_v14 = vld [vmem:[%s11892_s28 + $0x88] sm:$0xff] }
 0xd2d   :  { %7862 = vmatpush3.msra.mxu0 %v4804_v45  ;;  %v4918_v45 = vld [vmem:[#allocation29 + $0x88] sm:$0xff] }
 0xd2e   :  { %7863 = vmatprep.subr.mxu0 %v4819_v36 }
 0xd2f   :  { %7864 = vmatpush3.msra.mxu0 %v4803_v35  ;;  %v11289_v35 = vld [vmem:[%s11894_s24 + $0x78] sm:$0xff] }
 0xd30   :  { %7865 = vmatprep.subr.mxu0 %v4818_v23 }
 0xd31   :  { %7866 = vmatpush3.msra.mxu0 %v4802_v34  ;;  %v11299_v34 = vld [vmem:[%s11894_s24 + $0x68] sm:$0xff] }
 0xd32   :  { %7867 = vmatprep.subr.mxu0 %v4817_v28  ;;  %v11311_v28 = vld [vmem:[%s11894_s24 + $0x58] sm:$0xff] }
 0xd33   :  { %7868 = vmatpush3.msra.mxu0 %v4801_v5 }
 0xd34   :  { %7869 = vmatprep.subr.mxu0 %v4816_v14 }
 0xdd8   :  { %v4587_v15 = vpop.f32.mrf.mxu0 }
 0xdda   :  { %v4589_v38 = vpop.f32.mrf.mxu0 }
 0xddb   :  { %v4595_v16 = vcombine.low %v4587_v15, %v4589_v38  ;;  %v4800_v15 = vld [vmem:[%s11892_s28 + $0x8] sm:$0xff] }
 0xddc   :  { %v4902_v38 = vld [vmem:[#allocation29 + $0x8] sm:$0xff]  ;;  %7870 = vmatpush3.msra.mxu0 %v4800_v15 }
 0xddd   :  { %v4602_v1 = vrot.slane %v4595_v16, %v10657_v63  ;;  %v4815_v16 = vld [vmem:[%s11892_s28 + $0x80] sm:$0xff]  ;;  %v11323_v15 = vld [vmem:[%s11894_s24 + $0x48] sm:$0xff] }
 0xdde   :  { %7871 = vmatprep.subr.mxu0 %v4815_v16  ;;  %v11333_v16 = vld [vmem:[%s11894_s24 + $0x38] sm:$0xff] }
 0xddf   :  { %v4609_v17 = vrot.slane %v4602_v1, %v10657_v63  ;;  %v4917_v1 = vld [vmem:[#allocation29 + $0x80] sm:$0xff] }
 0xde1   :  { %v4611_v44 = vmul.f32 %v4609_v17, %v4592_v47  ;;  %v4799_v47 = vld [vmem:[%s11892_s28] sm:$0xff] }
 0xde2   :  { %v4901_v17 = vld [vmem:[#allocation29] sm:$0xff]  ;;  %7872 = vmatpush3.msra.mxu0 %v4799_v47  ;;  %v11343_v47 = vld [vmem:[%s11894_s24 + $0x28] sm:$0xff] }
 0xde3   :  { %v4616_v21 = vrot.slane %v4611_v44, %v11884_v56  ;;  %v4620_v42 = vrot.slane %v4611_v44, %v11886_v40  ;;  %v4722_v40 = vld [vmem:[#allocation28] sm:$0xff]  ;;  %8126 = vmatprep.subr.mxu0 %v9699_v8 }
 0xde5   :  { %v4626_v46 = vmul.f32 %v4620_v42, %v11194_v58  ;;  %v4625_v59 = vmul.f32 %v4616_v21, %v11183_v41  ;;  %v4624_v60 = vmul.f32 %v4620_v42, %v11191_v57  ;;  %v4623_v37 = vmul.f32 %v4616_v21, %v11180_v50  ;;  %v4932_v50 = vld [vmem:[#allocation29 + $0xf8] sm:$0xff]  ;;  %v4931_v57 = vld [vmem:[#allocation29 + $0xf0] sm:$0xff] }
 0xde6   :  { %v4916_v41 = vld [vmem:[#allocation29 + $0x78] sm:$0xff]  ;;  %v4915_v58 = vld [vmem:[#allocation29 + $0x70] sm:$0xff] }
 0xde7   :  { %v4642_v63 = vadd.f32 %v4636_v52, %v4626_v46  ;;  %v4641_v61 = vadd.f32 %v4632_v51, %v4625_v59  ;;  %v4640_v62 = vadd.f32 %v4636_v52, %v4624_v60  ;;  %v4639_v49 = vadd.f32 %v4632_v51, %v4623_v37 }
 0xde9   :  { %v4646_v30 = vmax.f32 %v4642_v63, 0.0  ;;  %v4645_v9 = vmax.f32 %v4641_v61, 0.0  ;;  %v4644_v55 = vmax.f32 %v4640_v62, 0.0  ;;  %v4643_v2 = vmax.f32 %v4639_v49, 0.0  ;;  %v5004_v49 = vld [vmem:[#allocation38] sm:$0xff] }
 0xdeb   :  { %4679 = vmatprep.subr.mxu1 %v4646_v30 }
 0xdec   :  { %4680 = vmatpush1.msra.mxu1 %v4645_v9 }
 0xded   :  { %4681 = vmatprep.subr.mxu1 %v4644_v55 }
 0xdee   :  { %4682 = vmatpush1.msra.mxu1 %v4643_v2 }
 0xdef   :  { %7548 = vmatmul.mubr.msk.f32.vlgmr.msra.gmra.mxu1 %vm3314_vm2, %v4647_v6  ;;  %4754 = vmatprep.subr.mxu1 %v4646_v30  ;;  %v5079_v30 = vld [vmem:[#allocation40] sm:$0xff] }
 0xdf0   :  { %4755 = vmatpush1.msra.mxu1 %v4645_v9  ;;  %4790 = vmatprep.mubr.f32.mxu1 %v9699_v8  ;;  %v8846_v9 = vld [vmem:[#allocation31 + $0x78] sm:$0xff]   ;;  %v8856_v6 = vld [vmem:[#allocation31 + $0x30] sm:$0xff]  }
 0xdf1   :  { %4756 = vmatprep.subr.mxu1 %v4644_v55  ;;  %v8854_v55 = vld [vmem:[#allocation31 + $0x38] sm:$0xff]  }
 0xdf2   :  { %4757 = vmatpush1.msra.mxu1 %v4643_v2  ;;  %v8847_v2 = vld [vmem:[#allocation31 + $0x70] sm:$0xff]  }
 0xdf3   :  { %7549 = vmatmul.mubr.msk.f32.vlgmr.msra.gmra.mxu1 %vm3314_vm2, %v4722_v40  ;;  %7876 = vmatprep.subr.mxu1 %v4932_v50  ;;  %v8848_v40 = vld [vmem:[#allocation31 + $0x68] sm:$0xff]  }
 0xdf4   :  { %7877 = vmatpush3.msra.mxu1 %v4916_v41  ;;  %v8858_v50 = vld [vmem:[#allocation31 + $0x28] sm:$0xff]   ;;  %v8849_v41 = vld [vmem:[#allocation31 + $0x60] sm:$0xff]  }
 0xdf5   :  { %7878 = vmatprep.subr.mxu1 %v4931_v57  ;;  %v8860_v57 = vld [vmem:[#allocation31 + $0x20] sm:$0xff]  }
 0xdf6   :  { %7879 = vmatpush3.msra.mxu1 %v4915_v58  ;;  %v8850_v58 = vld [vmem:[#allocation31 + $0x58] sm:$0xff]  }
 0xdf7   :  { %7880 = vmatprep.subr.mxu1 %v4930_v7  ;;  %v8862_v7 = vld [vmem:[#allocation31 + $0x18] sm:$0xff]  }
 0xdf8   :  { %7881 = vmatpush3.msra.mxu1 %v4914_v53  ;;  %v8851_v53 = vld [vmem:[#allocation31 + $0x50] sm:$0xff]  }
 0xdf9   :  { %7882 = vmatprep.subr.mxu1 %v4929_v18  ;;  %v8864_v18 = vld [vmem:[#allocation31 + $0x10] sm:$0xff]  }
 0xdfa   :  { %7883 = vmatpush3.msra.mxu1 %v4913_v39  ;;  %v8852_v39 = vld [vmem:[#allocation31 + $0x48] sm:$0xff]  }
 0xdfb   :  { %7884 = vmatprep.subr.mxu1 %v4928_v10  ;;  %v8866_v10 = vld [vmem:[#allocation31 + $0x8] sm:$0xff]  }
 0xdfc   :  { %7885 = vmatpush3.msra.mxu1 %v4912_v0  ;;  %v8853_v0 = vld [vmem:[#allocation31 + $0x40] sm:$0xff]  }
 0xdfd   :  { %7886 = vmatprep.subr.mxu1 %v4927_v48  ;;  %v8855_v48 = vld [vmem:[#allocation31 + $0xb8] sm:$0xff]  }
 0xdfe   :  { %7887 = vmatpush3.msra.mxu1 %v4911_v3 }
 0xdff   :  { %7888 = vmatprep.subr.mxu1 %v4926_v4  ;;  %v8857_v4 = vld [vmem:[#allocation31 + $0xb0] sm:$0xff]  }
 0xe00   :  { %7889 = vmatpush3.msra.mxu1 %v4910_v11  ;;  %v8859_v11 = vld [vmem:[#allocation31 + $0xa8] sm:$0xff]  }
 0xe01   :  { %7890 = vmatprep.subr.mxu1 %v4925_v31  ;;  %v8861_v31 = vld [vmem:[#allocation31 + $0xa0] sm:$0xff]  }
 0xe02   :  { %7891 = vmatpush3.msra.mxu1 %v4909_v25  ;;  %v8863_v25 = vld [vmem:[#allocation31 + $0x98] sm:$0xff]  }
 0xe03   :  { %7892 = vmatprep.subr.mxu1 %v4924_v43  ;;  %v8865_v43 = vld [vmem:[#allocation31 + $0x90] sm:$0xff]  }
 0xe04   :  { %7893 = vmatpush3.msra.mxu1 %v4908_v29  ;;  %v8867_v29 = vld [vmem:[#allocation31 + $0x88] sm:$0xff]  }
 0xe05   :  { %7894 = vmatprep.subr.mxu1 %v4923_v24  ;;  %v8868_v24 = vld [vmem:[#allocation31] sm:$0xff]  }
 0xe06   :  { %7895 = vmatpush3.msra.mxu1 %v4907_v33  ;;  %v8869_v33 = vld [vmem:[#allocation31 + $0x80] sm:$0xff]  }
 0xe07   :  { %7896 = vmatprep.subr.mxu1 %v4922_v32 }
 0xe08   :  { %7897 = vmatpush3.msra.mxu1 %v4906_v26 }
 0xe09   :  { %7898 = vmatprep.subr.mxu1 %v4921_v20 }
 0xe0a   :  { %7899 = vmatpush3.msra.mxu1 %v4905_v27 }
 0xe0b   :  { %7900 = vmatprep.subr.mxu1 %v4920_v13  ;;  %v11292_v13 = vld [vmem:[%s11894_s24 + $0x70] sm:$0xff] }
 0xe0c   :  { %7901 = vmatpush3.msra.mxu1 %v4904_v12  ;;  %v11306_v12 = vld [vmem:[%s11894_s24 + $0x60] sm:$0xff] }
 0xe0d   :  { %7902 = vmatprep.subr.mxu1 %v4919_v22  ;;  %v11316_v22 = vld [vmem:[%s11894_s24 + $0x50] sm:$0xff] }
 0xe0e   :  { %7903 = vmatpush3.msra.mxu1 %v4903_v54 }
 0xe0f   :  { %7904 = vmatprep.subr.mxu1 %v4918_v45 }
 0xe10   :  { %7905 = vmatpush3.msra.mxu1 %v4902_v38  ;;  %v11328_v38 = vld [vmem:[%s11894_s24 + $0x40] sm:$0xff] }
 0xe11   :  { %7906 = vmatprep.subr.mxu1 %v4917_v1  ;;  %v11338_v1 = vld [vmem:[%s11894_s24 + $0x30] sm:$0xff] }
 0xe12   :  { %7907 = vmatpush3.msra.mxu1 %v4901_v17  ;;  %v5489_v17 = vld [vmem:[%s11894_s24 + $0x20] sm:$0xff] }
 0xe13   :  { %8131 = vmatprep.subr.mxu1 %v9699_v8 }
 0xeaf   :  { %v4717_v19 = vpop.f32.mrf.mxu1 }
 0xeb1   :  { %v4719_v44 = vpop.f32.mrf.mxu1 }
 0xeb3   :  { %v4792_v21 = vpop.f32.mrf.mxu1 }
 0xeb4   :  { %v4797_v52 = vmax.f32 %v4717_v19, %v4792_v21  ;;  %v5488_v19 = vld [vmem:[%s11894_s24 + $0x18] sm:$0xff]  ;;  %v5486_v21 = vld [vmem:[%s11894_s24 + $0x8] sm:$0xff] }
 0xeb5   :  { %v4794_v42 = vpop.f32.mrf.mxu1 }
 0xeb6   :  { %v4798_v51 = vmax.f32 %v4719_v44, %v4794_v42  ;;  %v5487_v44 = vld [vmem:[%s11894_s24 + $0x10] sm:$0xff]  ;;  %v5485_v42 = vld [vmem:[%s11894_s24] sm:$0xff] }
 0xeb8   :  { %4895 = vmatprep.mubr.f32.mxu0 %v4798_v51  ;;  %4997 = vmatprep.mubr.f32.mxu1 %v4798_v51  ;;  %v11356_v51 = vld [vmem:[#allocation37 + $0x18] sm:$0xff] }
 0xeb9   :  { %4896 = vmatmul.mubr.f32.vlgmr.msra.gmra.mxu0 %v4797_v52  ;;  %4998 = vmatmul.mubr.f32.vlgmr.msra.gmra.mxu1 %v4797_v52  ;;  %v11358_v52 = vld [vmem:[#allocation37 + $0x10] sm:$0xff] }
 0xeba   :  { %8128 = vmatprep.mubr.msk.f32.mxu0 %vm9701_vm3, %v9699_v8  ;;  %8133 = vmatprep.mubr.msk.f32.mxu1 %vm9701_vm3, %v9699_v8 }
 0xf79   :  { %v7873_v46 = vpop.f32.mrf.mxu0  ;;  %v7908_v59 = vpop.f32.mrf.mxu1 }
 0xf7b   :  { %v7874_v60 = vpop.f32.mrf.mxu0  ;;  %v7909_v37 = vpop.f32.mrf.mxu1 }
 0xf7c   :  { %v7875_v63 = vadd.f32 %v7874_v60, %v7873_v46  ;;  %v7910_v61 = vadd.f32 %v7909_v37, %v7908_v59  ;;  %v7576_v37 = vld [vmem:[#allocation32] ss:$0 sm:$0xff] }
 0xf7e   :  { %v5003_v62 = vmax.f32 %v7875_v63, %v7910_v61 }
 0xf80   :  { %8127 = vmatpush3.msra.mxu0 %v5003_v62  ;;  %8132 = vmatpush3.msra.mxu1 %v5003_v62  ;;  %v5170_v3 = vpack.c.bf16 %v5003_v62, %v5003_v62 }
 0xf81   :  { %8129 = vmatmul.mubr.msk.f32.vlgmr.msra.gmra.mxu0 %vm5005_vm4, %v5004_v49  ;;  %8134 = vmatmul.mubr.msk.f32.vlgmr.msra.gmra.mxu1 %vm5005_vm4, %v5079_v30 }
 0xf82   :  { %8136 = vmatprep.subr.bf16.mxu0 %v9699_v8  ;;  %8152 = vmatprep.mubr.msk.bf16.mxu0 %vm9701_vm3, %v9699_v8 }
 0xf83   :  { %8137 = vmatpush3.bf16.msra.mxu0 %v8846_v9  ;;  %8156 = vmatprep.subr.bf16.mxu1 %v9699_v8 }
 0xf84   :  { %8138 = vmatprep.subr.bf16.mxu0 %v9699_v8  ;;  %8157 = vmatpush3.bf16.msra.mxu1 %v8854_v55 }
 0xf85   :  { %8158 = vmatprep.subr.bf16.mxu1 %v9699_v8  ;;  %8172 = vmatprep.mubr.msk.bf16.mxu1 %vm9701_vm3, %v9699_v8 }
 0xf87   :  { %8139 = vmatpush3.bf16.msra.mxu0 %v8847_v2 }
 0xf88   :  { %8140 = vmatprep.subr.bf16.mxu0 %v9699_v8  ;;  %8159 = vmatpush3.bf16.msra.mxu1 %v8856_v6 }
 0xf89   :  { %8160 = vmatprep.subr.bf16.mxu1 %v9699_v8 }
 0xf8b   :  { %8141 = vmatpush3.bf16.msra.mxu0 %v8848_v40 }
 0xf8c   :  { %8142 = vmatprep.subr.bf16.mxu0 %v9699_v8  ;;  %8161 = vmatpush3.bf16.msra.mxu1 %v8858_v50 }
 0xf8d   :  { %8162 = vmatprep.subr.bf16.mxu1 %v9699_v8 }
 0xf8f   :  { %8143 = vmatpush3.bf16.msra.mxu0 %v8849_v41 }
 0xf90   :  { %8144 = vmatprep.subr.bf16.mxu0 %v9699_v8  ;;  %8163 = vmatpush3.bf16.msra.mxu1 %v8860_v57 }
 0xf91   :  { %8164 = vmatprep.subr.bf16.mxu1 %v9699_v8 }
 0xf93   :  { %8145 = vmatpush3.bf16.msra.mxu0 %v8850_v58 }
 0xf94   :  { %8146 = vmatprep.subr.bf16.mxu0 %v9699_v8  ;;  %8165 = vmatpush3.bf16.msra.mxu1 %v8862_v7  ;;  %v5573_v7 = vld [vmem:[#allocation37 + $0x8] sm:$0xff] }
 0xf95   :  { %8166 = vmatprep.subr.bf16.mxu1 %v9699_v8 }
 0xf97   :  { %8147 = vmatpush3.bf16.msra.mxu0 %v8851_v53  ;;  %v5572_v53 = vld [vmem:[#allocation37] sm:$0xff] }
 0xf98   :  { %8148 = vmatprep.subr.bf16.mxu0 %v9699_v8  ;;  %8167 = vmatpush3.bf16.msra.mxu1 %v8864_v18 }
 0xf99   :  { %8168 = vmatprep.subr.bf16.mxu1 %v9699_v8 }
 0xf9b   :  { %8149 = vmatpush3.bf16.msra.mxu0 %v8852_v39 }
 0xf9c   :  { %8150 = vmatprep.subr.bf16.mxu0 %v9699_v8  ;;  %8169 = vmatpush3.bf16.msra.mxu1 %v8866_v10 }
 0xf9d   :  { %8170 = vmatprep.subr.bf16.mxu1 %v9699_v8 }
 0xf9f   :  { %8151 = vmatpush3.bf16.msra.mxu0 %v8853_v0 }
 0xfa0   :  { %8176 = vmatprep.subr.bf16.mxu0 %v9699_v8  ;;  %8171 = vmatpush3.bf16.msra.mxu1 %v8868_v24 }
 0xfa1   :  { %8196 = vmatprep.subr.mxu1 %v9699_v8 }
 0xfa2   :  { %8153 = vmatmul.mubr.bf16.vlgmr.msra.gmra.mxu0 %v5170_v3 }
 0xfa3   :  { %8177 = vmatpush3.bf16.msra.mxu0 %v8855_v48  ;;  %8192 = vmatprep.mubr.msk.bf16.mxu0 %vm9701_vm3, %v9699_v8 }
 0xfa4   :  { %8178 = vmatprep.subr.bf16.mxu0 %v9699_v8 }
 0xfa7   :  { %8179 = vmatpush3.bf16.msra.mxu0 %v8857_v4 }
 0xfa8   :  { %8180 = vmatprep.subr.bf16.mxu0 %v9699_v8 }
 0xfab   :  { %8181 = vmatpush3.bf16.msra.mxu0 %v8859_v11 }
 0xfac   :  { %8182 = vmatprep.subr.bf16.mxu0 %v9699_v8 }
 0xfaf   :  { %8183 = vmatpush3.bf16.msra.mxu0 %v8861_v31 }
 0xfb0   :  { %8184 = vmatprep.subr.bf16.mxu0 %v9699_v8 }
 0xfb3   :  { %8185 = vmatpush3.bf16.msra.mxu0 %v8863_v25 }
 0xfb4   :  { %8186 = vmatprep.subr.bf16.mxu0 %v9699_v8 }
 0xfb7   :  { %8187 = vmatpush3.bf16.msra.mxu0 %v8865_v43 }
 0xfb8   :  { %8188 = vmatprep.subr.bf16.mxu0 %v9699_v8 }
 0xfbb   :  { %8189 = vmatpush3.bf16.msra.mxu0 %v8867_v29 }
 0xfbc   :  { %8190 = vmatprep.subr.bf16.mxu0 %v9699_v8 }
 0xfbf   :  { %8191 = vmatpush3.bf16.msra.mxu0 %v8869_v33 }
 0xfc0   :  { %8231 = vmatprep.subr.mxu0 %v9699_v8 }
0x1041   :  { %v5075_v32 = vpop.f32.mrf.mxu0  ;;  %v5149_v26 = vpop.f32.mrf.mxu1 }
0x1042   :  { %v5153_v36 = vpack.c.bf16 %v5075_v32, %v5075_v32  ;;  %v5364_v20 = vpack.c.bf16 %v5149_v26, %v5149_v26 }
0x1043   :  { %v8130_v27 = vpop.f32.mrf.mxu0  ;;  %v8135_v23 = vpop.f32.mrf.mxu1 }
0x1044   :  { %8173 = vmatmul.mubr.bf16.vlgmr.msra.gmra.mxu1 %v5153_v36  ;;  %8193 = vmatmul.mubr.bf16.vlgmr.msra.gmra.mxu0 %v5364_v20  ;;  %v6075_v27 = vld [vmem:[%s11895_s21 + $0x78] sm:$0xff]  ;;  %v6074_v23 = vld [vmem:[%s11895_s21 + $0x70] sm:$0xff] }
0x1045   :  { %8197 = vmatpush3.msra.mxu1 %v11289_v35  ;;  %8228 = vmatprep.mubr.msk.f32.mxu1 %vm9701_vm3, %v9699_v8 }
0x1046   :  { %8198 = vmatprep.subr.mxu1 %v9699_v8  ;;  %8239 = vmatprep.mubr.msk.f32.mxu0 %vm9701_vm3, %v9699_v8 }
0x1047   :  { %8199 = vmatpush3.msra.mxu1 %v11292_v13  ;;  %8232 = vmatpush3.msra.mxu0 %v11356_v51 }
0x1048   :  { %8200 = vmatprep.subr.mxu1 %v9699_v8  ;;  %8233 = vmatprep.subr.mxu0 %v9699_v8 }
0x1049   :  { %8201 = vmatpush3.msra.mxu1 %v11299_v34  ;;  %8234 = vmatpush3.msra.mxu0 %v11358_v52 }
0x104a   :  { %8202 = vmatprep.subr.mxu1 %v9699_v8  ;;  %8235 = vmatprep.subr.mxu0 %v9699_v8 }
0x104b   :  { %8203 = vmatpush3.msra.mxu1 %v11306_v12  ;;  %8236 = vmatpush3.msra.mxu0 %v5573_v7 }
0x104c   :  { %8204 = vmatprep.subr.mxu1 %v9699_v8  ;;  %8237 = vmatprep.subr.mxu0 %v9699_v8 }
0x104d   :  { %8205 = vmatpush3.msra.mxu1 %v11311_v28  ;;  %8238 = vmatpush3.msra.mxu0 %v5572_v53 }
0x104e   :  { %8206 = vmatprep.subr.mxu1 %v9699_v8  ;;  %8277 = vmatprep.subr.mxu0 %v9699_v8 }
0x104f   :  { %8207 = vmatpush3.msra.mxu1 %v11316_v22 }
0x1050   :  { %8208 = vmatprep.subr.mxu1 %v9699_v8 }
0x1051   :  { %8209 = vmatpush3.msra.mxu1 %v11323_v15 }
0x1052   :  { %8210 = vmatprep.subr.mxu1 %v9699_v8 }
0x1053   :  { %8211 = vmatpush3.msra.mxu1 %v11328_v38 }
0x1054   :  { %8212 = vmatprep.subr.mxu1 %v9699_v8 }
0x1055   :  { %8213 = vmatpush3.msra.mxu1 %v11333_v16 }
0x1056   :  { %8214 = vmatprep.subr.mxu1 %v9699_v8 }
0x1057   :  { %8215 = vmatpush3.msra.mxu1 %v11338_v1 }
0x1058   :  { %8216 = vmatprep.subr.mxu1 %v9699_v8 }
0x1059   :  { %8217 = vmatpush3.msra.mxu1 %v11343_v47 }
0x105a   :  { %8218 = vmatprep.subr.mxu1 %v9699_v8 }
0x105b   :  { %8219 = vmatpush3.msra.mxu1 %v5489_v17 }
0x105c   :  { %8220 = vmatprep.subr.mxu1 %v9699_v8 }
0x105d   :  { %8221 = vmatpush3.msra.mxu1 %v5488_v19 }
0x105e   :  { %8222 = vmatprep.subr.mxu1 %v9699_v8 }
0x105f   :  { %8223 = vmatpush3.msra.mxu1 %v5487_v44 }
0x1060   :  { %8224 = vmatprep.subr.mxu1 %v9699_v8 }
0x1061   :  { %8225 = vmatpush3.msra.mxu1 %v5486_v21 }
0x1062   :  { %v5270_v5 = vpop.f32.mrf.mxu0  ;;  %8226 = vmatprep.subr.mxu1 %v9699_v8 }
0x1063   :  { %8227 = vmatpush3.msra.mxu1 %v5485_v42 }
0x1064   :  { %v8154_v54 = vpop.f32.mrf.mxu0  ;;  %8242 = vmatprep.subr.mxu1 %v9699_v8 }
0x1065   :  { %v6067_v54 = vld [vmem:[%s11895_s21 + $0x38] sm:$0xff] }
0x1066   :  { %v5273_v14 = vpop.f32.mrf.mxu0 }
0x1067   :  { %v6066_v14 = vld [vmem:[%s11895_s21 + $0x30] sm:$0xff] }
0x1068   :  { %v8155_v45 = vpop.f32.mrf.mxu0 }
0x1069   :  { %v6065_v45 = vld [vmem:[%s11895_s21 + $0x28] sm:$0xff] }
0x1104   :  { %v5358_v46 = vpop.f32.mrf.mxu1  ;;  %v5464_v59 = vpop.f32.mrf.mxu0 }
0x1105   :  { %v5359_v60 = vadd.f32 %v5358_v46, %v5270_v5  ;;  %v6068_v5 = vld [vmem:[%s11895_s21 + $0x40] sm:$0xff]  ;;  %v5989_v46 = vld [vmem:[%s11896_s5 + $0x78] sm:$0xff] }
0x1106   :  { %v8174_v63 = vpop.f32.mrf.mxu1  ;;  %v8194_v61 = vpop.f32.mrf.mxu0 }
0x1107   :  { %v5470_v62 = vadd.f32 %v5464_v59, %v5359_v60  ;;  %v5988_v59 = vld [vmem:[%s11896_s5 + $0x70] sm:$0xff]  ;;  %v5987_v60 = vld [vmem:[%s11896_s5 + $0x68] sm:$0xff]  ;;  %v5985_v63 = vld [vmem:[%s11896_s5 + $0x58] sm:$0xff] }
0x1108   :  { %v5361_v49 = vpop.f32.mrf.mxu1  ;;  %v5467_v30 = vpop.f32.mrf.mxu0  ;;  %v5984_v61 = vld [vmem:[%s11896_s5 + $0x50] sm:$0xff] }
0x1109   :  { %v11365_v9 = vadd.f32 %v7576_v37, %v5470_v62  ;;  %v5986_v37 = vld [vmem:[%s11896_s5 + $0x60] sm:$0xff]  ;;  %v5983_v62 = vld [vmem:[%s11896_s5 + $0x48] sm:$0xff]  ;;  %v5981_v30 = vld [vmem:[%s11896_s5 + $0x38] sm:$0xff] }
0x110a   :  { %v8175_v55 = vpop.f32.mrf.mxu1  ;;  %v8195_v2 = vpop.f32.mrf.mxu0  ;;  %v5982_v49 = vld [vmem:[%s11896_s5 + $0x40] sm:$0xff] }
0x110b   :  { %v5479_v6 = vrot.slane %v11365_v9, 4  ;;  %v5979_v55 = vld [vmem:[%s11896_s5 + $0x28] sm:$0xff]  ;;  %v5978_v2 = vld [vmem:[%s11896_s5 + $0x20] sm:$0xff] }
0x110d   :  { %v5480_v40 = vadd.f32 %v5479_v6, %v11365_v9  ;;  %v5977_v6 = vld [vmem:[%s11896_s5 + $0x18] sm:$0xff] }
0x110f   :  { %v5481_v50 = vrot.slane %v5480_v40, 2 }
0x1111   :  { %v5482_v41 = vadd.f32 %v5481_v50, %v5480_v40  ;;  %v6063_v40 = vld [vmem:[%s11895_s21 + $0x18] sm:$0xff]  ;;  %v5976_v50 = vld [vmem:[%s11896_s5 + $0x10] sm:$0xff] }
0x1113   :  { %v5483_v57 = vrot.slane %v5482_v41, 1 }
0x1115   :  { %v5484_v58 = vadd.f32 %v5483_v57, %v5482_v41  ;;  %v6062_v41 = vld [vmem:[%s11895_s21 + $0x10] sm:$0xff]  ;;  %v5975_v57 = vld [vmem:[%s11896_s5 + $0x8] sm:$0xff] }
0x1117   :  { %8229 = vmatmul.mubr.f32.vlgmr.msra.gmra.mxu1 %v5484_v58  ;;  %v6061_v58 = vld [vmem:[%s11895_s21 + $0x8] sm:$0xff] }
0x1118   :  { %8243 = vmatpush3.msra.mxu1 %v11289_v35  ;;  %8274 = vmatprep.mubr.msk.f32.mxu1 %vm9701_vm3, %v9699_v8 }
0x1119   :  { %8244 = vmatprep.subr.mxu1 %v9699_v8 }
0x111a   :  { %8245 = vmatpush3.msra.mxu1 %v11292_v13  ;;  %v6073_v13 = vld [vmem:[%s11895_s21 + $0x68] sm:$0xff] }
0x111b   :  { %8246 = vmatprep.subr.mxu1 %v9699_v8 }
0x111c   :  { %8247 = vmatpush3.msra.mxu1 %v11299_v34  ;;  %v6072_v34 = vld [vmem:[%s11895_s21 + $0x60] sm:$0xff] }
0x111d   :  { %8248 = vmatprep.subr.mxu1 %v9699_v8 }
0x111e   :  { %8249 = vmatpush3.msra.mxu1 %v11306_v12  ;;  %v6071_v12 = vld [vmem:[%s11895_s21 + $0x58] sm:$0xff] }
0x111f   :  { %8250 = vmatprep.subr.mxu1 %v9699_v8 }
0x1120   :  { %8251 = vmatpush3.msra.mxu1 %v11311_v28  ;;  %v6070_v28 = vld [vmem:[%s11895_s21 + $0x50] sm:$0xff] }
0x1121   :  { %8252 = vmatprep.subr.mxu1 %v9699_v8 }
0x1122   :  { %8253 = vmatpush3.msra.mxu1 %v11316_v22  ;;  %v6069_v22 = vld [vmem:[%s11895_s21 + $0x48] sm:$0xff] }
0x1123   :  { %8254 = vmatprep.subr.mxu1 %v9699_v8 }
0x1124   :  { %8255 = vmatpush3.msra.mxu1 %v11323_v15  ;;  %v6064_v15 = vld [vmem:[%s11895_s21 + $0x20] sm:$0xff] }
0x1125   :  { %8256 = vmatprep.subr.mxu1 %v9699_v8 }
0x1126   :  { %8257 = vmatpush3.msra.mxu1 %v11328_v38  ;;  %v5807_v38 = vld [vmem:[#allocation34] sm:$0x1] }
0x1127   :  { %8258 = vmatprep.subr.mxu1 %v9699_v8 }
0x1128   :  { %8259 = vmatpush3.msra.mxu1 %v11333_v16 }
0x1129   :  { %8260 = vmatprep.subr.mxu1 %v9699_v8 }
0x112a   :  { %8261 = vmatpush3.msra.mxu1 %v11338_v1 }
0x112b   :  { %8262 = vmatprep.subr.mxu1 %v9699_v8 }
0x112c   :  { %8263 = vmatpush3.msra.mxu1 %v11343_v47 }
0x112d   :  { %8264 = vmatprep.subr.mxu1 %v9699_v8 }
0x112e   :  { %8265 = vmatpush3.msra.mxu1 %v5489_v17 }
0x112f   :  { %8266 = vmatprep.subr.mxu1 %v9699_v8 }
0x1130   :  { %8267 = vmatpush3.msra.mxu1 %v5488_v19  ;;  %v7579_v19 = vld [vmem:[#allocation35] ss:$0 sm:$0xff] }
0x1131   :  { %8268 = vmatprep.subr.mxu1 %v9699_v8 }
0x1132   :  { %8269 = vmatpush3.msra.mxu1 %v5487_v44 }
0x1133   :  { %8270 = vmatprep.subr.mxu1 %v9699_v8 }
0x1134   :  { %8271 = vmatpush3.msra.mxu1 %v5486_v21 }
0x1135   :  { %8272 = vmatprep.subr.mxu1 %v9699_v8 }
0x1136   :  { %8273 = vmatpush3.msra.mxu1 %v5485_v42 }
0x1137   :  { %8333 = vmatprep.subr.mxu1 %v9699_v8 }
0x11d7   :  { %v5567_v18 = vpop.f32.mrf.mxu1 }
0x11d8   :  { %v5571_v39 = vmul.f32 0.03125, %v5567_v18 }
0x11d9   :  { %v8230_v10 = vpop.f32.mrf.mxu1 }
0x11da   :  { %8240 = vmatmul.mubr.msk.f32.vlgmr.msra.gmra.mxu0 %vm630_vm0, %v5571_v39 }
0x11db   :  { %8278 = vmatpush3.msra.mxu0 %v11356_v51  ;;  %8285 = vmatprep.mubr.msk.f32.mxu0 %vm9701_vm3, %v9699_v8  ;;  %v5825_v51 = vld [vmem:[#allocation41] sm:$0xf] }
0x11dc   :  { %8279 = vmatprep.subr.mxu0 %v9699_v8 }
0x11dd   :  { %8280 = vmatpush3.msra.mxu0 %v11358_v52  ;;  %v5899_v52 = vld [vmem:[#allocation43] sm:$0xf] }
0x11de   :  { %8281 = vmatprep.subr.mxu0 %v9699_v8 }
0x11df   :  { %8282 = vmatpush3.msra.mxu0 %v5573_v7  ;;  %v5974_v7 = vld [vmem:[%s11896_s5] sm:$0xff] }
0x11e0   :  { %8283 = vmatprep.subr.mxu0 %v9699_v8 }
0x11e1   :  { %8284 = vmatpush3.msra.mxu0 %v5572_v53  ;;  %v6060_v53 = vld [vmem:[%s11895_s21] sm:$0xff] }
0x11e2   :  { %8288 = vmatprep.subr.mxu0 %v9699_v8 }
0x129a   :  { %v5645_v0 = vpop.f32.mrf.mxu0 }
0x129b   :  { %v5652_v48 = vrot.slane %v5645_v0, %v11884_v56 }
0x129c   :  { %v8241_v3 = vpop.f32.mrf.mxu0 }
0x129d   :  { %v5653_v4 = vsub.f32 %v11365_v9, %v5652_v48  ;;  %v5980_v9 = vld [vmem:[%s11896_s5 + $0x30] sm:$0xff] }
0x129e   :  { %v8874_v3 = vld [vmem:[#allocation44 + $0x18] sm:$0xff]  }
0x129f   :  { %v5654_v11 = vmul.f32 %v5653_v4, %v5653_v4 }
0x12a1   :  { %v5655_v31 = vrot.slane %v5654_v11, 4 }
0x12a3   :  { %v5656_v25 = vadd.f32 %v5655_v31, %v5654_v11  ;;  %v8877_v11 = vld [vmem:[#allocation44 + $0x8] sm:$0xff]  }
0x12a5   :  { %v5657_v43 = vrot.slane %v5656_v25, 2 }
0x12a7   :  { %v5658_v29 = vadd.f32 %v5657_v43, %v5656_v25 }
0x12a9   :  { %v5659_v24 = vrot.slane %v5658_v29, 1 }
0x12ab   :  { %v5660_v33 = vadd.f32 %v5659_v24, %v5658_v29  ;;  %v6147_v29 = vld [vmem:[%s11897_s1] sm:$0xf] }
0x12ad   :  { %8275 = vmatmul.mubr.f32.vlgmr.msra.gmra.mxu1 %v5660_v33 }
0x12ae   :  { %8365 = vmatprep.mubr.msk.f32.mxu1 %vm9701_vm3, %v9699_v8  ;;  %8334 = vmatpush3.msra.mxu1 %v6075_v27  ;;  %v8876_v27 = vld [vmem:[#allocation44 + $0x58] sm:$0xff]  }
0x12af   :  { %8335 = vmatprep.subr.mxu1 %v9699_v8 }
0x12b0   :  { %8336 = vmatpush3.msra.mxu1 %v6074_v23 }
0x12b1   :  { %8337 = vmatprep.subr.mxu1 %v9699_v8 }
0x12b2   :  { %8338 = vmatpush3.msra.mxu1 %v6073_v13  ;;  %v8878_v13 = vld [vmem:[#allocation44 + $0x50] sm:$0xff]  }
0x12b3   :  { %8339 = vmatprep.subr.mxu1 %v9699_v8 }
0x12b4   :  { %8340 = vmatpush3.msra.mxu1 %v6072_v34  ;;  %v8879_v34 = vld [vmem:[#allocation44] sm:$0xff]  }
0x12b5   :  { %8341 = vmatprep.subr.mxu1 %v9699_v8 }
0x12b6   :  { %8342 = vmatpush3.msra.mxu1 %v6071_v12  ;;  %v8880_v12 = vld [vmem:[#allocation44 + $0x48] sm:$0xff]  }
0x12b7   :  { %8343 = vmatprep.subr.mxu1 %v9699_v8 }
0x12b8   :  { %8344 = vmatpush3.msra.mxu1 %v6070_v28  ;;  %v8881_v28 = vld [vmem:[#allocation44 + $0x40] sm:$0xff]  }
0x12b9   :  { %8345 = vmatprep.subr.mxu1 %v9699_v8 }
0x12ba   :  { %8346 = vmatpush3.msra.mxu1 %v6069_v22 }
0x12bb   :  { %8347 = vmatprep.subr.mxu1 %v9699_v8 }
0x12bc   :  { %8348 = vmatpush3.msra.mxu1 %v6068_v5 }
0x12bd   :  { %8349 = vmatprep.subr.mxu1 %v9699_v8 }
0x12be   :  { %8350 = vmatpush3.msra.mxu1 %v6067_v54 }
0x12bf   :  { %8351 = vmatprep.subr.mxu1 %v9699_v8 }
0x12c0   :  { %8352 = vmatpush3.msra.mxu1 %v6066_v14 }
0x12c1   :  { %8353 = vmatprep.subr.mxu1 %v9699_v8 }
0x12c2   :  { %8354 = vmatpush3.msra.mxu1 %v6065_v45 }
0x12c3   :  { %8355 = vmatprep.subr.mxu1 %v9699_v8 }
0x12c4   :  { %8356 = vmatpush3.msra.mxu1 %v6064_v15 }
0x12c5   :  { %8357 = vmatprep.subr.mxu1 %v9699_v8 }
0x12c6   :  { %8358 = vmatpush3.msra.mxu1 %v6063_v40 }
0x12c7   :  { %8359 = vmatprep.subr.mxu1 %v9699_v8 }
0x12c8   :  { %8360 = vmatpush3.msra.mxu1 %v6062_v41 }
0x12c9   :  { %8361 = vmatprep.subr.mxu1 %v9699_v8 }
0x12ca   :  { %8362 = vmatpush3.msra.mxu1 %v6061_v58 }
0x12cb   :  { %8363 = vmatprep.subr.mxu1 %v9699_v8 }
0x12cc   :  { %8364 = vmatpush3.msra.mxu1 %v6060_v53 }
0x12cd   :  { %8390 = vmatprep.subr.bf16.mxu1 %v9699_v8 }
0x136d   :  { %v5727_v32 = vpop.f32.mrf.mxu1 }
0x136e   :  { %v5731_v26 = vmul.f32 0.03125, %v5727_v32  ;;  %v6226_v32 = vld [vmem:[%s11898_s2] sm:$0xf] }
0x136f   :  { %v8276_v36 = vpop.f32.mrf.mxu1 }
0x1370   :  { %v5732_v20 = vadd.f32 1e-05, %v5731_v26  ;;  %v8870_v26 = vld [vmem:[#allocation44 + $0x38] sm:$0xff]   ;;  %v8871_v36 = vld [vmem:[#allocation44 + $0x30] sm:$0xff]  }
0x1372   :  { %8886 = vrsqrt.f32 %v5732_v20  ;;  %v8872_v20 = vld [vmem:[#allocation44 + $0x28] sm:$0xff]  }
0x137f   :  { %v8887_v35 = vpop.eup %8886 }
0x1380   :  { %8286 = vmatmul.mubr.msk.f32.vlgmr.msra.gmra.mxu0 %vm630_vm0, %v8887_v35  ;;  %v8873_v35 = vld [vmem:[#allocation44 + $0x20] sm:$0xff]  }
0x1381   :  { %8290 = vmatprep.mubr.msk.f32.mxu0 %vm9701_vm3, %v9699_v8 }
0x1440   :  { %v5803_v16 = vpop.f32.mrf.mxu0 }
0x1441   :  { %v5808_v1 = vmul.f32 %v5807_v38, %v5803_v16 }
0x1442   :  { %v8287_v47 = vpop.f32.mrf.mxu0 }
0x1443   :  { %v5813_v17 = vrot.slane %v5808_v1, %v11884_v56 }
0x1445   :  { %v5815_v44 = vmul.f32 %v5813_v17, %v5653_v4  ;;  %v8875_v4 = vld [vmem:[#allocation44 + $0x10] sm:$0xff]   ;;  %v6554_v17 = vld [vmem:[%s11899_s12 + $0x38] sm:$0xff] }
0x1447   :  { %v5823_v21 = vadd.f32 %v7579_v19, %v5815_v44  ;;  %v6553_v19 = vld [vmem:[%s11899_s12 + $0x30] sm:$0xff]  ;;  %v6552_v44 = vld [vmem:[%s11899_s12 + $0x28] sm:$0xff] }
0x1449   :  { %v5824_v42 = vmax.f32 %v5823_v21, 0.0  ;;  %v6551_v21 = vld [vmem:[%s11899_s12 + $0x20] sm:$0xff] }
0x144b   :  { %8289 = vmatpush3.msra.mxu0 %v5824_v42 }
0x144c   :  { %8291 = vmatmul.mubr.msk.f32.vlgmr.msra.gmra.mxu0 %vm5005_vm4, %v5825_v51  ;;  %8293 = vmatprep.subr.mxu0 %v9699_v8  ;;  %v6549_v51 = vld [vmem:[%s11899_s12 + $0x10] sm:$0xff] }
0x144d   :  { %8294 = vmatpush3.msra.mxu0 %v5824_v42  ;;  %8295 = vmatprep.mubr.msk.f32.mxu0 %vm9701_vm3, %v9699_v8  ;;  %v6550_v42 = vld [vmem:[%s11899_s12 + $0x18] sm:$0xff] }
0x144e   :  { %8298 = vmatprep.subr.mxu0 %v9699_v8 }
0x1450   :  { %8296 = vmatmul.mubr.msk.f32.vlgmr.msra.gmra.mxu0 %vm5005_vm4, %v5899_v52  ;;  %v6548_v52 = vld [vmem:[%s11899_s12 + $0x8] sm:$0xff] }
0x1451   :  { %8299 = vmatpush3.msra.mxu0 %v5989_v46  ;;  %8330 = vmatprep.mubr.msk.f32.mxu0 %vm9701_vm3, %v9699_v8  ;;  %v6547_v46 = vld [vmem:[%s11899_s12] sm:$0xff] }
0x1452   :  { %8300 = vmatprep.subr.mxu0 %v9699_v8 }
0x1453   :  { %8301 = vmatpush3.msra.mxu0 %v5988_v59  ;;  %v6632_v59 = vld [vmem:[#allocation50 + $0x18] sm:$0xff] }
0x1454   :  { %8302 = vmatprep.subr.mxu0 %v9699_v8 }
0x1455   :  { %8303 = vmatpush3.msra.mxu0 %v5987_v60  ;;  %v6631_v60 = vld [vmem:[#allocation50 + $0x10] sm:$0xff] }
0x1456   :  { %8304 = vmatprep.subr.mxu0 %v9699_v8 }
0x1457   :  { %8305 = vmatpush3.msra.mxu0 %v5986_v37 }
0x1458   :  { %8306 = vmatprep.subr.mxu0 %v9699_v8 }
0x1459   :  { %8307 = vmatpush3.msra.mxu0 %v5985_v63 }
0x145a   :  { %8308 = vmatprep.subr.mxu0 %v9699_v8 }
0x145b   :  { %8309 = vmatpush3.msra.mxu0 %v5984_v61 }
0x145c   :  { %8310 = vmatprep.subr.mxu0 %v9699_v8 }
0x145d   :  { %8311 = vmatpush3.msra.mxu0 %v5983_v62 }
0x145e   :  { %8312 = vmatprep.subr.mxu0 %v9699_v8 }
0x145f   :  { %8313 = vmatpush3.msra.mxu0 %v5982_v49 }
0x1460   :  { %8314 = vmatprep.subr.mxu0 %v9699_v8 }
0x1461   :  { %8315 = vmatpush3.msra.mxu0 %v5981_v30  ;;  %v7601_v30 = vld [vmem:[#allocation46] ss:$0 sm:$0xff] }
0x1462   :  { %8316 = vmatprep.subr.mxu0 %v9699_v8 }
0x1463   :  { %8317 = vmatpush3.msra.mxu0 %v5980_v9 }
0x1464   :  { %8318 = vmatprep.subr.mxu0 %v9699_v8 }
0x1465   :  { %8319 = vmatpush3.msra.mxu0 %v5979_v55 }
0x1466   :  { %8320 = vmatprep.subr.mxu0 %v9699_v8 }
0x1467   :  { %8321 = vmatpush3.msra.mxu0 %v5978_v2 }
0x1468   :  { %8322 = vmatprep.subr.mxu0 %v9699_v8 }
0x1469   :  { %8323 = vmatpush3.msra.mxu0 %v5977_v6 }
0x146a   :  { %8324 = vmatprep.subr.mxu0 %v9699_v8 }
0x146b   :  { %8325 = vmatpush3.msra.mxu0 %v5976_v50 }
0x146c   :  { %8326 = vmatprep.subr.mxu0 %v9699_v8 }
0x146d   :  { %8327 = vmatpush3.msra.mxu0 %v5975_v57 }
0x146e   :  { %8328 = vmatprep.subr.mxu0 %v9699_v8 }
0x146f   :  { %8329 = vmatpush3.msra.mxu0 %v5974_v7 }
0x1470   :  { %8368 = vmatprep.subr.mxu0 %v9699_v8 }
0x150c   :  { %v5895_v18 = vpop.f32.mrf.mxu0 }
0x150e   :  { %v8292_v39 = vpop.f32.mrf.mxu0 }
0x1510   :  { %v5969_v10 = vpop.f32.mrf.mxu0 }
0x1511   :  { %v5973_v0 = vmax.f32 %v5895_v18, %v5969_v10  ;;  %v6630_v10 = vld [vmem:[#allocation50 + $0x8] sm:$0xff] }
0x1512   :  { %v8297_v48 = vpop.f32.mrf.mxu0 }
0x1513   :  { %8331 = vmatmul.mubr.f32.vlgmr.msra.gmra.mxu0 %v5973_v0  ;;  %8366 = vmatmul.mubr.f32.vlgmr.msra.gmra.mxu1 %v5973_v0  ;;  %v6629_v0 = vld [vmem:[#allocation50] sm:$0xff] }
0x1514   :  { %8370 = vmatprep.mubr.msk.f32.mxu0 %vm9701_vm3, %v9699_v8  ;;  %8398 = vmatprep.mubr.msk.bf16.mxu1 %vm9701_vm3, %v9699_v8 }
0x1515   :  { %8391 = vmatpush3.bf16.msra.mxu1 %v8874_v3 }
0x1516   :  { %8392 = vmatprep.subr.bf16.mxu1 %v9699_v8 }
0x1519   :  { %8393 = vmatpush3.bf16.msra.mxu1 %v8875_v4 }
0x151a   :  { %8394 = vmatprep.subr.bf16.mxu1 %v9699_v8 }
0x151d   :  { %8395 = vmatpush3.bf16.msra.mxu1 %v8877_v11 }
0x151e   :  { %8396 = vmatprep.subr.bf16.mxu1 %v9699_v8 }
0x1521   :  { %8397 = vmatpush3.bf16.msra.mxu1 %v8879_v34 }
0x1522   :  { %8414 = vmatprep.subr.mxu1 %v9699_v8 }
0x15d3   :  { %v6056_v31 = vpop.f32.mrf.mxu0  ;;  %v6142_v25 = vpop.f32.mrf.mxu1 }
0x15d4   :  { %v6146_v43 = vmax.f32 %v6056_v31, %v6142_v25 }
0x15d5   :  { %v8332_v24 = vpop.f32.mrf.mxu0  ;;  %v8367_v33 = vpop.f32.mrf.mxu1 }
0x15d6   :  { %8369 = vmatpush3.msk.msra.mxu0 %vm6152_vm5, %v6146_v43  ;;  %v6309_v23 = vpack.c.bf16 %v6146_v43, %v6146_v43 }
0x15d7   :  { %8371 = vmatmul.mubr.msk.f32.vlgmr.msra.gmra.mxu0 %vm6148_vm6, %v6147_v29  ;;  %8373 = vmatprep.subr.mxu0 %v9699_v8 }
0x15d8   :  { %8374 = vmatpush3.msk.msra.mxu0 %vm6152_vm5, %v6146_v43  ;;  %8375 = vmatprep.mubr.msk.f32.mxu0 %vm9701_vm3, %v9699_v8 }
0x15d9   :  { %8378 = vmatprep.subr.bf16.mxu0 %v9699_v8 }
0x15db   :  { %8376 = vmatmul.mubr.msk.f32.vlgmr.msra.gmra.mxu0 %vm6148_vm6, %v6226_v32 }
0x15dc   :  { %8379 = vmatpush3.bf16.msra.mxu0 %v8870_v26  ;;  %8386 = vmatprep.mubr.msk.bf16.mxu0 %vm9701_vm3, %v9699_v8 }
0x15dd   :  { %8380 = vmatprep.subr.bf16.mxu0 %v9699_v8 }
0x15e0   :  { %8381 = vmatpush3.bf16.msra.mxu0 %v8871_v36 }
0x15e1   :  { %8382 = vmatprep.subr.bf16.mxu0 %v9699_v8 }
0x15e4   :  { %8383 = vmatpush3.bf16.msra.mxu0 %v8872_v20 }
0x15e5   :  { %8384 = vmatprep.subr.bf16.mxu0 %v9699_v8 }
0x15e8   :  { %8385 = vmatpush3.bf16.msra.mxu0 %v8873_v35 }
0x15e9   :  { %8402 = vmatprep.subr.bf16.mxu0 %v9699_v8 }
0x15eb   :  { %8387 = vmatmul.mubr.msk.bf16.vlgmr.msra.gmra.mxu0 %vm946_vm1, %v6309_v23 }
0x15ec   :  { %8403 = vmatpush3.bf16.msra.mxu0 %v8876_v27  ;;  %8410 = vmatprep.mubr.msk.bf16.mxu0 %vm9701_vm3, %v9699_v8 }
0x15ed   :  { %8404 = vmatprep.subr.bf16.mxu0 %v9699_v8 }
0x15f0   :  { %8405 = vmatpush3.bf16.msra.mxu0 %v8878_v13 }
0x15f1   :  { %8406 = vmatprep.subr.bf16.mxu0 %v9699_v8 }
0x15f4   :  { %8407 = vmatpush3.bf16.msra.mxu0 %v8880_v12 }
0x15f5   :  { %8408 = vmatprep.subr.bf16.mxu0 %v9699_v8 }
0x15f8   :  { %8409 = vmatpush3.bf16.msra.mxu0 %v8881_v28  ;;  %v6868_v28 = vld [vmem:[#allocation47] sm:$0x1] }
0x15f9   :  { %8433 = vmatprep.subr.mxu0 %v9699_v8 }
0x1697   :  { %v6222_v22 = vpop.f32.mrf.mxu0 }
0x1698   :  { %v6300_v5 = vpack.c.bf16 %v6222_v22, %v6222_v22 }
0x1699   :  { %v8372_v54 = vpop.f32.mrf.mxu0 }
0x169a   :  { %8399 = vmatmul.mubr.msk.bf16.vlgmr.msra.gmra.mxu1 %vm946_vm1, %v6300_v5 }
0x169b   :  { %v6296_v14 = vpop.f32.mrf.mxu0  ;;  %8430 = vmatprep.mubr.msk.f32.mxu1 %vm9701_vm3, %v9699_v8  ;;  %8415 = vmatpush3.msra.mxu1 %v6554_v17 }
0x169c   :  { %v6453_v45 = vpack.c.bf16 %v6296_v14, %v6296_v14  ;;  %8416 = vmatprep.subr.mxu1 %v9699_v8 }
0x169d   :  { %v8377_v15 = vpop.f32.mrf.mxu0  ;;  %8417 = vmatpush3.msra.mxu1 %v6553_v19 }
0x169e   :  { %8411 = vmatmul.mubr.msk.bf16.vlgmr.msra.gmra.mxu0 %vm946_vm1, %v6453_v45  ;;  %8418 = vmatprep.subr.mxu1 %v9699_v8  ;;  %v7606_v45 = vld [vmem:[#allocation49] ss:$0 sm:$0xff] }
0x169f   :  { %8441 = vmatprep.mubr.msk.f32.mxu0 %vm9701_vm3, %v9699_v8  ;;  %8419 = vmatpush3.msra.mxu1 %v6552_v44 }
0x16a0   :  { %8420 = vmatprep.subr.mxu1 %v9699_v8  ;;  %8434 = vmatpush3.msra.mxu0 %v6632_v59 }
0x16a1   :  { %8421 = vmatpush3.msra.mxu1 %v6551_v21  ;;  %8435 = vmatprep.subr.mxu0 %v9699_v8 }
0x16a2   :  { %8422 = vmatprep.subr.mxu1 %v9699_v8  ;;  %8436 = vmatpush3.msra.mxu0 %v6631_v60 }
0x16a3   :  { %8423 = vmatpush3.msra.mxu1 %v6550_v42  ;;  %8437 = vmatprep.subr.mxu0 %v9699_v8 }
0x16a4   :  { %8424 = vmatprep.subr.mxu1 %v9699_v8  ;;  %8438 = vmatpush3.msra.mxu0 %v6630_v10 }
0x16a5   :  { %8425 = vmatpush3.msra.mxu1 %v6549_v51  ;;  %8439 = vmatprep.subr.mxu0 %v9699_v8 }
0x16a6   :  { %8426 = vmatprep.subr.mxu1 %v9699_v8  ;;  %8440 = vmatpush3.msra.mxu0 %v6629_v0 }
0x16a7   :  { %8427 = vmatpush3.msra.mxu1 %v6548_v52  ;;  %8463 = vmatprep.subr.mxu0 %v9699_v8 }
0x16a8   :  { %8428 = vmatprep.subr.mxu1 %v9699_v8 }
0x16a9   :  { %8429 = vmatpush3.msra.mxu1 %v6547_v46 }
0x16aa   :  { %8444 = vmatprep.subr.mxu1 %v9699_v8 }
0x16ab   :  { %v6380_v38 = vpop.f32.mrf.mxu0 }
0x16ad   :  { %v8388_v16 = vpop.f32.mrf.mxu0 }
0x16af   :  { %v6383_v1 = vpop.f32.mrf.mxu0 }
0x16b0   :  { %v6886_v1 = vld [vmem:[%s11900_s7] sm:$0x3] }
0x16b1   :  { %v8389_v47 = vpop.f32.mrf.mxu0 }
0x16b2   :  { %v6963_v47 = vld [vmem:[%s11901_s6] sm:$0x3] }
0x175a   :  { %v6447_v37 = vpop.f32.mrf.mxu1 }
0x175b   :  { %v6448_v61 = vadd.f32 %v6447_v37, %v6380_v38  ;;  %v7121_v37 = vld [vmem:[%s9951_s8 + $0x10] sm:$0xff] }
0x175c   :  { %v8400_v63 = vpop.f32.mrf.mxu1 }
0x175d   :  { %v7039_v63 = vld [vmem:[%s11902_s13 + $0x8] sm:$0xff] }
0x175e   :  { %v6450_v62 = vpop.f32.mrf.mxu1  ;;  %v6524_v49 = vpop.f32.mrf.mxu0 }
0x175f   :  { %v6530_v9 = vadd.f32 %v6524_v49, %v6448_v61  ;;  %v7120_v61 = vld [vmem:[%s9951_s8 + $0x8] sm:$0xff]  ;;  %v7038_v62 = vld [vmem:[%s11902_s13] sm:$0xff] }
0x1760   :  { %v8401_v55 = vpop.f32.mrf.mxu1  ;;  %v8412_v2 = vpop.f32.mrf.mxu0  ;;  %v7119_v49 = vld [vmem:[%s9951_s8] sm:$0xff] }
0x1761   :  { %v6538_v6 = vadd.f32 %v7601_v30, %v6530_v9  ;;  %v7201_v2 = vld [vmem:[%s9956_s9 + $0x18] sm:$0xff] }
0x1762   :  { %v6527_v40 = vpop.f32.mrf.mxu0 }
0x1763   :  { %v6540_v50 = vsel %vm6539_vm7, %v6538_v6, 0.0 }
0x1764   :  { %v6541_v41 = vrot.slane %v6540_v50, 4  ;;  %v8413_v57 = vpop.f32.mrf.mxu0 }
0x1765   :  { %v7198_v57 = vld [vmem:[%s9956_s9] sm:$0xff] }
0x1766   :  { %v6542_v58 = vadd.f32 %v6541_v41, %v6540_v50  ;;  %v7200_v50 = vld [vmem:[%s9956_s9 + $0x10] sm:$0xff]  ;;  %v7199_v41 = vld [vmem:[%s9956_s9 + $0x8] sm:$0xff] }
0x1768   :  { %v6543_v7 = vrot.slane %v6542_v58, 2 }
0x176a   :  { %v6544_v53 = vadd.f32 %v6543_v7, %v6542_v58 }
0x176c   :  { %v6545_v18 = vrot.slane %v6544_v53, 1 }
0x176e   :  { %v6546_v39 = vadd.f32 %v6545_v18, %v6544_v53 }
0x1770   :  { %8431 = vmatmul.mubr.msk.f32.vlgmr.msra.gmra.mxu1 %vm946_vm1, %v6546_v39 }
0x1771   :  { %8445 = vmatpush3.msra.mxu1 %v6554_v17  ;;  %8460 = vmatprep.mubr.msk.f32.mxu1 %vm9701_vm3, %v9699_v8  ;;  %v7045_v17 = vld [vmem:[%s11902_s13 + $0x38] sm:$0xff] }
0x1772   :  { %8446 = vmatprep.subr.mxu1 %v9699_v8 }
0x1773   :  { %8447 = vmatpush3.msra.mxu1 %v6553_v19  ;;  %v7126_v19 = vld [vmem:[%s9951_s8 + $0x38] sm:$0xff] }
0x1774   :  { %8448 = vmatprep.subr.mxu1 %v9699_v8 }
0x1775   :  { %8449 = vmatpush3.msra.mxu1 %v6552_v44  ;;  %v7125_v44 = vld [vmem:[%s9951_s8 + $0x30] sm:$0xff] }
0x1776   :  { %8450 = vmatprep.subr.mxu1 %v9699_v8 }
0x1777   :  { %8451 = vmatpush3.msra.mxu1 %v6551_v21  ;;  %v7043_v21 = vld [vmem:[%s11902_s13 + $0x28] sm:$0xff] }
0x1778   :  { %8452 = vmatprep.subr.mxu1 %v9699_v8 }
0x1779   :  { %8453 = vmatpush3.msra.mxu1 %v6550_v42  ;;  %v7124_v42 = vld [vmem:[%s9951_s8 + $0x28] sm:$0xff] }
0x177a   :  { %8454 = vmatprep.subr.mxu1 %v9699_v8 }
0x177b   :  { %8455 = vmatpush3.msra.mxu1 %v6549_v51  ;;  %v7042_v51 = vld [vmem:[%s11902_s13 + $0x20] sm:$0xff] }
0x177c   :  { %8456 = vmatprep.subr.mxu1 %v9699_v8 }
0x177d   :  { %8457 = vmatpush3.msra.mxu1 %v6548_v52  ;;  %v7123_v52 = vld [vmem:[%s9951_s8 + $0x20] sm:$0xff] }
0x177e   :  { %8458 = vmatprep.subr.mxu1 %v9699_v8 }
0x177f   :  { %8459 = vmatpush3.msra.mxu1 %v6547_v46  ;;  %v7041_v46 = vld [vmem:[%s11902_s13 + $0x18] sm:$0xff] }
0x1780   :  { %8479 = vmatprep.subr.mxu1 %v9699_v8 }
0x1830   :  { %v6624_v48 = vpop.f32.mrf.mxu1 }
0x1831   :  { %v6628_v3 = vmul.f32 0.125, %v6624_v48 }
0x1832   :  { %v8432_v4 = vpop.f32.mrf.mxu1 }
0x1833   :  { %8442 = vmatmul.mubr.msk.f32.vlgmr.msra.gmra.mxu0 %vm630_vm0, %v6628_v3 }
0x1834   :  { %8464 = vmatpush3.msra.mxu0 %v6632_v59  ;;  %8471 = vmatprep.mubr.msk.f32.mxu0 %vm9701_vm3, %v9699_v8  ;;  %v7122_v59 = vld [vmem:[%s9951_s8 + $0x18] sm:$0xff]  ;;  %s9702_s8 = smov [#allocation53]  }
0x1835   :  { %8465 = vmatprep.subr.mxu0 %v9699_v8  ;;  %s7290_s11 = sshll.u32 %s9702_s8, 4  ;;  %s7291_s11 = int_to_ptr.vmem [resolvable:$true] %s7290_s11 }
0x1836   :  { %8466 = vmatpush3.msra.mxu0 %v6631_v60  ;;  %v7040_v60 = vld [vmem:[%s11902_s13 + $0x10] sm:$0xff]  ;;  %s9550_s10 = scalar_lea.vmem %s7291_s11, 32  ;;  %p9555_p12 = scmp.lt.s32.totalorder %s7291_s11, %s7291_s11 }
0x1837   :  { %8467 = vmatprep.subr.mxu0 %v9699_v8  ;;  %p9551_p11 = scmp.ne.s32.totalorder %s7291_s11, %s9550_s10  ;;  %p9556_p13 = scmp.lt.s32.totalorder %s9550_s10, %s9550_s10 }
0x1838   :  { %8468 = vmatpush3.msra.mxu0 %v6630_v10  ;;  %v7613_v10 = vld [vmem:[#allocation52] ss:$0 sm:$0xff] }
0x1839   :  { %8469 = vmatprep.subr.mxu0 %v9699_v8  ;;  %p9557_p0 = por %p9556_p13, %p9555_p12 }
0x183a   :  { %8470 = vmatpush3.msra.mxu0 %v6629_v0 }
0x183b   :  { %8474 = vmatprep.subr.mxu0 %v9699_v8  ;;  %p9558_p1 = pnand %p9557_p0, %p9551_p11 }
0x18f3   :  { %v6702_v11 = vpop.f32.mrf.mxu0 }
0x18f4   :  { %v6709_v31 = vrot.slane %v6702_v11, %v11884_v56 }
0x18f5   :  { %v8443_v25 = vpop.f32.mrf.mxu0 }
0x18f6   :  { %v6710_v43 = vsub.f32 %v6538_v6, %v6709_v31 }
0x18f8   :  { %v6711_v29 = vmul.f32 %v6710_v43, %v6710_v43 }
0x18fa   :  { %v6712_v24 = vsel %vm6539_vm7, %v6711_v29, 0.0 }
0x18fb   :  { %v6713_v33 = vrot.slane %v6712_v24, 4 }
0x18fd   :  { %v6714_v32 = vadd.f32 %v6713_v33, %v6712_v24 }
0x18ff   :  { %v6715_v26 = vrot.slane %v6714_v32, 2 }
0x1901   :  { %v6716_v36 = vadd.f32 %v6715_v26, %v6714_v32 }
0x1903   :  { %v6717_v20 = vrot.slane %v6716_v36, 1 }
0x1905   :  { %v6718_v35 = vadd.f32 %v6717_v20, %v6716_v36 }
0x1907   :  { %8461 = vmatmul.mubr.msk.f32.vlgmr.msra.gmra.mxu1 %vm946_vm1, %v6718_v35 }
0x1908   :  { %8481 = vmatprep.mubr.msk.f32.mxu1 %vm9701_vm3, %v9699_v8 }
0x19c7   :  { %v6788_v27 = vpop.f32.mrf.mxu1 }
0x19c8   :  { %v6792_v23 = vmul.f32 0.125, %v6788_v27 }
0x19c9   :  { %v8462_v13 = vpop.f32.mrf.mxu1 }
0x19ca   :  { %v6793_v34 = vadd.f32 1e-05, %v6792_v23 }
0x19cc   :  { %8888 = vrsqrt.f32 %v6793_v34 }
0x19d9   :  { %v8889_v12 = vpop.eup %8888 }
0x19da   :  { %8472 = vmatmul.mubr.msk.f32.vlgmr.msra.gmra.mxu0 %vm630_vm0, %v8889_v12 }
0x19db   :  { %8476 = vmatprep.mubr.msk.f32.mxu0 %vm9701_vm3, %v9699_v8 }
0x1a9a   :  { %v6864_v22 = vpop.f32.mrf.mxu0 }
0x1a9b   :  { %v6869_v5 = vmul.f32 %v6868_v28, %v6864_v22 }
0x1a9c   :  { %v8473_v54 = vpop.f32.mrf.mxu0 }
0x1a9d   :  { %v6874_v14 = vrot.slane %v6869_v5, %v11884_v56  ;;  %v7044_v56 = vld [vmem:[%s11902_s13 + $0x30] sm:$0xff] }
0x1a9f   :  { %v6876_v15 = vmul.f32 %v6874_v14, %v6710_v43 }
0x1aa1   :  { %v6884_v38 = vadd.f32 %v7606_v45, %v6876_v15 }
0x1aa3   :  { %v6885_v16 = vmax.f32 %v6884_v38, 0.0 }
0x1aa5   :  { %8475 = vmatpush3.msk.msra.mxu0 %vm6152_vm5, %v6885_v16  ;;  %8480 = vmatpush3.msk.msra.mxu1 %vm6152_vm5, %v6885_v16 }
0x1aa6   :  { %8477 = vmatmul.mubr.msk.f32.vlgmr.msra.gmra.mxu0 %vm6148_vm6, %v6886_v1  ;;  %8482 = vmatmul.mubr.msk.f32.vlgmr.msra.gmra.mxu1 %vm6148_vm6, %v6963_v47 }
0x1aa7   :  { %8484 = vmatprep.subr.mxu0 %v9699_v8  ;;  %8503 = vmatprep.subr.mxu1 %v9699_v8 }
0x1aa8   :  { %8485 = vmatpush3.msra.mxu0 %v7045_v17  ;;  %8504 = vmatpush3.msra.mxu1 %v7126_v19 }
0x1aa9   :  { %8486 = vmatprep.subr.mxu0 %v9699_v8  ;;  %8505 = vmatprep.subr.mxu1 %v9699_v8 }
0x1aaa   :  { %8487 = vmatpush3.msra.mxu0 %v7044_v56  ;;  %8506 = vmatpush3.msra.mxu1 %v7125_v44 }
0x1aab   :  { %8488 = vmatprep.subr.mxu0 %v9699_v8  ;;  %8507 = vmatprep.subr.mxu1 %v9699_v8 }
0x1aac   :  { %8489 = vmatpush3.msra.mxu0 %v7043_v21  ;;  %8508 = vmatpush3.msra.mxu1 %v7124_v42 }
0x1aad   :  { %8490 = vmatprep.subr.mxu0 %v9699_v8  ;;  %8509 = vmatprep.subr.mxu1 %v9699_v8 }
0x1aae   :  { %8491 = vmatpush3.msra.mxu0 %v7042_v51  ;;  %8510 = vmatpush3.msra.mxu1 %v7123_v52 }
0x1aaf   :  { %8492 = vmatprep.subr.mxu0 %v9699_v8  ;;  %8511 = vmatprep.subr.mxu1 %v9699_v8 }
0x1ab0   :  { %8493 = vmatpush3.msra.mxu0 %v7041_v46  ;;  %8512 = vmatpush3.msra.mxu1 %v7122_v59 }
0x1ab1   :  { %8494 = vmatprep.subr.mxu0 %v9699_v8  ;;  %8513 = vmatprep.subr.mxu1 %v9699_v8 }
0x1ab2   :  { %8495 = vmatpush3.msra.mxu0 %v7040_v60  ;;  %8514 = vmatpush3.msra.mxu1 %v7121_v37 }
0x1ab3   :  { %8496 = vmatprep.subr.mxu0 %v9699_v8  ;;  %8515 = vmatprep.subr.mxu1 %v9699_v8 }
0x1ab4   :  { %8500 = vmatprep.mubr.msk.f32.mxu0 %vm9701_vm3, %v9699_v8  ;;  %8519 = vmatprep.mubr.msk.f32.mxu1 %vm9701_vm3, %v9699_v8 }
0x1ab5   :  { %8497 = vmatpush3.msra.mxu0 %v7039_v63  ;;  %8516 = vmatpush3.msra.mxu1 %v7120_v61 }
0x1ab6   :  { %8498 = vmatprep.subr.mxu0 %v9699_v8  ;;  %8517 = vmatprep.subr.mxu1 %v9699_v8 }
0x1ab7   :  { %8499 = vmatpush3.msra.mxu0 %v7038_v62  ;;  %8518 = vmatpush3.msra.mxu1 %v7119_v49 }
0x1ab8   :  { %8522 = vmatprep.subr.mxu0 %v9699_v8 }
0x1b66   :  { %v6959_v30 = vpop.f32.mrf.mxu0  ;;  %v7033_v9 = vpop.f32.mrf.mxu1 }
0x1b67   :  { %v7037_v55 = vmax.f32 %v6959_v30, %v7033_v9 }
0x1b68   :  { %v8478_v6 = vpop.f32.mrf.mxu0  ;;  %v8483_v40 = vpop.f32.mrf.mxu1 }
0x1b69   :  { %8501 = vmatmul.mubr.msk.f32.vlgmr.msra.gmra.mxu0 %vm946_vm1, %v7037_v55  ;;  %8520 = vmatmul.mubr.msk.f32.vlgmr.msra.gmra.mxu1 %vm946_vm1, %v7037_v55 }
0x1b6a   :  { %8523 = vmatpush3.msra.mxu0 %v7201_v2  ;;  %8530 = vmatprep.mubr.msk.f32.mxu0 %vm9701_vm3, %v9699_v8 }
0x1b6b   :  { %8524 = vmatprep.subr.mxu0 %v9699_v8 }
0x1b6c   :  { %8525 = vmatpush3.msra.mxu0 %v7200_v50 }
0x1b6d   :  { %8526 = vmatprep.subr.mxu0 %v9699_v8 }
0x1b6e   :  { %8527 = vmatpush3.msra.mxu0 %v7199_v41 }
0x1b6f   :  { %8528 = vmatprep.subr.mxu0 %v9699_v8 }
0x1b70   :  { %8529 = vmatpush3.msra.mxu0 %v7198_v57 }
0x1c29   :  { %v7115_v58 = vpop.f32.mrf.mxu0  ;;  %v7193_v7 = vpop.f32.mrf.mxu1 }
0x1c2a   :  { %v7197_v53 = vmax.f32 %v7115_v58, %v7193_v7 }
0x1c2b   :  { %v8502_v18 = vpop.f32.mrf.mxu0  ;;  %v8521_v39 = vpop.f32.mrf.mxu1 }
0x1c2c   :  { %8531 = vmatmul.mubr.msk.f32.vlgmr.msra.gmra.mxu0 %vm630_vm0, %v7197_v53 }
0x1cec   :  { %v7278_v0 = vpop.f32.mrf.mxu0 }
0x1ced   :  { %v7279_v48 = vadd.f32 %v7613_v10, %v7278_v0 }
0x1cee   :  { %v8532_v3 = vpop.f32.mrf.mxu0 }
0x1cef   :  { %7283 = vst.msk [vmem:[#allocation53] sm:$0x3] %vm7282_vm8, %v7279_v48 }
0x1cf0   :  { %9561 = shalt.err (!%p9558_p1)
}
0x1cf1   :  { %7293 = dma.vmem_to_hbm [thread:$0]  %s7291_s11, 32, %s9966_s29, [#allocation4]  }
0x1cf2   :  { %9604 = dma.done.wait [#allocation4], 32  }
0x1cf3   :  { %9605 = vsyncadd [#allocation4], 4294967264 }
0x1cf4   :  { %7297 = vsyncpa [#allocation3], 1 }
0x1cf5   :  { %7298 = vsyncpa [#allocation6], 1 }
0x1cf6   :  { %7299 = vsyncpa [#allocation9], 1 }
0x1cf7   :  { %7300 = vsyncpa [#allocation12], 1 }
0x1cf8   :  { %7301 = vsyncpa [#allocation15], 1 }
0x1cf9   :  { %7302 = vsyncpa [#allocation18], 1 }
0x1cfa   :  { %7303 = vsyncpa [#allocation21], 1 }
0x1cfb   :  { %7304 = vsyncpa [#allocation24], 1 }
0x1cfc   :  { %7305 = vsyncpa [#allocation27], 1 }
0x1cfd   :  { %7306 = vsyncpa [#allocation30], 1 }
0x1cfe   :  { %7307 = vsyncpa [#allocation33], 1 }
0x1cff   :  { %7308 = vsyncpa [#allocation36], 1 }
0x1d00   :  { %7309 = vsyncpa [#allocation39], 1 }
0x1d01   :  { %7310 = vsyncpa [#allocation42], 1 }
0x1d02   :  { %7311 = vsyncpa [#allocation45], 1 }
0x1d03   :  { %7312 = vsyncpa [#allocation48], 1 }
0x1d04   :  { %7313 = vsyncpa [#allocation51], 1 }
0x1d05   :  { %7314 = vsyncpa [#allocation4], 1 }

</bundles_post_ra>
